<compile_context>
chip_gen: v5e
topology: v5e:2x2
jax: 0.10.0
libtpu: 0.0.40
codegen_flags: <defaults>
</compile_context>

<pallas_src>
import math

import jax
import jax.numpy as jnp
from jax import lax
from jax.experimental import pallas as pl

# ----------------------------- config ---------------------------------------
VOCAB      = 50
HIDDEN     = 32
NUM_LAYERS = 2
NUM_HEADS  = 4
HEAD_DIM   = HIDDEN // NUM_HEADS
FFN        = 64
MAX_POS    = 64
NUM_LABELS = 2
PAD_ID     = 1          # RoBERTa pad token id (input_ids != 1 -> attention mask)
LN_EPS     = 1e-5


# --------------------------- in-kernel helpers -------------------------------
def _layer_norm(x, g, b):
    mu = jnp.mean(x, axis=-1, keepdims=True)
    var = jnp.mean(jnp.square(x - mu), axis=-1, keepdims=True)
    return (x - mu) * lax.rsqrt(var + LN_EPS) * g + b


def _gelu(x):
    # exact (erf-based) GELU, matching HF RoBERTa "gelu"
    return 0.5 * x * (1.0 + lax.erf(x * (1.0 / math.sqrt(2.0))))


# --------------------------- fused megakernel --------------------------------
def _fused_forward_kernel(
        x_ref, mask_ref, eg_ref, eb_ref,
        wq_ref, bq_ref, wk_ref, bk_ref, wv_ref, bv_ref,
        wo_ref, bo_ref, l1g_ref, l1b_ref,
        wi_ref, bi_ref, wf_ref, bf_ref, l2g_ref, l2b_ref,
        wsic_ref, bsic_ref, gs_ref, ge_ref, sm_ref,
        htw_ref, htb_ref, ow_ref, ob_ref,
        out_ref, a_ref):
    f32 = jnp.float32
    BS, H = x_ref.shape
    B = mask_ref.shape[0]
    S = mask_ref.shape[2]
    L = wi_ref.shape[0]
    NH = wq_ref.shape[0] // L
    Dh = wq_ref.shape[2]
    NS_PAD = gs_ref.shape[0]
    scale = 1.0 / math.sqrt(Dh)

    # ---- embeddings LayerNorm ----
    x = _layer_norm(x_ref[...], eg_ref[...], eb_ref[...])            # (B*S, H)

    # ---- RoBERTa encoder layers (fully unrolled, activations stay in VMEM) --
    for l in range(L):
        attn_out = None
        for h in range(NH):
            idx = l * NH + h
            q_h = jnp.dot(x, wq_ref[idx], preferred_element_type=f32) + bq_ref[idx]
            k_h = jnp.dot(x, wk_ref[idx], preferred_element_type=f32) + bk_ref[idx]
            v_h = jnp.dot(x, wv_ref[idx], preferred_element_type=f32) + bv_ref[idx]
            ctx_rows = []
            for b in range(B):
                qb = q_h[b * S:(b + 1) * S, :]                        # (S, Dh)
                kb = k_h[b * S:(b + 1) * S, :]
                vb = v_h[b * S:(b + 1) * S, :]
                s = lax.dot_general(qb, kb, (((1,), (1,)), ((), ())),
                                    preferred_element_type=f32)       # (S, S)
                s = s * scale + mask_ref[b]                           # additive key mask (1, S)
                s = s - jnp.max(s, axis=-1, keepdims=True)
                p = jnp.exp(s)
                p = p * pl.reciprocal(jnp.sum(p, axis=-1, keepdims=True),
                                      approx=True)
                ctx_rows.append(jnp.dot(p, vb, preferred_element_type=f32))
            ctx_h = jnp.concatenate(ctx_rows, axis=0)                 # (B*S, Dh)
            contrib = jnp.dot(ctx_h, wo_ref[idx], preferred_element_type=f32)
            attn_out = contrib if attn_out is None else attn_out + contrib
        attn_out = attn_out + bo_ref[l]
        x = _layer_norm(attn_out + x, l1g_ref[l], l1b_ref[l])
        ff = _gelu(jnp.dot(x, wi_ref[l], preferred_element_type=f32) + bi_ref[l])
        ff = jnp.dot(ff, wf_ref[l], preferred_element_type=f32) + bf_ref[l]
        x = _layer_norm(ff + x, l2g_ref[l], l2b_ref[l])

    # ---- SIC + interpretation + classifier ----
    W = [jnp.dot(x, wsic_ref[i], preferred_element_type=f32) + bsic_ref[i]
         for i in range(4)]                                           # each (B*S, H)
    gs = gs_ref[...]                                                  # (NS_PAD, S) one-hot starts
    ge = ge_ref[...]                                                  # (NS_PAD, S) one-hot ends
    htw = htw_ref[...]                                                # (1, H)
    out_rows, a_blocks = [], []
    for b in range(B):
        w1b, w2b, w3b, w4b = (Wi[b * S:(b + 1) * S, :] for Wi in W)   # (S, H)
        w1_hi = jnp.dot(gs, w1b, preferred_element_type=f32)
        w2_hj = jnp.dot(ge, w2b, preferred_element_type=f32)
        w3_hi = jnp.dot(gs, w3b, preferred_element_type=f32)
        w3_hj = jnp.dot(ge, w3b, preferred_element_type=f32)
        w4_hi = jnp.dot(gs, w4b, preferred_element_type=f32)
        w4_hj = jnp.dot(ge, w4b, preferred_element_type=f32)
        # span = W1*hi + W2*hj + (W3*hi - W3*hj) + (W4*hi)*(W4*hj); h_ij = tanh(span)
        h_ij = jnp.tanh(w1_hi + w2_hj + (w3_hi - w3_hj) + w4_hi * w4_hj)  # (NS_PAD, H)
        logits = (jnp.sum(h_ij * htw, axis=1, keepdims=True)
                  + htb_ref[...] - sm_ref[b])                         # (NS_PAD, 1)
        logits = logits - jnp.max(logits, axis=0, keepdims=True)      # softmax over spans
        e = jnp.exp(logits)
        a = e * pl.reciprocal(jnp.sum(e, axis=0, keepdims=True), approx=True)
        h_vec = jnp.sum(a * h_ij, axis=0, keepdims=True)              # (1, H)
        out_rows.append(jnp.dot(h_vec, ow_ref[...], preferred_element_type=f32)
                        + ob_ref[...])                                # (1, NUM_LABELS)
        a_blocks.append(a.reshape(1, NS_PAD, 1))
    out_ref[...] = jnp.concatenate(out_rows, axis=0)                  # (B, NUM_LABELS)
    a_ref[...] = jnp.concatenate(a_blocks, axis=0)                    # (B, NS_PAD, 1)


# --------------------------- weight packing -----------------------------------
def pack_params(p):
    """Re-pack parameters into kernel-friendly stacks (done once, host side)."""
    def per_layer(fn):
        return jnp.stack([fn(lp) for lp in p["layers"]], axis=0)

    def qkv_heads(w):   # (H, H) -> (NH, H, Dh): head h uses columns [h*Dh:(h+1)*Dh]
        return w.reshape(HIDDEN, NUM_HEADS, HEAD_DIM).transpose(1, 0, 2)

    packed = {
        "word_emb": p["word_emb"],
        "pos_emb": p["pos_emb"],
        "type_emb": p["type_emb"],
        "emb_ln_g": p["emb_ln_g"].reshape(1, HIDDEN),
        "emb_ln_b": p["emb_ln_b"].reshape(1, HIDDEN),
        # per-head projections, layers & heads merged on the leading axis
        "wq": per_layer(lambda lp: qkv_heads(lp["wq"])).reshape(-1, HIDDEN, HEAD_DIM),
        "bq": per_layer(lambda lp: lp["bq"].reshape(NUM_HEADS, 1, HEAD_DIM)).reshape(-1, 1, HEAD_DIM),
        "wk": per_layer(lambda lp: qkv_heads(lp["wk"])).reshape(-1, HIDDEN, HEAD_DIM),
        "bk": per_layer(lambda lp: lp["bk"].reshape(NUM_HEADS, 1, HEAD_DIM)).reshape(-1, 1, HEAD_DIM),
        "wv": per_layer(lambda lp: qkv_heads(lp["wv"])).reshape(-1, HIDDEN, HEAD_DIM),
        "bv": per_layer(lambda lp: lp["bv"].reshape(NUM_HEADS, 1, HEAD_DIM)).reshape(-1, 1, HEAD_DIM),
        # output projection split by head rows: ctx @ wo == sum_h ctx_h @ wo[h*Dh:(h+1)*Dh]
        "wo": per_layer(lambda lp: lp["wo"].reshape(NUM_HEADS, HEAD_DIM, HIDDEN)).reshape(-1, HEAD_DIM, HIDDEN),
        "bo": per_layer(lambda lp: lp["bo"].reshape(1, HIDDEN)),
        "ln1_g": per_layer(lambda lp: lp["ln1_g"].reshape(1, HIDDEN)),
        "ln1_b": per_layer(lambda lp: lp["ln1_b"].reshape(1, HIDDEN)),
        "wi": per_layer(lambda lp: lp["wi"]),
        "bi": per_layer(lambda lp: lp["bi"].reshape(1, FFN)),
        "wf": per_layer(lambda lp: lp["wf"]),
        "bf": per_layer(lambda lp: lp["bf"].reshape(1, HIDDEN)),
        "ln2_g": per_layer(lambda lp: lp["ln2_g"].reshape(1, HIDDEN)),
        "ln2_b": per_layer(lambda lp: lp["ln2_b"].reshape(1, HIDDEN)),
        "w_sic": jnp.stack([p["w1"], p["w2"], p["w3"], p["w4"]], axis=0),
        "b_sic": jnp.stack([p["b1"].reshape(1, HIDDEN), p["b2"].reshape(1, HIDDEN),
                            p["b3"].reshape(1, HIDDEN), p["b4"].reshape(1, HIDDEN)], axis=0),
        "ht_w": p["ht_w"].reshape(1, HIDDEN),
        "ht_b": p["ht_b"].reshape(1, 1),
        "out_w": p["out_w"],
        "out_b": p["out_b"].reshape(1, NUM_LABELS),
    }
    return packed


# --------------------------- forward ------------------------------------------
def explainable_model_forward(packed, input_ids, start_indexs, end_indexs,
                              span_masks):
    B, S = input_ids.shape
    NS = start_indexs.shape[0]
    NS_PAD = max(8, ((NS + 7) // 8) * 8)          # pad span axis to a sublane multiple

    attention_mask = (input_ids != PAD_ID).astype(jnp.int32)
    mask_bias = ((1 - attention_mask).astype(jnp.float32) * -10000.0).reshape(B, 1, S)
    # RoBERTa position ids: cumsum of mask * mask + padding_idx
    pos_ids = jnp.cumsum(attention_mask, axis=1) * attention_mask + PAD_ID
    # TODO(synk): embedding-table gathers stay as (tiny) XLA ops feeding the fused kernel.
    x_emb = (packed["word_emb"][input_ids]
             + packed["pos_emb"][pos_ids]
             + packed["type_emb"][0]).reshape(B * S, HIDDEN).astype(jnp.float32)

    # one-hot gather matrices implementing index_select along the sequence axis
    gs = jnp.zeros((NS_PAD, S), jnp.float32).at[:NS].set(
        jax.nn.one_hot(start_indexs, S, dtype=jnp.float32))
    ge = jnp.zeros((NS_PAD, S), jnp.float32).at[:NS].set(
        jax.nn.one_hot(end_indexs, S, dtype=jnp.float32))
    sm = jnp.full((B, NS_PAD), 1e6, jnp.float32).at[:, :NS].set(
        span_masks.astype(jnp.float32)).reshape(B, NS_PAD, 1)

    out, a_pad = pl.pallas_call(
        _fused_forward_kernel,
        out_shape=(jax.ShapeDtypeStruct((B, NUM_LABELS), jnp.float32),
                   jax.ShapeDtypeStruct((B, NS_PAD, 1), jnp.float32)),
    )(x_emb, mask_bias, packed["emb_ln_g"], packed["emb_ln_b"],
      packed["wq"], packed["bq"], packed["wk"], packed["bk"],
      packed["wv"], packed["bv"], packed["wo"], packed["bo"],
      packed["ln1_g"], packed["ln1_b"], packed["wi"], packed["bi"],
      packed["wf"], packed["bf"], packed["ln2_g"], packed["ln2_b"],
      packed["w_sic"], packed["b_sic"], gs, ge, sm,
      packed["ht_w"], packed["ht_b"], packed["out_w"], packed["out_b"])
    return out, a_pad[:, :NS, 0]


# --------------------------- params ------------------------------------------
def init_params(key):
    kit = iter(jax.random.split(key, 64))

    def dense(i, o):
        return 0.02 * jax.random.normal(next(kit), (i, o), jnp.float32)

    p = {
        "word_emb": 0.02 * jax.random.normal(next(kit), (VOCAB, HIDDEN), jnp.float32),
        "pos_emb":  0.02 * jax.random.normal(next(kit), (MAX_POS, HIDDEN), jnp.float32),
        "type_emb": 0.02 * jax.random.normal(next(kit), (1, HIDDEN), jnp.float32),
        "emb_ln_g": jnp.ones((HIDDEN,), jnp.float32),
        "emb_ln_b": jnp.zeros((HIDDEN,), jnp.float32),
    }
    layers = []
    for _ in range(NUM_LAYERS):
        lp = {
            "wq": dense(HIDDEN, HIDDEN), "bq": jnp.zeros((HIDDEN,), jnp.float32),
            "wk": dense(HIDDEN, HIDDEN), "bk": jnp.zeros((HIDDEN,), jnp.float32),
            "wv": dense(HIDDEN, HIDDEN), "bv": jnp.zeros((HIDDEN,), jnp.float32),
            "wo": dense(HIDDEN, HIDDEN), "bo": jnp.zeros((HIDDEN,), jnp.float32),
            "ln1_g": jnp.ones((HIDDEN,), jnp.float32),
            "ln1_b": jnp.zeros((HIDDEN,), jnp.float32),
            "wi": dense(HIDDEN, FFN), "bi": jnp.zeros((FFN,), jnp.float32),
            "wf": dense(FFN, HIDDEN), "bf": jnp.zeros((HIDDEN,), jnp.float32),
            "ln2_g": jnp.ones((HIDDEN,), jnp.float32),
            "ln2_b": jnp.zeros((HIDDEN,), jnp.float32),
        }
        layers.append(lp)
    p["layers"] = layers
    for n in ("w1", "w2", "w3", "w4"):
        p[n] = dense(HIDDEN, HIDDEN)
        p["b" + n[1]] = jnp.zeros((HIDDEN,), jnp.float32)
    p["ht_w"] = dense(HIDDEN, 1)
    p["ht_b"] = jnp.zeros((1,), jnp.float32)
    p["out_w"] = dense(HIDDEN, NUM_LABELS)
    p["out_b"] = jnp.zeros((NUM_LABELS,), jnp.float32)
    return p


# --------------------------- main --------------------------------------------
if __name__ == "__main__":
    key = jax.random.PRNGKey(0)
    k_param, k_ids = jax.random.split(key)
    params = init_params(k_param)
    packed = pack_params(params)

    B, S = 2, 8
    input_ids = jax.random.randint(k_ids, (B, S), 2, VOCAB, dtype=jnp.int32)
    input_ids = input_ids.at[1, 6:].set(PAD_ID)  # second sequence has 2 pads

    # all spans (i, j) with 1 <= i <= j <= S-2 (skip CLS/SEP positions)
    starts, ends = [], []
    for i in range(1, S - 1):
        for j in range(i, S - 1):
            starts.append(i)
            ends.append(j)
    start_indexs = jnp.array(starts, dtype=jnp.int32)
    end_indexs = jnp.array(ends, dtype=jnp.int32)
    Ns = start_indexs.shape[0]

    lengths = jnp.sum((input_ids != PAD_ID).astype(jnp.int32), axis=1)  # (B,)
    valid = end_indexs[None, :] <= (lengths[:, None] - 2)
    span_masks = jnp.where(valid, 0.0, 1e6).astype(jnp.float32)         # (B, Ns)

    fwd = jax.jit(explainable_model_forward)
    out, a_ij = fwd(packed, input_ids, start_indexs, end_indexs, span_masks)
    jax.block_until_ready((out, a_ij))

    assert out.shape == (B, NUM_LABELS)
    assert a_ij.shape == (B, Ns)
    assert bool(jnp.all(jnp.isfinite(out))) and bool(jnp.all(jnp.isfinite(a_ij)))
    # TODO(synk): pretrained-checkpoint loading / tokenizer are out of scope;
    # weights are synthetic and dropout is a no-op (eval semantics).
    print("KERNEL_OK")
</pallas_src>

<mosaic_0001>
module attributes {stable_mosaic.version = 11 : i64} {
  func.func @_fused_forward_kernel(%arg0: memref<16x32xf32, #tpu.memory_space<vmem>>, %arg1: memref<2x1x8xf32, #tpu.memory_space<vmem>>, %arg2: memref<1x32xf32, #tpu.memory_space<vmem>>, %arg3: memref<1x32xf32, #tpu.memory_space<vmem>>, %arg4: memref<8x32x8xf32, #tpu.memory_space<vmem>>, %arg5: memref<8x1x8xf32, #tpu.memory_space<vmem>>, %arg6: memref<8x32x8xf32, #tpu.memory_space<vmem>>, %arg7: memref<8x1x8xf32, #tpu.memory_space<vmem>>, %arg8: memref<8x32x8xf32, #tpu.memory_space<vmem>>, %arg9: memref<8x1x8xf32, #tpu.memory_space<vmem>>, %arg10: memref<8x8x32xf32, #tpu.memory_space<vmem>>, %arg11: memref<2x1x32xf32, #tpu.memory_space<vmem>>, %arg12: memref<2x1x32xf32, #tpu.memory_space<vmem>>, %arg13: memref<2x1x32xf32, #tpu.memory_space<vmem>>, %arg14: memref<2x32x64xf32, #tpu.memory_space<vmem>>, %arg15: memref<2x1x64xf32, #tpu.memory_space<vmem>>, %arg16: memref<2x64x32xf32, #tpu.memory_space<vmem>>, %arg17: memref<2x1x32xf32, #tpu.memory_space<vmem>>, %arg18: memref<2x1x32xf32, #tpu.memory_space<vmem>>, %arg19: memref<2x1x32xf32, #tpu.memory_space<vmem>>, %arg20: memref<4x32x32xf32, #tpu.memory_space<vmem>>, %arg21: memref<4x1x32xf32, #tpu.memory_space<vmem>>, %arg22: memref<24x8xf32, #tpu.memory_space<vmem>>, %arg23: memref<24x8xf32, #tpu.memory_space<vmem>>, %arg24: memref<2x24x1xf32, #tpu.memory_space<vmem>>, %arg25: memref<1x32xf32, #tpu.memory_space<vmem>>, %arg26: memref<1x1xf32, #tpu.memory_space<vmem>>, %arg27: memref<32x2xf32, #tpu.memory_space<vmem>>, %arg28: memref<1x2xf32, #tpu.memory_space<vmem>>, %arg29: memref<2x2xf32, #tpu.memory_space<vmem>>, %arg30: memref<2x24x1xf32, #tpu.memory_space<vmem>>) attributes {dimension_semantics = [], scalar_prefetch = 0 : i64, scratch_operands = 0 : i64, tpu.core_type = #tpu.core_type<tc>} {
    %c0 = arith.constant 0 : index
    %c0_0 = arith.constant 0 : index
    %0 = vector.load %arg0[%c0, %c0_0] : memref<16x32xf32, #tpu.memory_space<vmem>>, vector<16x32xf32>
    %c0_1 = arith.constant 0 : index
    %c0_2 = arith.constant 0 : index
    %1 = vector.load %arg2[%c0_1, %c0_2] : memref<1x32xf32, #tpu.memory_space<vmem>>, vector<1x32xf32>
    %c0_3 = arith.constant 0 : index
    %c0_4 = arith.constant 0 : index
    %2 = vector.load %arg3[%c0_3, %c0_4] : memref<1x32xf32, #tpu.memory_space<vmem>>, vector<1x32xf32>
    %cst = arith.constant dense<0.000000e+00> : vector<16xf32>
    %3 = vector.multi_reduction <add>, %0, %cst [1] : vector<16x32xf32> to vector<16xf32>
    %4 = vector.shape_cast %3 : vector<16xf32> to vector<16x1xf32>
    %cst_5 = arith.constant 3.200000e+01 : f32
    %5 = vector.broadcast %cst_5 : f32 to vector<16x1xf32>
    %6 = arith.divf %4, %5 : vector<16x1xf32>
    %7 = vector.broadcast %6 : vector<16x1xf32> to vector<16x32xf32>
    %8 = arith.subf %0, %7 : vector<16x32xf32>
    %9 = arith.mulf %8, %8 : vector<16x32xf32>
    %cst_6 = arith.constant dense<0.000000e+00> : vector<16xf32>
    %10 = vector.multi_reduction <add>, %9, %cst_6 [1] : vector<16x32xf32> to vector<16xf32>
    %11 = vector.shape_cast %10 : vector<16xf32> to vector<16x1xf32>
    %cst_7 = arith.constant 3.200000e+01 : f32
    %12 = vector.broadcast %cst_7 : f32 to vector<16x1xf32>
    %13 = arith.divf %11, %12 : vector<16x1xf32>
    %14 = vector.broadcast %6 : vector<16x1xf32> to vector<16x32xf32>
    %15 = arith.subf %0, %14 : vector<16x32xf32>
    %cst_8 = arith.constant 9.99999974E-6 : f32
    %16 = vector.broadcast %cst_8 : f32 to vector<16x1xf32>
    %17 = arith.addf %13, %16 : vector<16x1xf32>
    %18 = math.rsqrt %17 : vector<16x1xf32>
    %19 = vector.broadcast %18 : vector<16x1xf32> to vector<16x32xf32>
    %20 = arith.mulf %15, %19 : vector<16x32xf32>
    %21 = vector.broadcast %1 : vector<1x32xf32> to vector<16x32xf32>
    %22 = arith.mulf %20, %21 : vector<16x32xf32>
    %23 = vector.broadcast %2 : vector<1x32xf32> to vector<16x32xf32>
    %24 = arith.addf %22, %23 : vector<16x32xf32>
    %c0_9 = arith.constant 0 : index
    %c0_10 = arith.constant 0 : index
    %c0_11 = arith.constant 0 : index
    %25 = vector.load %arg4[%c0_9, %c0_10, %c0_11] : memref<8x32x8xf32, #tpu.memory_space<vmem>>, vector<1x32x8xf32>
    %26 = vector.shape_cast %25 : vector<1x32x8xf32> to vector<32x8xf32>
    %cst_12 = arith.constant dense<0.000000e+00> : vector<16x8xf32>
    %27 = tpu.matmul %24, %26, %cst_12 {dimension_numbers = #tpu.dot_dimension_numbers<[1], [0], [0], [1], [0, 0, 1, 1], [], []>} : vector<16x32xf32>, vector<32x8xf32>, vector<16x8xf32> -> vector<16x8xf32>
    %c0_13 = arith.constant 0 : index
    %c0_14 = arith.constant 0 : index
    %c0_15 = arith.constant 0 : index
    %28 = vector.load %arg5[%c0_13, %c0_14, %c0_15] : memref<8x1x8xf32, #tpu.memory_space<vmem>>, vector<1x1x8xf32>
    %29 = vector.shape_cast %28 : vector<1x1x8xf32> to vector<1x8xf32>
    %30 = vector.broadcast %29 : vector<1x8xf32> to vector<16x8xf32>
    %31 = arith.addf %27, %30 : vector<16x8xf32>
    %c0_16 = arith.constant 0 : index
    %c0_17 = arith.constant 0 : index
    %c0_18 = arith.constant 0 : index
    %32 = vector.load %arg6[%c0_16, %c0_17, %c0_18] : memref<8x32x8xf32, #tpu.memory_space<vmem>>, vector<1x32x8xf32>
    %33 = vector.shape_cast %32 : vector<1x32x8xf32> to vector<32x8xf32>
    %cst_19 = arith.constant dense<0.000000e+00> : vector<16x8xf32>
    %34 = tpu.matmul %24, %33, %cst_19 {dimension_numbers = #tpu.dot_dimension_numbers<[1], [0], [0], [1], [0, 0, 1, 1], [], []>} : vector<16x32xf32>, vector<32x8xf32>, vector<16x8xf32> -> vector<16x8xf32>
    %c0_20 = arith.constant 0 : index
    %c0_21 = arith.constant 0 : index
    %c0_22 = arith.constant 0 : index
    %35 = vector.load %arg7[%c0_20, %c0_21, %c0_22] : memref<8x1x8xf32, #tpu.memory_space<vmem>>, vector<1x1x8xf32>
    %36 = vector.shape_cast %35 : vector<1x1x8xf32> to vector<1x8xf32>
    %37 = vector.broadcast %36 : vector<1x8xf32> to vector<16x8xf32>
    %38 = arith.addf %34, %37 : vector<16x8xf32>
    %c0_23 = arith.constant 0 : index
    %c0_24 = arith.constant 0 : index
    %c0_25 = arith.constant 0 : index
    %39 = vector.load %arg8[%c0_23, %c0_24, %c0_25] : memref<8x32x8xf32, #tpu.memory_space<vmem>>, vector<1x32x8xf32>
    %40 = vector.shape_cast %39 : vector<1x32x8xf32> to vector<32x8xf32>
    %cst_26 = arith.constant dense<0.000000e+00> : vector<16x8xf32>
    %41 = tpu.matmul %24, %40, %cst_26 {dimension_numbers = #tpu.dot_dimension_numbers<[1], [0], [0], [1], [0, 0, 1, 1], [], []>} : vector<16x32xf32>, vector<32x8xf32>, vector<16x8xf32> -> vector<16x8xf32>
    %c0_27 = arith.constant 0 : index
    %c0_28 = arith.constant 0 : index
    %c0_29 = arith.constant 0 : index
    %42 = vector.load %arg9[%c0_27, %c0_28, %c0_29] : memref<8x1x8xf32, #tpu.memory_space<vmem>>, vector<1x1x8xf32>
    %43 = vector.shape_cast %42 : vector<1x1x8xf32> to vector<1x8xf32>
    %44 = vector.broadcast %43 : vector<1x8xf32> to vector<16x8xf32>
    %45 = arith.addf %41, %44 : vector<16x8xf32>
    %46 = vector.extract_strided_slice %31 {offsets = [0, 0], sizes = [8, 8], strides = [1, 1]} : vector<16x8xf32> to vector<8x8xf32>
    %47 = vector.extract_strided_slice %38 {offsets = [0, 0], sizes = [8, 8], strides = [1, 1]} : vector<16x8xf32> to vector<8x8xf32>
    %48 = vector.extract_strided_slice %45 {offsets = [0, 0], sizes = [8, 8], strides = [1, 1]} : vector<16x8xf32> to vector<8x8xf32>
    %cst_30 = arith.constant dense<0.000000e+00> : vector<8x8xf32>
    %49 = tpu.matmul %46, %47, %cst_30 {dimension_numbers = #tpu.dot_dimension_numbers<[1], [1], [0], [0], [0, 0, 1, 0], [], []>} : vector<8x8xf32>, vector<8x8xf32>, vector<8x8xf32> -> vector<8x8xf32>
    %cst_31 = arith.constant 0.353553385 : f32
    %50 = vector.broadcast %cst_31 : f32 to vector<8x8xf32>
    %51 = arith.mulf %49, %50 : vector<8x8xf32>
    %c0_32 = arith.constant 0 : index
    %c0_33 = arith.constant 0 : index
    %c0_34 = arith.constant 0 : index
    %52 = vector.load %arg1[%c0_32, %c0_33, %c0_34] : memref<2x1x8xf32, #tpu.memory_space<vmem>>, vector<1x1x8xf32>
    %53 = vector.shape_cast %52 : vector<1x1x8xf32> to vector<1x8xf32>
    %54 = vector.broadcast %53 : vector<1x8xf32> to vector<8x8xf32>
    %55 = arith.addf %51, %54 : vector<8x8xf32>
    %cst_35 = arith.constant dense<0xFF800000> : vector<8xf32>
    %56 = vector.multi_reduction <maximumf>, %55, %cst_35 [1] : vector<8x8xf32> to vector<8xf32>
    %57 = vector.shape_cast %56 : vector<8xf32> to vector<8x1xf32>
    %58 = vector.broadcast %57 : vector<8x1xf32> to vector<8x8xf32>
    %59 = arith.subf %55, %58 : vector<8x8xf32>
    %60 = math.exp %59 : vector<8x8xf32>
    %cst_36 = arith.constant dense<0.000000e+00> : vector<8xf32>
    %61 = vector.multi_reduction <add>, %60, %cst_36 [1] : vector<8x8xf32> to vector<8xf32>
    %62 = vector.shape_cast %61 : vector<8xf32> to vector<8x1xf32>
    %63 = tpu.reciprocal %62 {approx = true} : vector<8x1xf32> -> vector<8x1xf32>
    %64 = vector.broadcast %63 : vector<8x1xf32> to vector<8x8xf32>
    %65 = arith.mulf %60, %64 : vector<8x8xf32>
    %cst_37 = arith.constant dense<0.000000e+00> : vector<8x8xf32>
    %66 = tpu.matmul %65, %48, %cst_37 {dimension_numbers = #tpu.dot_dimension_numbers<[1], [0], [0], [1], [0, 0, 1, 1], [], []>} : vector<8x8xf32>, vector<8x8xf32>, vector<8x8xf32> -> vector<8x8xf32>
    %67 = vector.extract_strided_slice %31 {offsets = [8, 0], sizes = [8, 8], strides = [1, 1]} : vector<16x8xf32> to vector<8x8xf32>
    %68 = vector.extract_strided_slice %38 {offsets = [8, 0], sizes = [8, 8], strides = [1, 1]} : vector<16x8xf32> to vector<8x8xf32>
    %69 = vector.extract_strided_slice %45 {offsets = [8, 0], sizes = [8, 8], strides = [1, 1]} : vector<16x8xf32> to vector<8x8xf32>
    %cst_38 = arith.constant dense<0.000000e+00> : vector<8x8xf32>
    %70 = tpu.matmul %67, %68, %cst_38 {dimension_numbers = #tpu.dot_dimension_numbers<[1], [1], [0], [0], [0, 0, 1, 0], [], []>} : vector<8x8xf32>, vector<8x8xf32>, vector<8x8xf32> -> vector<8x8xf32>
    %cst_39 = arith.constant 0.353553385 : f32
    %71 = vector.broadcast %cst_39 : f32 to vector<8x8xf32>
    %72 = arith.mulf %70, %71 : vector<8x8xf32>
    %c1 = arith.constant 1 : index
    %c0_40 = arith.constant 0 : index
    %c0_41 = arith.constant 0 : index
    %73 = vector.load %arg1[%c1, %c0_40, %c0_41] : memref<2x1x8xf32, #tpu.memory_space<vmem>>, vector<1x1x8xf32>
    %74 = vector.shape_cast %73 : vector<1x1x8xf32> to vector<1x8xf32>
    %75 = vector.broadcast %74 : vector<1x8xf32> to vector<8x8xf32>
    %76 = arith.addf %72, %75 : vector<8x8xf32>
    %cst_42 = arith.constant dense<0xFF800000> : vector<8xf32>
    %77 = vector.multi_reduction <maximumf>, %76, %cst_42 [1] : vector<8x8xf32> to vector<8xf32>
    %78 = vector.shape_cast %77 : vector<8xf32> to vector<8x1xf32>
    %79 = vector.broadcast %78 : vector<8x1xf32> to vector<8x8xf32>
    %80 = arith.subf %76, %79 : vector<8x8xf32>
    %81 = math.exp %80 : vector<8x8xf32>
    %cst_43 = arith.constant dense<0.000000e+00> : vector<8xf32>
    %82 = vector.multi_reduction <add>, %81, %cst_43 [1] : vector<8x8xf32> to vector<8xf32>
    %83 = vector.shape_cast %82 : vector<8xf32> to vector<8x1xf32>
    %84 = tpu.reciprocal %83 {approx = true} : vector<8x1xf32> -> vector<8x1xf32>
    %85 = vector.broadcast %84 : vector<8x1xf32> to vector<8x8xf32>
    %86 = arith.mulf %81, %85 : vector<8x8xf32>
    %cst_44 = arith.constant dense<0.000000e+00> : vector<8x8xf32>
    %87 = tpu.matmul %86, %69, %cst_44 {dimension_numbers = #tpu.dot_dimension_numbers<[1], [0], [0], [1], [0, 0, 1, 1], [], []>} : vector<8x8xf32>, vector<8x8xf32>, vector<8x8xf32> -> vector<8x8xf32>
    %88 = tpu.concatenate %66, %87 in 0 : vector<8x8xf32>, vector<8x8xf32> -> vector<16x8xf32>
    %c0_45 = arith.constant 0 : index
    %c0_46 = arith.constant 0 : index
    %c0_47 = arith.constant 0 : index
    %89 = vector.load %arg10[%c0_45, %c0_46, %c0_47] : memref<8x8x32xf32, #tpu.memory_space<vmem>>, vector<1x8x32xf32>
    %90 = vector.shape_cast %89 : vector<1x8x32xf32> to vector<8x32xf32>
    %cst_48 = arith.constant dense<0.000000e+00> : vector<16x32xf32>
    %91 = tpu.matmul %88, %90, %cst_48 {dimension_numbers = #tpu.dot_dimension_numbers<[1], [0], [0], [1], [0, 0, 1, 1], [], []>} : vector<16x8xf32>, vector<8x32xf32>, vector<16x32xf32> -> vector<16x32xf32>
    %c1_49 = arith.constant 1 : index
    %c0_50 = arith.constant 0 : index
    %c0_51 = arith.constant 0 : index
    %92 = vector.load %arg4[%c1_49, %c0_50, %c0_51] : memref<8x32x8xf32, #tpu.memory_space<vmem>>, vector<1x32x8xf32>
    %93 = vector.shape_cast %92 : vector<1x32x8xf32> to vector<32x8xf32>
    %cst_52 = arith.constant dense<0.000000e+00> : vector<16x8xf32>
    %94 = tpu.matmul %24, %93, %cst_52 {dimension_numbers = #tpu.dot_dimension_numbers<[1], [0], [0], [1], [0, 0, 1, 1], [], []>} : vector<16x32xf32>, vector<32x8xf32>, vector<16x8xf32> -> vector<16x8xf32>
    %c1_53 = arith.constant 1 : index
    %c0_54 = arith.constant 0 : index
    %c0_55 = arith.constant 0 : index
    %95 = vector.load %arg5[%c1_53, %c0_54, %c0_55] : memref<8x1x8xf32, #tpu.memory_space<vmem>>, vector<1x1x8xf32>
    %96 = vector.shape_cast %95 : vector<1x1x8xf32> to vector<1x8xf32>
    %97 = vector.broadcast %96 : vector<1x8xf32> to vector<16x8xf32>
    %98 = arith.addf %94, %97 : vector<16x8xf32>
    %c1_56 = arith.constant 1 : index
    %c0_57 = arith.constant 0 : index
    %c0_58 = arith.constant 0 : index
    %99 = vector.load %arg6[%c1_56, %c0_57, %c0_58] : memref<8x32x8xf32, #tpu.memory_space<vmem>>, vector<1x32x8xf32>
    %100 = vector.shape_cast %99 : vector<1x32x8xf32> to vector<32x8xf32>
    %cst_59 = arith.constant dense<0.000000e+00> : vector<16x8xf32>
    %101 = tpu.matmul %24, %100, %cst_59 {dimension_numbers = #tpu.dot_dimension_numbers<[1], [0], [0], [1], [0, 0, 1, 1], [], []>} : vector<16x32xf32>, vector<32x8xf32>, vector<16x8xf32> -> vector<16x8xf32>
    %c1_60 = arith.constant 1 : index
    %c0_61 = arith.constant 0 : index
    %c0_62 = arith.constant 0 : index
    %102 = vector.load %arg7[%c1_60, %c0_61, %c0_62] : memref<8x1x8xf32, #tpu.memory_space<vmem>>, vector<1x1x8xf32>
    %103 = vector.shape_cast %102 : vector<1x1x8xf32> to vector<1x8xf32>
    %104 = vector.broadcast %103 : vector<1x8xf32> to vector<16x8xf32>
    %105 = arith.addf %101, %104 : vector<16x8xf32>
    %c1_63 = arith.constant 1 : index
    %c0_64 = arith.constant 0 : index
    %c0_65 = arith.constant 0 : index
    %106 = vector.load %arg8[%c1_63, %c0_64, %c0_65] : memref<8x32x8xf32, #tpu.memory_space<vmem>>, vector<1x32x8xf32>
    %107 = vector.shape_cast %106 : vector<1x32x8xf32> to vector<32x8xf32>
    %cst_66 = arith.constant dense<0.000000e+00> : vector<16x8xf32>
    %108 = tpu.matmul %24, %107, %cst_66 {dimension_numbers = #tpu.dot_dimension_numbers<[1], [0], [0], [1], [0, 0, 1, 1], [], []>} : vector<16x32xf32>, vector<32x8xf32>, vector<16x8xf32> -> vector<16x8xf32>
    %c1_67 = arith.constant 1 : index
    %c0_68 = arith.constant 0 : index
    %c0_69 = arith.constant 0 : index
    %109 = vector.load %arg9[%c1_67, %c0_68, %c0_69] : memref<8x1x8xf32, #tpu.memory_space<vmem>>, vector<1x1x8xf32>
    %110 = vector.shape_cast %109 : vector<1x1x8xf32> to vector<1x8xf32>
    %111 = vector.broadcast %110 : vector<1x8xf32> to vector<16x8xf32>
    %112 = arith.addf %108, %111 : vector<16x8xf32>
    %113 = vector.extract_strided_slice %98 {offsets = [0, 0], sizes = [8, 8], strides = [1, 1]} : vector<16x8xf32> to vector<8x8xf32>
    %114 = vector.extract_strided_slice %105 {offsets = [0, 0], sizes = [8, 8], strides = [1, 1]} : vector<16x8xf32> to vector<8x8xf32>
    %115 = vector.extract_strided_slice %112 {offsets = [0, 0], sizes = [8, 8], strides = [1, 1]} : vector<16x8xf32> to vector<8x8xf32>
    %cst_70 = arith.constant dense<0.000000e+00> : vector<8x8xf32>
    %116 = tpu.matmul %113, %114, %cst_70 {dimension_numbers = #tpu.dot_dimension_numbers<[1], [1], [0], [0], [0, 0, 1, 0], [], []>} : vector<8x8xf32>, vector<8x8xf32>, vector<8x8xf32> -> vector<8x8xf32>
    %cst_71 = arith.constant 0.353553385 : f32
    %117 = vector.broadcast %cst_71 : f32 to vector<8x8xf32>
    %118 = arith.mulf %116, %117 : vector<8x8xf32>
    %c0_72 = arith.constant 0 : index
    %c0_73 = arith.constant 0 : index
    %c0_74 = arith.constant 0 : index
    %119 = vector.load %arg1[%c0_72, %c0_73, %c0_74] : memref<2x1x8xf32, #tpu.memory_space<vmem>>, vector<1x1x8xf32>
    %120 = vector.shape_cast %119 : vector<1x1x8xf32> to vector<1x8xf32>
    %121 = vector.broadcast %120 : vector<1x8xf32> to vector<8x8xf32>
    %122 = arith.addf %118, %121 : vector<8x8xf32>
    %cst_75 = arith.constant dense<0xFF800000> : vector<8xf32>
    %123 = vector.multi_reduction <maximumf>, %122, %cst_75 [1] : vector<8x8xf32> to vector<8xf32>
    %124 = vector.shape_cast %123 : vector<8xf32> to vector<8x1xf32>
    %125 = vector.broadcast %124 : vector<8x1xf32> to vector<8x8xf32>
    %126 = arith.subf %122, %125 : vector<8x8xf32>
    %127 = math.exp %126 : vector<8x8xf32>
    %cst_76 = arith.constant dense<0.000000e+00> : vector<8xf32>
    %128 = vector.multi_reduction <add>, %127, %cst_76 [1] : vector<8x8xf32> to vector<8xf32>
    %129 = vector.shape_cast %128 : vector<8xf32> to vector<8x1xf32>
    %130 = tpu.reciprocal %129 {approx = true} : vector<8x1xf32> -> vector<8x1xf32>
    %131 = vector.broadcast %130 : vector<8x1xf32> to vector<8x8xf32>
    %132 = arith.mulf %127, %131 : vector<8x8xf32>
    %cst_77 = arith.constant dense<0.000000e+00> : vector<8x8xf32>
    %133 = tpu.matmul %132, %115, %cst_77 {dimension_numbers = #tpu.dot_dimension_numbers<[1], [0], [0], [1], [0, 0, 1, 1], [], []>} : vector<8x8xf32>, vector<8x8xf32>, vector<8x8xf32> -> vector<8x8xf32>
    %134 = vector.extract_strided_slice %98 {offsets = [8, 0], sizes = [8, 8], strides = [1, 1]} : vector<16x8xf32> to vector<8x8xf32>
    %135 = vector.extract_strided_slice %105 {offsets = [8, 0], sizes = [8, 8], strides = [1, 1]} : vector<16x8xf32> to vector<8x8xf32>
    %136 = vector.extract_strided_slice %112 {offsets = [8, 0], sizes = [8, 8], strides = [1, 1]} : vector<16x8xf32> to vector<8x8xf32>
    %cst_78 = arith.constant dense<0.000000e+00> : vector<8x8xf32>
    %137 = tpu.matmul %134, %135, %cst_78 {dimension_numbers = #tpu.dot_dimension_numbers<[1], [1], [0], [0], [0, 0, 1, 0], [], []>} : vector<8x8xf32>, vector<8x8xf32>, vector<8x8xf32> -> vector<8x8xf32>
    %cst_79 = arith.constant 0.353553385 : f32
    %138 = vector.broadcast %cst_79 : f32 to vector<8x8xf32>
    %139 = arith.mulf %137, %138 : vector<8x8xf32>
    %c1_80 = arith.constant 1 : index
    %c0_81 = arith.constant 0 : index
    %c0_82 = arith.constant 0 : index
    %140 = vector.load %arg1[%c1_80, %c0_81, %c0_82] : memref<2x1x8xf32, #tpu.memory_space<vmem>>, vector<1x1x8xf32>
    %141 = vector.shape_cast %140 : vector<1x1x8xf32> to vector<1x8xf32>
    %142 = vector.broadcast %141 : vector<1x8xf32> to vector<8x8xf32>
    %143 = arith.addf %139, %142 : vector<8x8xf32>
    %cst_83 = arith.constant dense<0xFF800000> : vector<8xf32>
    %144 = vector.multi_reduction <maximumf>, %143, %cst_83 [1] : vector<8x8xf32> to vector<8xf32>
    %145 = vector.shape_cast %144 : vector<8xf32> to vector<8x1xf32>
    %146 = vector.broadcast %145 : vector<8x1xf32> to vector<8x8xf32>
    %147 = arith.subf %143, %146 : vector<8x8xf32>
    %148 = math.exp %147 : vector<8x8xf32>
    %cst_84 = arith.constant dense<0.000000e+00> : vector<8xf32>
    %149 = vector.multi_reduction <add>, %148, %cst_84 [1] : vector<8x8xf32> to vector<8xf32>
    %150 = vector.shape_cast %149 : vector<8xf32> to vector<8x1xf32>
    %151 = tpu.reciprocal %150 {approx = true} : vector<8x1xf32> -> vector<8x1xf32>
    %152 = vector.broadcast %151 : vector<8x1xf32> to vector<8x8xf32>
    %153 = arith.mulf %148, %152 : vector<8x8xf32>
    %cst_85 = arith.constant dense<0.000000e+00> : vector<8x8xf32>
    %154 = tpu.matmul %153, %136, %cst_85 {dimension_numbers = #tpu.dot_dimension_numbers<[1], [0], [0], [1], [0, 0, 1, 1], [], []>} : vector<8x8xf32>, vector<8x8xf32>, vector<8x8xf32> -> vector<8x8xf32>
    %155 = tpu.concatenate %133, %154 in 0 : vector<8x8xf32>, vector<8x8xf32> -> vector<16x8xf32>
    %c1_86 = arith.constant 1 : index
    %c0_87 = arith.constant 0 : index
    %c0_88 = arith.constant 0 : index
    %156 = vector.load %arg10[%c1_86, %c0_87, %c0_88] : memref<8x8x32xf32, #tpu.memory_space<vmem>>, vector<1x8x32xf32>
    %157 = vector.shape_cast %156 : vector<1x8x32xf32> to vector<8x32xf32>
    %cst_89 = arith.constant dense<0.000000e+00> : vector<16x32xf32>
    %158 = tpu.matmul %155, %157, %cst_89 {dimension_numbers = #tpu.dot_dimension_numbers<[1], [0], [0], [1], [0, 0, 1, 1], [], []>} : vector<16x8xf32>, vector<8x32xf32>, vector<16x32xf32> -> vector<16x32xf32>
    %159 = arith.addf %91, %158 : vector<16x32xf32>
    %c2 = arith.constant 2 : index
    %c0_90 = arith.constant 0 : index
    %c0_91 = arith.constant 0 : index
    %160 = vector.load %arg4[%c2, %c0_90, %c0_91] : memref<8x32x8xf32, #tpu.memory_space<vmem>>, vector<1x32x8xf32>
    %161 = vector.shape_cast %160 : vector<1x32x8xf32> to vector<32x8xf32>
    %cst_92 = arith.constant dense<0.000000e+00> : vector<16x8xf32>
    %162 = tpu.matmul %24, %161, %cst_92 {dimension_numbers = #tpu.dot_dimension_numbers<[1], [0], [0], [1], [0, 0, 1, 1], [], []>} : vector<16x32xf32>, vector<32x8xf32>, vector<16x8xf32> -> vector<16x8xf32>
    %c2_93 = arith.constant 2 : index
    %c0_94 = arith.constant 0 : index
    %c0_95 = arith.constant 0 : index
    %163 = vector.load %arg5[%c2_93, %c0_94, %c0_95] : memref<8x1x8xf32, #tpu.memory_space<vmem>>, vector<1x1x8xf32>
    %164 = vector.shape_cast %163 : vector<1x1x8xf32> to vector<1x8xf32>
    %165 = vector.broadcast %164 : vector<1x8xf32> to vector<16x8xf32>
    %166 = arith.addf %162, %165 : vector<16x8xf32>
    %c2_96 = arith.constant 2 : index
    %c0_97 = arith.constant 0 : index
    %c0_98 = arith.constant 0 : index
    %167 = vector.load %arg6[%c2_96, %c0_97, %c0_98] : memref<8x32x8xf32, #tpu.memory_space<vmem>>, vector<1x32x8xf32>
    %168 = vector.shape_cast %167 : vector<1x32x8xf32> to vector<32x8xf32>
    %cst_99 = arith.constant dense<0.000000e+00> : vector<16x8xf32>
    %169 = tpu.matmul %24, %168, %cst_99 {dimension_numbers = #tpu.dot_dimension_numbers<[1], [0], [0], [1], [0, 0, 1, 1], [], []>} : vector<16x32xf32>, vector<32x8xf32>, vector<16x8xf32> -> vector<16x8xf32>
    %c2_100 = arith.constant 2 : index
    %c0_101 = arith.constant 0 : index
    %c0_102 = arith.constant 0 : index
    %170 = vector.load %arg7[%c2_100, %c0_101, %c0_102] : memref<8x1x8xf32, #tpu.memory_space<vmem>>, vector<1x1x8xf32>
    %171 = vector.shape_cast %170 : vector<1x1x8xf32> to vector<1x8xf32>
    %172 = vector.broadcast %171 : vector<1x8xf32> to vector<16x8xf32>
    %173 = arith.addf %169, %172 : vector<16x8xf32>
    %c2_103 = arith.constant 2 : index
    %c0_104 = arith.constant 0 : index
    %c0_105 = arith.constant 0 : index
    %174 = vector.load %arg8[%c2_103, %c0_104, %c0_105] : memref<8x32x8xf32, #tpu.memory_space<vmem>>, vector<1x32x8xf32>
    %175 = vector.shape_cast %174 : vector<1x32x8xf32> to vector<32x8xf32>
    %cst_106 = arith.constant dense<0.000000e+00> : vector<16x8xf32>
    %176 = tpu.matmul %24, %175, %cst_106 {dimension_numbers = #tpu.dot_dimension_numbers<[1], [0], [0], [1], [0, 0, 1, 1], [], []>} : vector<16x32xf32>, vector<32x8xf32>, vector<16x8xf32> -> vector<16x8xf32>
    %c2_107 = arith.constant 2 : index
    %c0_108 = arith.constant 0 : index
    %c0_109 = arith.constant 0 : index
    %177 = vector.load %arg9[%c2_107, %c0_108, %c0_109] : memref<8x1x8xf32, #tpu.memory_space<vmem>>, vector<1x1x8xf32>
    %178 = vector.shape_cast %177 : vector<1x1x8xf32> to vector<1x8xf32>
    %179 = vector.broadcast %178 : vector<1x8xf32> to vector<16x8xf32>
    %180 = arith.addf %176, %179 : vector<16x8xf32>
    %181 = vector.extract_strided_slice %166 {offsets = [0, 0], sizes = [8, 8], strides = [1, 1]} : vector<16x8xf32> to vector<8x8xf32>
    %182 = vector.extract_strided_slice %173 {offsets = [0, 0], sizes = [8, 8], strides = [1, 1]} : vector<16x8xf32> to vector<8x8xf32>
    %183 = vector.extract_strided_slice %180 {offsets = [0, 0], sizes = [8, 8], strides = [1, 1]} : vector<16x8xf32> to vector<8x8xf32>
    %cst_110 = arith.constant dense<0.000000e+00> : vector<8x8xf32>
    %184 = tpu.matmul %181, %182, %cst_110 {dimension_numbers = #tpu.dot_dimension_numbers<[1], [1], [0], [0], [0, 0, 1, 0], [], []>} : vector<8x8xf32>, vector<8x8xf32>, vector<8x8xf32> -> vector<8x8xf32>
    %cst_111 = arith.constant 0.353553385 : f32
    %185 = vector.broadcast %cst_111 : f32 to vector<8x8xf32>
    %186 = arith.mulf %184, %185 : vector<8x8xf32>
    %c0_112 = arith.constant 0 : index
    %c0_113 = arith.constant 0 : index
    %c0_114 = arith.constant 0 : index
    %187 = vector.load %arg1[%c0_112, %c0_113, %c0_114] : memref<2x1x8xf32, #tpu.memory_space<vmem>>, vector<1x1x8xf32>
    %188 = vector.shape_cast %187 : vector<1x1x8xf32> to vector<1x8xf32>
    %189 = vector.broadcast %188 : vector<1x8xf32> to vector<8x8xf32>
    %190 = arith.addf %186, %189 : vector<8x8xf32>
    %cst_115 = arith.constant dense<0xFF800000> : vector<8xf32>
    %191 = vector.multi_reduction <maximumf>, %190, %cst_115 [1] : vector<8x8xf32> to vector<8xf32>
    %192 = vector.shape_cast %191 : vector<8xf32> to vector<8x1xf32>
    %193 = vector.broadcast %192 : vector<8x1xf32> to vector<8x8xf32>
    %194 = arith.subf %190, %193 : vector<8x8xf32>
    %195 = math.exp %194 : vector<8x8xf32>
    %cst_116 = arith.constant dense<0.000000e+00> : vector<8xf32>
    %196 = vector.multi_reduction <add>, %195, %cst_116 [1] : vector<8x8xf32> to vector<8xf32>
    %197 = vector.shape_cast %196 : vector<8xf32> to vector<8x1xf32>
    %198 = tpu.reciprocal %197 {approx = true} : vector<8x1xf32> -> vector<8x1xf32>
    %199 = vector.broadcast %198 : vector<8x1xf32> to vector<8x8xf32>
    %200 = arith.mulf %195, %199 : vector<8x8xf32>
    %cst_117 = arith.constant dense<0.000000e+00> : vector<8x8xf32>
    %201 = tpu.matmul %200, %183, %cst_117 {dimension_numbers = #tpu.dot_dimension_numbers<[1], [0], [0], [1], [0, 0, 1, 1], [], []>} : vector<8x8xf32>, vector<8x8xf32>, vector<8x8xf32> -> vector<8x8xf32>
    %202 = vector.extract_strided_slice %166 {offsets = [8, 0], sizes = [8, 8], strides = [1, 1]} : vector<16x8xf32> to vector<8x8xf32>
    %203 = vector.extract_strided_slice %173 {offsets = [8, 0], sizes = [8, 8], strides = [1, 1]} : vector<16x8xf32> to vector<8x8xf32>
    %204 = vector.extract_strided_slice %180 {offsets = [8, 0], sizes = [8, 8], strides = [1, 1]} : vector<16x8xf32> to vector<8x8xf32>
    %cst_118 = arith.constant dense<0.000000e+00> : vector<8x8xf32>
    %205 = tpu.matmul %202, %203, %cst_118 {dimension_numbers = #tpu.dot_dimension_numbers<[1], [1], [0], [0], [0, 0, 1, 0], [], []>} : vector<8x8xf32>, vector<8x8xf32>, vector<8x8xf32> -> vector<8x8xf32>
    %cst_119 = arith.constant 0.353553385 : f32
    %206 = vector.broadcast %cst_119 : f32 to vector<8x8xf32>
    %207 = arith.mulf %205, %206 : vector<8x8xf32>
    %c1_120 = arith.constant 1 : index
    %c0_121 = arith.constant 0 : index
    %c0_122 = arith.constant 0 : index
    %208 = vector.load %arg1[%c1_120, %c0_121, %c0_122] : memref<2x1x8xf32, #tpu.memory_space<vmem>>, vector<1x1x8xf32>
    %209 = vector.shape_cast %208 : vector<1x1x8xf32> to vector<1x8xf32>
    %210 = vector.broadcast %209 : vector<1x8xf32> to vector<8x8xf32>
    %211 = arith.addf %207, %210 : vector<8x8xf32>
    %cst_123 = arith.constant dense<0xFF800000> : vector<8xf32>
    %212 = vector.multi_reduction <maximumf>, %211, %cst_123 [1] : vector<8x8xf32> to vector<8xf32>
    %213 = vector.shape_cast %212 : vector<8xf32> to vector<8x1xf32>
    %214 = vector.broadcast %213 : vector<8x1xf32> to vector<8x8xf32>
    %215 = arith.subf %211, %214 : vector<8x8xf32>
    %216 = math.exp %215 : vector<8x8xf32>
    %cst_124 = arith.constant dense<0.000000e+00> : vector<8xf32>
    %217 = vector.multi_reduction <add>, %216, %cst_124 [1] : vector<8x8xf32> to vector<8xf32>
    %218 = vector.shape_cast %217 : vector<8xf32> to vector<8x1xf32>
    %219 = tpu.reciprocal %218 {approx = true} : vector<8x1xf32> -> vector<8x1xf32>
    %220 = vector.broadcast %219 : vector<8x1xf32> to vector<8x8xf32>
    %221 = arith.mulf %216, %220 : vector<8x8xf32>
    %cst_125 = arith.constant dense<0.000000e+00> : vector<8x8xf32>
    %222 = tpu.matmul %221, %204, %cst_125 {dimension_numbers = #tpu.dot_dimension_numbers<[1], [0], [0], [1], [0, 0, 1, 1], [], []>} : vector<8x8xf32>, vector<8x8xf32>, vector<8x8xf32> -> vector<8x8xf32>
    %223 = tpu.concatenate %201, %222 in 0 : vector<8x8xf32>, vector<8x8xf32> -> vector<16x8xf32>
    %c2_126 = arith.constant 2 : index
    %c0_127 = arith.constant 0 : index
    %c0_128 = arith.constant 0 : index
    %224 = vector.load %arg10[%c2_126, %c0_127, %c0_128] : memref<8x8x32xf32, #tpu.memory_space<vmem>>, vector<1x8x32xf32>
    %225 = vector.shape_cast %224 : vector<1x8x32xf32> to vector<8x32xf32>
    %cst_129 = arith.constant dense<0.000000e+00> : vector<16x32xf32>
    %226 = tpu.matmul %223, %225, %cst_129 {dimension_numbers = #tpu.dot_dimension_numbers<[1], [0], [0], [1], [0, 0, 1, 1], [], []>} : vector<16x8xf32>, vector<8x32xf32>, vector<16x32xf32> -> vector<16x32xf32>
    %227 = arith.addf %159, %226 : vector<16x32xf32>
    %c3 = arith.constant 3 : index
    %c0_130 = arith.constant 0 : index
    %c0_131 = arith.constant 0 : index
    %228 = vector.load %arg4[%c3, %c0_130, %c0_131] : memref<8x32x8xf32, #tpu.memory_space<vmem>>, vector<1x32x8xf32>
    %229 = vector.shape_cast %228 : vector<1x32x8xf32> to vector<32x8xf32>
    %cst_132 = arith.constant dense<0.000000e+00> : vector<16x8xf32>
    %230 = tpu.matmul %24, %229, %cst_132 {dimension_numbers = #tpu.dot_dimension_numbers<[1], [0], [0], [1], [0, 0, 1, 1], [], []>} : vector<16x32xf32>, vector<32x8xf32>, vector<16x8xf32> -> vector<16x8xf32>
    %c3_133 = arith.constant 3 : index
    %c0_134 = arith.constant 0 : index
    %c0_135 = arith.constant 0 : index
    %231 = vector.load %arg5[%c3_133, %c0_134, %c0_135] : memref<8x1x8xf32, #tpu.memory_space<vmem>>, vector<1x1x8xf32>
    %232 = vector.shape_cast %231 : vector<1x1x8xf32> to vector<1x8xf32>
    %233 = vector.broadcast %232 : vector<1x8xf32> to vector<16x8xf32>
    %234 = arith.addf %230, %233 : vector<16x8xf32>
    %c3_136 = arith.constant 3 : index
    %c0_137 = arith.constant 0 : index
    %c0_138 = arith.constant 0 : index
    %235 = vector.load %arg6[%c3_136, %c0_137, %c0_138] : memref<8x32x8xf32, #tpu.memory_space<vmem>>, vector<1x32x8xf32>
    %236 = vector.shape_cast %235 : vector<1x32x8xf32> to vector<32x8xf32>
    %cst_139 = arith.constant dense<0.000000e+00> : vector<16x8xf32>
    %237 = tpu.matmul %24, %236, %cst_139 {dimension_numbers = #tpu.dot_dimension_numbers<[1], [0], [0], [1], [0, 0, 1, 1], [], []>} : vector<16x32xf32>, vector<32x8xf32>, vector<16x8xf32> -> vector<16x8xf32>
    %c3_140 = arith.constant 3 : index
    %c0_141 = arith.constant 0 : index
    %c0_142 = arith.constant 0 : index
    %238 = vector.load %arg7[%c3_140, %c0_141, %c0_142] : memref<8x1x8xf32, #tpu.memory_space<vmem>>, vector<1x1x8xf32>
    %239 = vector.shape_cast %238 : vector<1x1x8xf32> to vector<1x8xf32>
    %240 = vector.broadcast %239 : vector<1x8xf32> to vector<16x8xf32>
    %241 = arith.addf %237, %240 : vector<16x8xf32>
    %c3_143 = arith.constant 3 : index
    %c0_144 = arith.constant 0 : index
    %c0_145 = arith.constant 0 : index
    %242 = vector.load %arg8[%c3_143, %c0_144, %c0_145] : memref<8x32x8xf32, #tpu.memory_space<vmem>>, vector<1x32x8xf32>
    %243 = vector.shape_cast %242 : vector<1x32x8xf32> to vector<32x8xf32>
    %cst_146 = arith.constant dense<0.000000e+00> : vector<16x8xf32>
    %244 = tpu.matmul %24, %243, %cst_146 {dimension_numbers = #tpu.dot_dimension_numbers<[1], [0], [0], [1], [0, 0, 1, 1], [], []>} : vector<16x32xf32>, vector<32x8xf32>, vector<16x8xf32> -> vector<16x8xf32>
    %c3_147 = arith.constant 3 : index
    %c0_148 = arith.constant 0 : index
    %c0_149 = arith.constant 0 : index
    %245 = vector.load %arg9[%c3_147, %c0_148, %c0_149] : memref<8x1x8xf32, #tpu.memory_space<vmem>>, vector<1x1x8xf32>
    %246 = vector.shape_cast %245 : vector<1x1x8xf32> to vector<1x8xf32>
    %247 = vector.broadcast %246 : vector<1x8xf32> to vector<16x8xf32>
    %248 = arith.addf %244, %247 : vector<16x8xf32>
    %249 = vector.extract_strided_slice %234 {offsets = [0, 0], sizes = [8, 8], strides = [1, 1]} : vector<16x8xf32> to vector<8x8xf32>
    %250 = vector.extract_strided_slice %241 {offsets = [0, 0], sizes = [8, 8], strides = [1, 1]} : vector<16x8xf32> to vector<8x8xf32>
    %251 = vector.extract_strided_slice %248 {offsets = [0, 0], sizes = [8, 8], strides = [1, 1]} : vector<16x8xf32> to vector<8x8xf32>
    %cst_150 = arith.constant dense<0.000000e+00> : vector<8x8xf32>
    %252 = tpu.matmul %249, %250, %cst_150 {dimension_numbers = #tpu.dot_dimension_numbers<[1], [1], [0], [0], [0, 0, 1, 0], [], []>} : vector<8x8xf32>, vector<8x8xf32>, vector<8x8xf32> -> vector<8x8xf32>
    %cst_151 = arith.constant 0.353553385 : f32
    %253 = vector.broadcast %cst_151 : f32 to vector<8x8xf32>
    %254 = arith.mulf %252, %253 : vector<8x8xf32>
    %c0_152 = arith.constant 0 : index
    %c0_153 = arith.constant 0 : index
    %c0_154 = arith.constant 0 : index
    %255 = vector.load %arg1[%c0_152, %c0_153, %c0_154] : memref<2x1x8xf32, #tpu.memory_space<vmem>>, vector<1x1x8xf32>
    %256 = vector.shape_cast %255 : vector<1x1x8xf32> to vector<1x8xf32>
    %257 = vector.broadcast %256 : vector<1x8xf32> to vector<8x8xf32>
    %258 = arith.addf %254, %257 : vector<8x8xf32>
    %cst_155 = arith.constant dense<0xFF800000> : vector<8xf32>
    %259 = vector.multi_reduction <maximumf>, %258, %cst_155 [1] : vector<8x8xf32> to vector<8xf32>
    %260 = vector.shape_cast %259 : vector<8xf32> to vector<8x1xf32>
    %261 = vector.broadcast %260 : vector<8x1xf32> to vector<8x8xf32>
    %262 = arith.subf %258, %261 : vector<8x8xf32>
    %263 = math.exp %262 : vector<8x8xf32>
    %cst_156 = arith.constant dense<0.000000e+00> : vector<8xf32>
    %264 = vector.multi_reduction <add>, %263, %cst_156 [1] : vector<8x8xf32> to vector<8xf32>
    %265 = vector.shape_cast %264 : vector<8xf32> to vector<8x1xf32>
    %266 = tpu.reciprocal %265 {approx = true} : vector<8x1xf32> -> vector<8x1xf32>
    %267 = vector.broadcast %266 : vector<8x1xf32> to vector<8x8xf32>
    %268 = arith.mulf %263, %267 : vector<8x8xf32>
    %cst_157 = arith.constant dense<0.000000e+00> : vector<8x8xf32>
    %269 = tpu.matmul %268, %251, %cst_157 {dimension_numbers = #tpu.dot_dimension_numbers<[1], [0], [0], [1], [0, 0, 1, 1], [], []>} : vector<8x8xf32>, vector<8x8xf32>, vector<8x8xf32> -> vector<8x8xf32>
    %270 = vector.extract_strided_slice %234 {offsets = [8, 0], sizes = [8, 8], strides = [1, 1]} : vector<16x8xf32> to vector<8x8xf32>
    %271 = vector.extract_strided_slice %241 {offsets = [8, 0], sizes = [8, 8], strides = [1, 1]} : vector<16x8xf32> to vector<8x8xf32>
    %272 = vector.extract_strided_slice %248 {offsets = [8, 0], sizes = [8, 8], strides = [1, 1]} : vector<16x8xf32> to vector<8x8xf32>
    %cst_158 = arith.constant dense<0.000000e+00> : vector<8x8xf32>
    %273 = tpu.matmul %270, %271, %cst_158 {dimension_numbers = #tpu.dot_dimension_numbers<[1], [1], [0], [0], [0, 0, 1, 0], [], []>} : vector<8x8xf32>, vector<8x8xf32>, vector<8x8xf32> -> vector<8x8xf32>
    %cst_159 = arith.constant 0.353553385 : f32
    %274 = vector.broadcast %cst_159 : f32 to vector<8x8xf32>
    %275 = arith.mulf %273, %274 : vector<8x8xf32>
    %c1_160 = arith.constant 1 : index
    %c0_161 = arith.constant 0 : index
    %c0_162 = arith.constant 0 : index
    %276 = vector.load %arg1[%c1_160, %c0_161, %c0_162] : memref<2x1x8xf32, #tpu.memory_space<vmem>>, vector<1x1x8xf32>
    %277 = vector.shape_cast %276 : vector<1x1x8xf32> to vector<1x8xf32>
    %278 = vector.broadcast %277 : vector<1x8xf32> to vector<8x8xf32>
    %279 = arith.addf %275, %278 : vector<8x8xf32>
    %cst_163 = arith.constant dense<0xFF800000> : vector<8xf32>
    %280 = vector.multi_reduction <maximumf>, %279, %cst_163 [1] : vector<8x8xf32> to vector<8xf32>
    %281 = vector.shape_cast %280 : vector<8xf32> to vector<8x1xf32>
    %282 = vector.broadcast %281 : vector<8x1xf32> to vector<8x8xf32>
    %283 = arith.subf %279, %282 : vector<8x8xf32>
    %284 = math.exp %283 : vector<8x8xf32>
    %cst_164 = arith.constant dense<0.000000e+00> : vector<8xf32>
    %285 = vector.multi_reduction <add>, %284, %cst_164 [1] : vector<8x8xf32> to vector<8xf32>
    %286 = vector.shape_cast %285 : vector<8xf32> to vector<8x1xf32>
    %287 = tpu.reciprocal %286 {approx = true} : vector<8x1xf32> -> vector<8x1xf32>
    %288 = vector.broadcast %287 : vector<8x1xf32> to vector<8x8xf32>
    %289 = arith.mulf %284, %288 : vector<8x8xf32>
    %cst_165 = arith.constant dense<0.000000e+00> : vector<8x8xf32>
    %290 = tpu.matmul %289, %272, %cst_165 {dimension_numbers = #tpu.dot_dimension_numbers<[1], [0], [0], [1], [0, 0, 1, 1], [], []>} : vector<8x8xf32>, vector<8x8xf32>, vector<8x8xf32> -> vector<8x8xf32>
    %291 = tpu.concatenate %269, %290 in 0 : vector<8x8xf32>, vector<8x8xf32> -> vector<16x8xf32>
    %c3_166 = arith.constant 3 : index
    %c0_167 = arith.constant 0 : index
    %c0_168 = arith.constant 0 : index
    %292 = vector.load %arg10[%c3_166, %c0_167, %c0_168] : memref<8x8x32xf32, #tpu.memory_space<vmem>>, vector<1x8x32xf32>
    %293 = vector.shape_cast %292 : vector<1x8x32xf32> to vector<8x32xf32>
    %cst_169 = arith.constant dense<0.000000e+00> : vector<16x32xf32>
    %294 = tpu.matmul %291, %293, %cst_169 {dimension_numbers = #tpu.dot_dimension_numbers<[1], [0], [0], [1], [0, 0, 1, 1], [], []>} : vector<16x8xf32>, vector<8x32xf32>, vector<16x32xf32> -> vector<16x32xf32>
    %295 = arith.addf %227, %294 : vector<16x32xf32>
    %c0_170 = arith.constant 0 : index
    %c0_171 = arith.constant 0 : index
    %c0_172 = arith.constant 0 : index
    %296 = vector.load %arg11[%c0_170, %c0_171, %c0_172] : memref<2x1x32xf32, #tpu.memory_space<vmem>>, vector<1x1x32xf32>
    %297 = vector.shape_cast %296 : vector<1x1x32xf32> to vector<1x32xf32>
    %298 = vector.broadcast %297 : vector<1x32xf32> to vector<16x32xf32>
    %299 = arith.addf %295, %298 : vector<16x32xf32>
    %300 = arith.addf %299, %24 : vector<16x32xf32>
    %c0_173 = arith.constant 0 : index
    %c0_174 = arith.constant 0 : index
    %c0_175 = arith.constant 0 : index
    %301 = vector.load %arg12[%c0_173, %c0_174, %c0_175] : memref<2x1x32xf32, #tpu.memory_space<vmem>>, vector<1x1x32xf32>
    %302 = vector.shape_cast %301 : vector<1x1x32xf32> to vector<1x32xf32>
    %c0_176 = arith.constant 0 : index
    %c0_177 = arith.constant 0 : index
    %c0_178 = arith.constant 0 : index
    %303 = vector.load %arg13[%c0_176, %c0_177, %c0_178] : memref<2x1x32xf32, #tpu.memory_space<vmem>>, vector<1x1x32xf32>
    %304 = vector.shape_cast %303 : vector<1x1x32xf32> to vector<1x32xf32>
    %cst_179 = arith.constant dense<0.000000e+00> : vector<16xf32>
    %305 = vector.multi_reduction <add>, %300, %cst_179 [1] : vector<16x32xf32> to vector<16xf32>
    %306 = vector.shape_cast %305 : vector<16xf32> to vector<16x1xf32>
    %cst_180 = arith.constant 3.200000e+01 : f32
    %307 = vector.broadcast %cst_180 : f32 to vector<16x1xf32>
    %308 = arith.divf %306, %307 : vector<16x1xf32>
    %309 = vector.broadcast %308 : vector<16x1xf32> to vector<16x32xf32>
    %310 = arith.subf %300, %309 : vector<16x32xf32>
    %311 = arith.mulf %310, %310 : vector<16x32xf32>
    %cst_181 = arith.constant dense<0.000000e+00> : vector<16xf32>
    %312 = vector.multi_reduction <add>, %311, %cst_181 [1] : vector<16x32xf32> to vector<16xf32>
    %313 = vector.shape_cast %312 : vector<16xf32> to vector<16x1xf32>
    %cst_182 = arith.constant 3.200000e+01 : f32
    %314 = vector.broadcast %cst_182 : f32 to vector<16x1xf32>
    %315 = arith.divf %313, %314 : vector<16x1xf32>
    %316 = vector.broadcast %308 : vector<16x1xf32> to vector<16x32xf32>
    %317 = arith.subf %300, %316 : vector<16x32xf32>
    %cst_183 = arith.constant 9.99999974E-6 : f32
    %318 = vector.broadcast %cst_183 : f32 to vector<16x1xf32>
    %319 = arith.addf %315, %318 : vector<16x1xf32>
    %320 = math.rsqrt %319 : vector<16x1xf32>
    %321 = vector.broadcast %320 : vector<16x1xf32> to vector<16x32xf32>
    %322 = arith.mulf %317, %321 : vector<16x32xf32>
    %323 = vector.broadcast %302 : vector<1x32xf32> to vector<16x32xf32>
    %324 = arith.mulf %322, %323 : vector<16x32xf32>
    %325 = vector.broadcast %304 : vector<1x32xf32> to vector<16x32xf32>
    %326 = arith.addf %324, %325 : vector<16x32xf32>
    %c0_184 = arith.constant 0 : index
    %c0_185 = arith.constant 0 : index
    %c0_186 = arith.constant 0 : index
    %327 = vector.load %arg14[%c0_184, %c0_185, %c0_186] : memref<2x32x64xf32, #tpu.memory_space<vmem>>, vector<1x32x64xf32>
    %328 = vector.shape_cast %327 : vector<1x32x64xf32> to vector<32x64xf32>
    %cst_187 = arith.constant dense<0.000000e+00> : vector<16x64xf32>
    %329 = tpu.matmul %326, %328, %cst_187 {dimension_numbers = #tpu.dot_dimension_numbers<[1], [0], [0], [1], [0, 0, 1, 1], [], []>} : vector<16x32xf32>, vector<32x64xf32>, vector<16x64xf32> -> vector<16x64xf32>
    %c0_188 = arith.constant 0 : index
    %c0_189 = arith.constant 0 : index
    %c0_190 = arith.constant 0 : index
    %330 = vector.load %arg15[%c0_188, %c0_189, %c0_190] : memref<2x1x64xf32, #tpu.memory_space<vmem>>, vector<1x1x64xf32>
    %331 = vector.shape_cast %330 : vector<1x1x64xf32> to vector<1x64xf32>
    %332 = vector.broadcast %331 : vector<1x64xf32> to vector<16x64xf32>
    %333 = arith.addf %329, %332 : vector<16x64xf32>
    %cst_191 = arith.constant 5.000000e-01 : f32
    %334 = vector.broadcast %cst_191 : f32 to vector<16x64xf32>
    %335 = arith.mulf %334, %333 : vector<16x64xf32>
    %cst_192 = arith.constant 0.707106769 : f32
    %336 = vector.broadcast %cst_192 : f32 to vector<16x64xf32>
    %337 = arith.mulf %333, %336 : vector<16x64xf32>
    %338 = math.erf %337 : vector<16x64xf32>
    %cst_193 = arith.constant 1.000000e+00 : f32
    %339 = vector.broadcast %cst_193 : f32 to vector<16x64xf32>
    %340 = arith.addf %339, %338 : vector<16x64xf32>
    %341 = arith.mulf %335, %340 : vector<16x64xf32>
    %c0_194 = arith.constant 0 : index
    %c0_195 = arith.constant 0 : index
    %c0_196 = arith.constant 0 : index
    %342 = vector.load %arg16[%c0_194, %c0_195, %c0_196] : memref<2x64x32xf32, #tpu.memory_space<vmem>>, vector<1x64x32xf32>
    %343 = vector.shape_cast %342 : vector<1x64x32xf32> to vector<64x32xf32>
    %cst_197 = arith.constant dense<0.000000e+00> : vector<16x32xf32>
    %344 = tpu.matmul %341, %343, %cst_197 {dimension_numbers = #tpu.dot_dimension_numbers<[1], [0], [0], [1], [0, 0, 1, 1], [], []>} : vector<16x64xf32>, vector<64x32xf32>, vector<16x32xf32> -> vector<16x32xf32>
    %c0_198 = arith.constant 0 : index
    %c0_199 = arith.constant 0 : index
    %c0_200 = arith.constant 0 : index
    %345 = vector.load %arg17[%c0_198, %c0_199, %c0_200] : memref<2x1x32xf32, #tpu.memory_space<vmem>>, vector<1x1x32xf32>
    %346 = vector.shape_cast %345 : vector<1x1x32xf32> to vector<1x32xf32>
    %347 = vector.broadcast %346 : vector<1x32xf32> to vector<16x32xf32>
    %348 = arith.addf %344, %347 : vector<16x32xf32>
    %349 = arith.addf %348, %326 : vector<16x32xf32>
    %c0_201 = arith.constant 0 : index
    %c0_202 = arith.constant 0 : index
    %c0_203 = arith.constant 0 : index
    %350 = vector.load %arg18[%c0_201, %c0_202, %c0_203] : memref<2x1x32xf32, #tpu.memory_space<vmem>>, vector<1x1x32xf32>
    %351 = vector.shape_cast %350 : vector<1x1x32xf32> to vector<1x32xf32>
    %c0_204 = arith.constant 0 : index
    %c0_205 = arith.constant 0 : index
    %c0_206 = arith.constant 0 : index
    %352 = vector.load %arg19[%c0_204, %c0_205, %c0_206] : memref<2x1x32xf32, #tpu.memory_space<vmem>>, vector<1x1x32xf32>
    %353 = vector.shape_cast %352 : vector<1x1x32xf32> to vector<1x32xf32>
    %cst_207 = arith.constant dense<0.000000e+00> : vector<16xf32>
    %354 = vector.multi_reduction <add>, %349, %cst_207 [1] : vector<16x32xf32> to vector<16xf32>
    %355 = vector.shape_cast %354 : vector<16xf32> to vector<16x1xf32>
    %cst_208 = arith.constant 3.200000e+01 : f32
    %356 = vector.broadcast %cst_208 : f32 to vector<16x1xf32>
    %357 = arith.divf %355, %356 : vector<16x1xf32>
    %358 = vector.broadcast %357 : vector<16x1xf32> to vector<16x32xf32>
    %359 = arith.subf %349, %358 : vector<16x32xf32>
    %360 = arith.mulf %359, %359 : vector<16x32xf32>
    %cst_209 = arith.constant dense<0.000000e+00> : vector<16xf32>
    %361 = vector.multi_reduction <add>, %360, %cst_209 [1] : vector<16x32xf32> to vector<16xf32>
    %362 = vector.shape_cast %361 : vector<16xf32> to vector<16x1xf32>
    %cst_210 = arith.constant 3.200000e+01 : f32
    %363 = vector.broadcast %cst_210 : f32 to vector<16x1xf32>
    %364 = arith.divf %362, %363 : vector<16x1xf32>
    %365 = vector.broadcast %357 : vector<16x1xf32> to vector<16x32xf32>
    %366 = arith.subf %349, %365 : vector<16x32xf32>
    %cst_211 = arith.constant 9.99999974E-6 : f32
    %367 = vector.broadcast %cst_211 : f32 to vector<16x1xf32>
    %368 = arith.addf %364, %367 : vector<16x1xf32>
    %369 = math.rsqrt %368 : vector<16x1xf32>
    %370 = vector.broadcast %369 : vector<16x1xf32> to vector<16x32xf32>
    %371 = arith.mulf %366, %370 : vector<16x32xf32>
    %372 = vector.broadcast %351 : vector<1x32xf32> to vector<16x32xf32>
    %373 = arith.mulf %371, %372 : vector<16x32xf32>
    %374 = vector.broadcast %353 : vector<1x32xf32> to vector<16x32xf32>
    %375 = arith.addf %373, %374 : vector<16x32xf32>
    %c4 = arith.constant 4 : index
    %c0_212 = arith.constant 0 : index
    %c0_213 = arith.constant 0 : index
    %376 = vector.load %arg4[%c4, %c0_212, %c0_213] : memref<8x32x8xf32, #tpu.memory_space<vmem>>, vector<1x32x8xf32>
    %377 = vector.shape_cast %376 : vector<1x32x8xf32> to vector<32x8xf32>
    %cst_214 = arith.constant dense<0.000000e+00> : vector<16x8xf32>
    %378 = tpu.matmul %375, %377, %cst_214 {dimension_numbers = #tpu.dot_dimension_numbers<[1], [0], [0], [1], [0, 0, 1, 1], [], []>} : vector<16x32xf32>, vector<32x8xf32>, vector<16x8xf32> -> vector<16x8xf32>
    %c4_215 = arith.constant 4 : index
    %c0_216 = arith.constant 0 : index
    %c0_217 = arith.constant 0 : index
    %379 = vector.load %arg5[%c4_215, %c0_216, %c0_217] : memref<8x1x8xf32, #tpu.memory_space<vmem>>, vector<1x1x8xf32>
    %380 = vector.shape_cast %379 : vector<1x1x8xf32> to vector<1x8xf32>
    %381 = vector.broadcast %380 : vector<1x8xf32> to vector<16x8xf32>
    %382 = arith.addf %378, %381 : vector<16x8xf32>
    %c4_218 = arith.constant 4 : index
    %c0_219 = arith.constant 0 : index
    %c0_220 = arith.constant 0 : index
    %383 = vector.load %arg6[%c4_218, %c0_219, %c0_220] : memref<8x32x8xf32, #tpu.memory_space<vmem>>, vector<1x32x8xf32>
    %384 = vector.shape_cast %383 : vector<1x32x8xf32> to vector<32x8xf32>
    %cst_221 = arith.constant dense<0.000000e+00> : vector<16x8xf32>
    %385 = tpu.matmul %375, %384, %cst_221 {dimension_numbers = #tpu.dot_dimension_numbers<[1], [0], [0], [1], [0, 0, 1, 1], [], []>} : vector<16x32xf32>, vector<32x8xf32>, vector<16x8xf32> -> vector<16x8xf32>
    %c4_222 = arith.constant 4 : index
    %c0_223 = arith.constant 0 : index
    %c0_224 = arith.constant 0 : index
    %386 = vector.load %arg7[%c4_222, %c0_223, %c0_224] : memref<8x1x8xf32, #tpu.memory_space<vmem>>, vector<1x1x8xf32>
    %387 = vector.shape_cast %386 : vector<1x1x8xf32> to vector<1x8xf32>
    %388 = vector.broadcast %387 : vector<1x8xf32> to vector<16x8xf32>
    %389 = arith.addf %385, %388 : vector<16x8xf32>
    %c4_225 = arith.constant 4 : index
    %c0_226 = arith.constant 0 : index
    %c0_227 = arith.constant 0 : index
    %390 = vector.load %arg8[%c4_225, %c0_226, %c0_227] : memref<8x32x8xf32, #tpu.memory_space<vmem>>, vector<1x32x8xf32>
    %391 = vector.shape_cast %390 : vector<1x32x8xf32> to vector<32x8xf32>
    %cst_228 = arith.constant dense<0.000000e+00> : vector<16x8xf32>
    %392 = tpu.matmul %375, %391, %cst_228 {dimension_numbers = #tpu.dot_dimension_numbers<[1], [0], [0], [1], [0, 0, 1, 1], [], []>} : vector<16x32xf32>, vector<32x8xf32>, vector<16x8xf32> -> vector<16x8xf32>
    %c4_229 = arith.constant 4 : index
    %c0_230 = arith.constant 0 : index
    %c0_231 = arith.constant 0 : index
    %393 = vector.load %arg9[%c4_229, %c0_230, %c0_231] : memref<8x1x8xf32, #tpu.memory_space<vmem>>, vector<1x1x8xf32>
    %394 = vector.shape_cast %393 : vector<1x1x8xf32> to vector<1x8xf32>
    %395 = vector.broadcast %394 : vector<1x8xf32> to vector<16x8xf32>
    %396 = arith.addf %392, %395 : vector<16x8xf32>
    %397 = vector.extract_strided_slice %382 {offsets = [0, 0], sizes = [8, 8], strides = [1, 1]} : vector<16x8xf32> to vector<8x8xf32>
    %398 = vector.extract_strided_slice %389 {offsets = [0, 0], sizes = [8, 8], strides = [1, 1]} : vector<16x8xf32> to vector<8x8xf32>
    %399 = vector.extract_strided_slice %396 {offsets = [0, 0], sizes = [8, 8], strides = [1, 1]} : vector<16x8xf32> to vector<8x8xf32>
    %cst_232 = arith.constant dense<0.000000e+00> : vector<8x8xf32>
    %400 = tpu.matmul %397, %398, %cst_232 {dimension_numbers = #tpu.dot_dimension_numbers<[1], [1], [0], [0], [0, 0, 1, 0], [], []>} : vector<8x8xf32>, vector<8x8xf32>, vector<8x8xf32> -> vector<8x8xf32>
    %cst_233 = arith.constant 0.353553385 : f32
    %401 = vector.broadcast %cst_233 : f32 to vector<8x8xf32>
    %402 = arith.mulf %400, %401 : vector<8x8xf32>
    %c0_234 = arith.constant 0 : index
    %c0_235 = arith.constant 0 : index
    %c0_236 = arith.constant 0 : index
    %403 = vector.load %arg1[%c0_234, %c0_235, %c0_236] : memref<2x1x8xf32, #tpu.memory_space<vmem>>, vector<1x1x8xf32>
    %404 = vector.shape_cast %403 : vector<1x1x8xf32> to vector<1x8xf32>
    %405 = vector.broadcast %404 : vector<1x8xf32> to vector<8x8xf32>
    %406 = arith.addf %402, %405 : vector<8x8xf32>
    %cst_237 = arith.constant dense<0xFF800000> : vector<8xf32>
    %407 = vector.multi_reduction <maximumf>, %406, %cst_237 [1] : vector<8x8xf32> to vector<8xf32>
    %408 = vector.shape_cast %407 : vector<8xf32> to vector<8x1xf32>
    %409 = vector.broadcast %408 : vector<8x1xf32> to vector<8x8xf32>
    %410 = arith.subf %406, %409 : vector<8x8xf32>
    %411 = math.exp %410 : vector<8x8xf32>
    %cst_238 = arith.constant dense<0.000000e+00> : vector<8xf32>
    %412 = vector.multi_reduction <add>, %411, %cst_238 [1] : vector<8x8xf32> to vector<8xf32>
    %413 = vector.shape_cast %412 : vector<8xf32> to vector<8x1xf32>
    %414 = tpu.reciprocal %413 {approx = true} : vector<8x1xf32> -> vector<8x1xf32>
    %415 = vector.broadcast %414 : vector<8x1xf32> to vector<8x8xf32>
    %416 = arith.mulf %411, %415 : vector<8x8xf32>
    %cst_239 = arith.constant dense<0.000000e+00> : vector<8x8xf32>
    %417 = tpu.matmul %416, %399, %cst_239 {dimension_numbers = #tpu.dot_dimension_numbers<[1], [0], [0], [1], [0, 0, 1, 1], [], []>} : vector<8x8xf32>, vector<8x8xf32>, vector<8x8xf32> -> vector<8x8xf32>
    %418 = vector.extract_strided_slice %382 {offsets = [8, 0], sizes = [8, 8], strides = [1, 1]} : vector<16x8xf32> to vector<8x8xf32>
    %419 = vector.extract_strided_slice %389 {offsets = [8, 0], sizes = [8, 8], strides = [1, 1]} : vector<16x8xf32> to vector<8x8xf32>
    %420 = vector.extract_strided_slice %396 {offsets = [8, 0], sizes = [8, 8], strides = [1, 1]} : vector<16x8xf32> to vector<8x8xf32>
    %cst_240 = arith.constant dense<0.000000e+00> : vector<8x8xf32>
    %421 = tpu.matmul %418, %419, %cst_240 {dimension_numbers = #tpu.dot_dimension_numbers<[1], [1], [0], [0], [0, 0, 1, 0], [], []>} : vector<8x8xf32>, vector<8x8xf32>, vector<8x8xf32> -> vector<8x8xf32>
    %cst_241 = arith.constant 0.353553385 : f32
    %422 = vector.broadcast %cst_241 : f32 to vector<8x8xf32>
    %423 = arith.mulf %421, %422 : vector<8x8xf32>
    %c1_242 = arith.constant 1 : index
    %c0_243 = arith.constant 0 : index
    %c0_244 = arith.constant 0 : index
    %424 = vector.load %arg1[%c1_242, %c0_243, %c0_244] : memref<2x1x8xf32, #tpu.memory_space<vmem>>, vector<1x1x8xf32>
    %425 = vector.shape_cast %424 : vector<1x1x8xf32> to vector<1x8xf32>
    %426 = vector.broadcast %425 : vector<1x8xf32> to vector<8x8xf32>
    %427 = arith.addf %423, %426 : vector<8x8xf32>
    %cst_245 = arith.constant dense<0xFF800000> : vector<8xf32>
    %428 = vector.multi_reduction <maximumf>, %427, %cst_245 [1] : vector<8x8xf32> to vector<8xf32>
    %429 = vector.shape_cast %428 : vector<8xf32> to vector<8x1xf32>
    %430 = vector.broadcast %429 : vector<8x1xf32> to vector<8x8xf32>
    %431 = arith.subf %427, %430 : vector<8x8xf32>
    %432 = math.exp %431 : vector<8x8xf32>
    %cst_246 = arith.constant dense<0.000000e+00> : vector<8xf32>
    %433 = vector.multi_reduction <add>, %432, %cst_246 [1] : vector<8x8xf32> to vector<8xf32>
    %434 = vector.shape_cast %433 : vector<8xf32> to vector<8x1xf32>
    %435 = tpu.reciprocal %434 {approx = true} : vector<8x1xf32> -> vector<8x1xf32>
    %436 = vector.broadcast %435 : vector<8x1xf32> to vector<8x8xf32>
    %437 = arith.mulf %432, %436 : vector<8x8xf32>
    %cst_247 = arith.constant dense<0.000000e+00> : vector<8x8xf32>
    %438 = tpu.matmul %437, %420, %cst_247 {dimension_numbers = #tpu.dot_dimension_numbers<[1], [0], [0], [1], [0, 0, 1, 1], [], []>} : vector<8x8xf32>, vector<8x8xf32>, vector<8x8xf32> -> vector<8x8xf32>
    %439 = tpu.concatenate %417, %438 in 0 : vector<8x8xf32>, vector<8x8xf32> -> vector<16x8xf32>
    %c4_248 = arith.constant 4 : index
    %c0_249 = arith.constant 0 : index
    %c0_250 = arith.constant 0 : index
    %440 = vector.load %arg10[%c4_248, %c0_249, %c0_250] : memref<8x8x32xf32, #tpu.memory_space<vmem>>, vector<1x8x32xf32>
    %441 = vector.shape_cast %440 : vector<1x8x32xf32> to vector<8x32xf32>
    %cst_251 = arith.constant dense<0.000000e+00> : vector<16x32xf32>
    %442 = tpu.matmul %439, %441, %cst_251 {dimension_numbers = #tpu.dot_dimension_numbers<[1], [0], [0], [1], [0, 0, 1, 1], [], []>} : vector<16x8xf32>, vector<8x32xf32>, vector<16x32xf32> -> vector<16x32xf32>
    %c5 = arith.constant 5 : index
    %c0_252 = arith.constant 0 : index
    %c0_253 = arith.constant 0 : index
    %443 = vector.load %arg4[%c5, %c0_252, %c0_253] : memref<8x32x8xf32, #tpu.memory_space<vmem>>, vector<1x32x8xf32>
    %444 = vector.shape_cast %443 : vector<1x32x8xf32> to vector<32x8xf32>
    %cst_254 = arith.constant dense<0.000000e+00> : vector<16x8xf32>
    %445 = tpu.matmul %375, %444, %cst_254 {dimension_numbers = #tpu.dot_dimension_numbers<[1], [0], [0], [1], [0, 0, 1, 1], [], []>} : vector<16x32xf32>, vector<32x8xf32>, vector<16x8xf32> -> vector<16x8xf32>
    %c5_255 = arith.constant 5 : index
    %c0_256 = arith.constant 0 : index
    %c0_257 = arith.constant 0 : index
    %446 = vector.load %arg5[%c5_255, %c0_256, %c0_257] : memref<8x1x8xf32, #tpu.memory_space<vmem>>, vector<1x1x8xf32>
    %447 = vector.shape_cast %446 : vector<1x1x8xf32> to vector<1x8xf32>
    %448 = vector.broadcast %447 : vector<1x8xf32> to vector<16x8xf32>
    %449 = arith.addf %445, %448 : vector<16x8xf32>
    %c5_258 = arith.constant 5 : index
    %c0_259 = arith.constant 0 : index
    %c0_260 = arith.constant 0 : index
    %450 = vector.load %arg6[%c5_258, %c0_259, %c0_260] : memref<8x32x8xf32, #tpu.memory_space<vmem>>, vector<1x32x8xf32>
    %451 = vector.shape_cast %450 : vector<1x32x8xf32> to vector<32x8xf32>
    %cst_261 = arith.constant dense<0.000000e+00> : vector<16x8xf32>
    %452 = tpu.matmul %375, %451, %cst_261 {dimension_numbers = #tpu.dot_dimension_numbers<[1], [0], [0], [1], [0, 0, 1, 1], [], []>} : vector<16x32xf32>, vector<32x8xf32>, vector<16x8xf32> -> vector<16x8xf32>
    %c5_262 = arith.constant 5 : index
    %c0_263 = arith.constant 0 : index
    %c0_264 = arith.constant 0 : index
    %453 = vector.load %arg7[%c5_262, %c0_263, %c0_264] : memref<8x1x8xf32, #tpu.memory_space<vmem>>, vector<1x1x8xf32>
    %454 = vector.shape_cast %453 : vector<1x1x8xf32> to vector<1x8xf32>
    %455 = vector.broadcast %454 : vector<1x8xf32> to vector<16x8xf32>
    %456 = arith.addf %452, %455 : vector<16x8xf32>
    %c5_265 = arith.constant 5 : index
    %c0_266 = arith.constant 0 : index
    %c0_267 = arith.constant 0 : index
    %457 = vector.load %arg8[%c5_265, %c0_266, %c0_267] : memref<8x32x8xf32, #tpu.memory_space<vmem>>, vector<1x32x8xf32>
    %458 = vector.shape_cast %457 : vector<1x32x8xf32> to vector<32x8xf32>
    %cst_268 = arith.constant dense<0.000000e+00> : vector<16x8xf32>
    %459 = tpu.matmul %375, %458, %cst_268 {dimension_numbers = #tpu.dot_dimension_numbers<[1], [0], [0], [1], [0, 0, 1, 1], [], []>} : vector<16x32xf32>, vector<32x8xf32>, vector<16x8xf32> -> vector<16x8xf32>
    %c5_269 = arith.constant 5 : index
    %c0_270 = arith.constant 0 : index
    %c0_271 = arith.constant 0 : index
    %460 = vector.load %arg9[%c5_269, %c0_270, %c0_271] : memref<8x1x8xf32, #tpu.memory_space<vmem>>, vector<1x1x8xf32>
    %461 = vector.shape_cast %460 : vector<1x1x8xf32> to vector<1x8xf32>
    %462 = vector.broadcast %461 : vector<1x8xf32> to vector<16x8xf32>
    %463 = arith.addf %459, %462 : vector<16x8xf32>
    %464 = vector.extract_strided_slice %449 {offsets = [0, 0], sizes = [8, 8], strides = [1, 1]} : vector<16x8xf32> to vector<8x8xf32>
    %465 = vector.extract_strided_slice %456 {offsets = [0, 0], sizes = [8, 8], strides = [1, 1]} : vector<16x8xf32> to vector<8x8xf32>
    %466 = vector.extract_strided_slice %463 {offsets = [0, 0], sizes = [8, 8], strides = [1, 1]} : vector<16x8xf32> to vector<8x8xf32>
    %cst_272 = arith.constant dense<0.000000e+00> : vector<8x8xf32>
    %467 = tpu.matmul %464, %465, %cst_272 {dimension_numbers = #tpu.dot_dimension_numbers<[1], [1], [0], [0], [0, 0, 1, 0], [], []>} : vector<8x8xf32>, vector<8x8xf32>, vector<8x8xf32> -> vector<8x8xf32>
    %cst_273 = arith.constant 0.353553385 : f32
    %468 = vector.broadcast %cst_273 : f32 to vector<8x8xf32>
    %469 = arith.mulf %467, %468 : vector<8x8xf32>
    %c0_274 = arith.constant 0 : index
    %c0_275 = arith.constant 0 : index
    %c0_276 = arith.constant 0 : index
    %470 = vector.load %arg1[%c0_274, %c0_275, %c0_276] : memref<2x1x8xf32, #tpu.memory_space<vmem>>, vector<1x1x8xf32>
    %471 = vector.shape_cast %470 : vector<1x1x8xf32> to vector<1x8xf32>
    %472 = vector.broadcast %471 : vector<1x8xf32> to vector<8x8xf32>
    %473 = arith.addf %469, %472 : vector<8x8xf32>
    %cst_277 = arith.constant dense<0xFF800000> : vector<8xf32>
    %474 = vector.multi_reduction <maximumf>, %473, %cst_277 [1] : vector<8x8xf32> to vector<8xf32>
    %475 = vector.shape_cast %474 : vector<8xf32> to vector<8x1xf32>
    %476 = vector.broadcast %475 : vector<8x1xf32> to vector<8x8xf32>
    %477 = arith.subf %473, %476 : vector<8x8xf32>
    %478 = math.exp %477 : vector<8x8xf32>
    %cst_278 = arith.constant dense<0.000000e+00> : vector<8xf32>
    %479 = vector.multi_reduction <add>, %478, %cst_278 [1] : vector<8x8xf32> to vector<8xf32>
    %480 = vector.shape_cast %479 : vector<8xf32> to vector<8x1xf32>
    %481 = tpu.reciprocal %480 {approx = true} : vector<8x1xf32> -> vector<8x1xf32>
    %482 = vector.broadcast %481 : vector<8x1xf32> to vector<8x8xf32>
    %483 = arith.mulf %478, %482 : vector<8x8xf32>
    %cst_279 = arith.constant dense<0.000000e+00> : vector<8x8xf32>
    %484 = tpu.matmul %483, %466, %cst_279 {dimension_numbers = #tpu.dot_dimension_numbers<[1], [0], [0], [1], [0, 0, 1, 1], [], []>} : vector<8x8xf32>, vector<8x8xf32>, vector<8x8xf32> -> vector<8x8xf32>
    %485 = vector.extract_strided_slice %449 {offsets = [8, 0], sizes = [8, 8], strides = [1, 1]} : vector<16x8xf32> to vector<8x8xf32>
    %486 = vector.extract_strided_slice %456 {offsets = [8, 0], sizes = [8, 8], strides = [1, 1]} : vector<16x8xf32> to vector<8x8xf32>
    %487 = vector.extract_strided_slice %463 {offsets = [8, 0], sizes = [8, 8], strides = [1, 1]} : vector<16x8xf32> to vector<8x8xf32>
    %cst_280 = arith.constant dense<0.000000e+00> : vector<8x8xf32>
    %488 = tpu.matmul %485, %486, %cst_280 {dimension_numbers = #tpu.dot_dimension_numbers<[1], [1], [0], [0], [0, 0, 1, 0], [], []>} : vector<8x8xf32>, vector<8x8xf32>, vector<8x8xf32> -> vector<8x8xf32>
    %cst_281 = arith.constant 0.353553385 : f32
    %489 = vector.broadcast %cst_281 : f32 to vector<8x8xf32>
    %490 = arith.mulf %488, %489 : vector<8x8xf32>
    %c1_282 = arith.constant 1 : index
    %c0_283 = arith.constant 0 : index
    %c0_284 = arith.constant 0 : index
    %491 = vector.load %arg1[%c1_282, %c0_283, %c0_284] : memref<2x1x8xf32, #tpu.memory_space<vmem>>, vector<1x1x8xf32>
    %492 = vector.shape_cast %491 : vector<1x1x8xf32> to vector<1x8xf32>
    %493 = vector.broadcast %492 : vector<1x8xf32> to vector<8x8xf32>
    %494 = arith.addf %490, %493 : vector<8x8xf32>
    %cst_285 = arith.constant dense<0xFF800000> : vector<8xf32>
    %495 = vector.multi_reduction <maximumf>, %494, %cst_285 [1] : vector<8x8xf32> to vector<8xf32>
    %496 = vector.shape_cast %495 : vector<8xf32> to vector<8x1xf32>
    %497 = vector.broadcast %496 : vector<8x1xf32> to vector<8x8xf32>
    %498 = arith.subf %494, %497 : vector<8x8xf32>
    %499 = math.exp %498 : vector<8x8xf32>
    %cst_286 = arith.constant dense<0.000000e+00> : vector<8xf32>
    %500 = vector.multi_reduction <add>, %499, %cst_286 [1] : vector<8x8xf32> to vector<8xf32>
    %501 = vector.shape_cast %500 : vector<8xf32> to vector<8x1xf32>
    %502 = tpu.reciprocal %501 {approx = true} : vector<8x1xf32> -> vector<8x1xf32>
    %503 = vector.broadcast %502 : vector<8x1xf32> to vector<8x8xf32>
    %504 = arith.mulf %499, %503 : vector<8x8xf32>
    %cst_287 = arith.constant dense<0.000000e+00> : vector<8x8xf32>
    %505 = tpu.matmul %504, %487, %cst_287 {dimension_numbers = #tpu.dot_dimension_numbers<[1], [0], [0], [1], [0, 0, 1, 1], [], []>} : vector<8x8xf32>, vector<8x8xf32>, vector<8x8xf32> -> vector<8x8xf32>
    %506 = tpu.concatenate %484, %505 in 0 : vector<8x8xf32>, vector<8x8xf32> -> vector<16x8xf32>
    %c5_288 = arith.constant 5 : index
    %c0_289 = arith.constant 0 : index
    %c0_290 = arith.constant 0 : index
    %507 = vector.load %arg10[%c5_288, %c0_289, %c0_290] : memref<8x8x32xf32, #tpu.memory_space<vmem>>, vector<1x8x32xf32>
    %508 = vector.shape_cast %507 : vector<1x8x32xf32> to vector<8x32xf32>
    %cst_291 = arith.constant dense<0.000000e+00> : vector<16x32xf32>
    %509 = tpu.matmul %506, %508, %cst_291 {dimension_numbers = #tpu.dot_dimension_numbers<[1], [0], [0], [1], [0, 0, 1, 1], [], []>} : vector<16x8xf32>, vector<8x32xf32>, vector<16x32xf32> -> vector<16x32xf32>
    %510 = arith.addf %442, %509 : vector<16x32xf32>
    %c6 = arith.constant 6 : index
    %c0_292 = arith.constant 0 : index
    %c0_293 = arith.constant 0 : index
    %511 = vector.load %arg4[%c6, %c0_292, %c0_293] : memref<8x32x8xf32, #tpu.memory_space<vmem>>, vector<1x32x8xf32>
    %512 = vector.shape_cast %511 : vector<1x32x8xf32> to vector<32x8xf32>
    %cst_294 = arith.constant dense<0.000000e+00> : vector<16x8xf32>
    %513 = tpu.matmul %375, %512, %cst_294 {dimension_numbers = #tpu.dot_dimension_numbers<[1], [0], [0], [1], [0, 0, 1, 1], [], []>} : vector<16x32xf32>, vector<32x8xf32>, vector<16x8xf32> -> vector<16x8xf32>
    %c6_295 = arith.constant 6 : index
    %c0_296 = arith.constant 0 : index
    %c0_297 = arith.constant 0 : index
    %514 = vector.load %arg5[%c6_295, %c0_296, %c0_297] : memref<8x1x8xf32, #tpu.memory_space<vmem>>, vector<1x1x8xf32>
    %515 = vector.shape_cast %514 : vector<1x1x8xf32> to vector<1x8xf32>
    %516 = vector.broadcast %515 : vector<1x8xf32> to vector<16x8xf32>
    %517 = arith.addf %513, %516 : vector<16x8xf32>
    %c6_298 = arith.constant 6 : index
    %c0_299 = arith.constant 0 : index
    %c0_300 = arith.constant 0 : index
    %518 = vector.load %arg6[%c6_298, %c0_299, %c0_300] : memref<8x32x8xf32, #tpu.memory_space<vmem>>, vector<1x32x8xf32>
    %519 = vector.shape_cast %518 : vector<1x32x8xf32> to vector<32x8xf32>
    %cst_301 = arith.constant dense<0.000000e+00> : vector<16x8xf32>
    %520 = tpu.matmul %375, %519, %cst_301 {dimension_numbers = #tpu.dot_dimension_numbers<[1], [0], [0], [1], [0, 0, 1, 1], [], []>} : vector<16x32xf32>, vector<32x8xf32>, vector<16x8xf32> -> vector<16x8xf32>
    %c6_302 = arith.constant 6 : index
    %c0_303 = arith.constant 0 : index
    %c0_304 = arith.constant 0 : index
    %521 = vector.load %arg7[%c6_302, %c0_303, %c0_304] : memref<8x1x8xf32, #tpu.memory_space<vmem>>, vector<1x1x8xf32>
    %522 = vector.shape_cast %521 : vector<1x1x8xf32> to vector<1x8xf32>
    %523 = vector.broadcast %522 : vector<1x8xf32> to vector<16x8xf32>
    %524 = arith.addf %520, %523 : vector<16x8xf32>
    %c6_305 = arith.constant 6 : index
    %c0_306 = arith.constant 0 : index
    %c0_307 = arith.constant 0 : index
    %525 = vector.load %arg8[%c6_305, %c0_306, %c0_307] : memref<8x32x8xf32, #tpu.memory_space<vmem>>, vector<1x32x8xf32>
    %526 = vector.shape_cast %525 : vector<1x32x8xf32> to vector<32x8xf32>
    %cst_308 = arith.constant dense<0.000000e+00> : vector<16x8xf32>
    %527 = tpu.matmul %375, %526, %cst_308 {dimension_numbers = #tpu.dot_dimension_numbers<[1], [0], [0], [1], [0, 0, 1, 1], [], []>} : vector<16x32xf32>, vector<32x8xf32>, vector<16x8xf32> -> vector<16x8xf32>
    %c6_309 = arith.constant 6 : index
    %c0_310 = arith.constant 0 : index
    %c0_311 = arith.constant 0 : index
    %528 = vector.load %arg9[%c6_309, %c0_310, %c0_311] : memref<8x1x8xf32, #tpu.memory_space<vmem>>, vector<1x1x8xf32>
    %529 = vector.shape_cast %528 : vector<1x1x8xf32> to vector<1x8xf32>
    %530 = vector.broadcast %529 : vector<1x8xf32> to vector<16x8xf32>
    %531 = arith.addf %527, %530 : vector<16x8xf32>
    %532 = vector.extract_strided_slice %517 {offsets = [0, 0], sizes = [8, 8], strides = [1, 1]} : vector<16x8xf32> to vector<8x8xf32>
    %533 = vector.extract_strided_slice %524 {offsets = [0, 0], sizes = [8, 8], strides = [1, 1]} : vector<16x8xf32> to vector<8x8xf32>
    %534 = vector.extract_strided_slice %531 {offsets = [0, 0], sizes = [8, 8], strides = [1, 1]} : vector<16x8xf32> to vector<8x8xf32>
    %cst_312 = arith.constant dense<0.000000e+00> : vector<8x8xf32>
    %535 = tpu.matmul %532, %533, %cst_312 {dimension_numbers = #tpu.dot_dimension_numbers<[1], [1], [0], [0], [0, 0, 1, 0], [], []>} : vector<8x8xf32>, vector<8x8xf32>, vector<8x8xf32> -> vector<8x8xf32>
    %cst_313 = arith.constant 0.353553385 : f32
    %536 = vector.broadcast %cst_313 : f32 to vector<8x8xf32>
    %537 = arith.mulf %535, %536 : vector<8x8xf32>
    %c0_314 = arith.constant 0 : index
    %c0_315 = arith.constant 0 : index
    %c0_316 = arith.constant 0 : index
    %538 = vector.load %arg1[%c0_314, %c0_315, %c0_316] : memref<2x1x8xf32, #tpu.memory_space<vmem>>, vector<1x1x8xf32>
    %539 = vector.shape_cast %538 : vector<1x1x8xf32> to vector<1x8xf32>
    %540 = vector.broadcast %539 : vector<1x8xf32> to vector<8x8xf32>
    %541 = arith.addf %537, %540 : vector<8x8xf32>
    %cst_317 = arith.constant dense<0xFF800000> : vector<8xf32>
    %542 = vector.multi_reduction <maximumf>, %541, %cst_317 [1] : vector<8x8xf32> to vector<8xf32>
    %543 = vector.shape_cast %542 : vector<8xf32> to vector<8x1xf32>
    %544 = vector.broadcast %543 : vector<8x1xf32> to vector<8x8xf32>
    %545 = arith.subf %541, %544 : vector<8x8xf32>
    %546 = math.exp %545 : vector<8x8xf32>
    %cst_318 = arith.constant dense<0.000000e+00> : vector<8xf32>
    %547 = vector.multi_reduction <add>, %546, %cst_318 [1] : vector<8x8xf32> to vector<8xf32>
    %548 = vector.shape_cast %547 : vector<8xf32> to vector<8x1xf32>
    %549 = tpu.reciprocal %548 {approx = true} : vector<8x1xf32> -> vector<8x1xf32>
    %550 = vector.broadcast %549 : vector<8x1xf32> to vector<8x8xf32>
    %551 = arith.mulf %546, %550 : vector<8x8xf32>
    %cst_319 = arith.constant dense<0.000000e+00> : vector<8x8xf32>
    %552 = tpu.matmul %551, %534, %cst_319 {dimension_numbers = #tpu.dot_dimension_numbers<[1], [0], [0], [1], [0, 0, 1, 1], [], []>} : vector<8x8xf32>, vector<8x8xf32>, vector<8x8xf32> -> vector<8x8xf32>
    %553 = vector.extract_strided_slice %517 {offsets = [8, 0], sizes = [8, 8], strides = [1, 1]} : vector<16x8xf32> to vector<8x8xf32>
    %554 = vector.extract_strided_slice %524 {offsets = [8, 0], sizes = [8, 8], strides = [1, 1]} : vector<16x8xf32> to vector<8x8xf32>
    %555 = vector.extract_strided_slice %531 {offsets = [8, 0], sizes = [8, 8], strides = [1, 1]} : vector<16x8xf32> to vector<8x8xf32>
    %cst_320 = arith.constant dense<0.000000e+00> : vector<8x8xf32>
    %556 = tpu.matmul %553, %554, %cst_320 {dimension_numbers = #tpu.dot_dimension_numbers<[1], [1], [0], [0], [0, 0, 1, 0], [], []>} : vector<8x8xf32>, vector<8x8xf32>, vector<8x8xf32> -> vector<8x8xf32>
    %cst_321 = arith.constant 0.353553385 : f32
    %557 = vector.broadcast %cst_321 : f32 to vector<8x8xf32>
    %558 = arith.mulf %556, %557 : vector<8x8xf32>
    %c1_322 = arith.constant 1 : index
    %c0_323 = arith.constant 0 : index
    %c0_324 = arith.constant 0 : index
    %559 = vector.load %arg1[%c1_322, %c0_323, %c0_324] : memref<2x1x8xf32, #tpu.memory_space<vmem>>, vector<1x1x8xf32>
    %560 = vector.shape_cast %559 : vector<1x1x8xf32> to vector<1x8xf32>
    %561 = vector.broadcast %560 : vector<1x8xf32> to vector<8x8xf32>
    %562 = arith.addf %558, %561 : vector<8x8xf32>
    %cst_325 = arith.constant dense<0xFF800000> : vector<8xf32>
    %563 = vector.multi_reduction <maximumf>, %562, %cst_325 [1] : vector<8x8xf32> to vector<8xf32>
    %564 = vector.shape_cast %563 : vector<8xf32> to vector<8x1xf32>
    %565 = vector.broadcast %564 : vector<8x1xf32> to vector<8x8xf32>
    %566 = arith.subf %562, %565 : vector<8x8xf32>
    %567 = math.exp %566 : vector<8x8xf32>
    %cst_326 = arith.constant dense<0.000000e+00> : vector<8xf32>
    %568 = vector.multi_reduction <add>, %567, %cst_326 [1] : vector<8x8xf32> to vector<8xf32>
    %569 = vector.shape_cast %568 : vector<8xf32> to vector<8x1xf32>
    %570 = tpu.reciprocal %569 {approx = true} : vector<8x1xf32> -> vector<8x1xf32>
    %571 = vector.broadcast %570 : vector<8x1xf32> to vector<8x8xf32>
    %572 = arith.mulf %567, %571 : vector<8x8xf32>
    %cst_327 = arith.constant dense<0.000000e+00> : vector<8x8xf32>
    %573 = tpu.matmul %572, %555, %cst_327 {dimension_numbers = #tpu.dot_dimension_numbers<[1], [0], [0], [1], [0, 0, 1, 1], [], []>} : vector<8x8xf32>, vector<8x8xf32>, vector<8x8xf32> -> vector<8x8xf32>
    %574 = tpu.concatenate %552, %573 in 0 : vector<8x8xf32>, vector<8x8xf32> -> vector<16x8xf32>
    %c6_328 = arith.constant 6 : index
    %c0_329 = arith.constant 0 : index
    %c0_330 = arith.constant 0 : index
    %575 = vector.load %arg10[%c6_328, %c0_329, %c0_330] : memref<8x8x32xf32, #tpu.memory_space<vmem>>, vector<1x8x32xf32>
    %576 = vector.shape_cast %575 : vector<1x8x32xf32> to vector<8x32xf32>
    %cst_331 = arith.constant dense<0.000000e+00> : vector<16x32xf32>
    %577 = tpu.matmul %574, %576, %cst_331 {dimension_numbers = #tpu.dot_dimension_numbers<[1], [0], [0], [1], [0, 0, 1, 1], [], []>} : vector<16x8xf32>, vector<8x32xf32>, vector<16x32xf32> -> vector<16x32xf32>
    %578 = arith.addf %510, %577 : vector<16x32xf32>
    %c7 = arith.constant 7 : index
    %c0_332 = arith.constant 0 : index
    %c0_333 = arith.constant 0 : index
    %579 = vector.load %arg4[%c7, %c0_332, %c0_333] : memref<8x32x8xf32, #tpu.memory_space<vmem>>, vector<1x32x8xf32>
    %580 = vector.shape_cast %579 : vector<1x32x8xf32> to vector<32x8xf32>
    %cst_334 = arith.constant dense<0.000000e+00> : vector<16x8xf32>
    %581 = tpu.matmul %375, %580, %cst_334 {dimension_numbers = #tpu.dot_dimension_numbers<[1], [0], [0], [1], [0, 0, 1, 1], [], []>} : vector<16x32xf32>, vector<32x8xf32>, vector<16x8xf32> -> vector<16x8xf32>
    %c7_335 = arith.constant 7 : index
    %c0_336 = arith.constant 0 : index
    %c0_337 = arith.constant 0 : index
    %582 = vector.load %arg5[%c7_335, %c0_336, %c0_337] : memref<8x1x8xf32, #tpu.memory_space<vmem>>, vector<1x1x8xf32>
    %583 = vector.shape_cast %582 : vector<1x1x8xf32> to vector<1x8xf32>
    %584 = vector.broadcast %583 : vector<1x8xf32> to vector<16x8xf32>
    %585 = arith.addf %581, %584 : vector<16x8xf32>
    %c7_338 = arith.constant 7 : index
    %c0_339 = arith.constant 0 : index
    %c0_340 = arith.constant 0 : index
    %586 = vector.load %arg6[%c7_338, %c0_339, %c0_340] : memref<8x32x8xf32, #tpu.memory_space<vmem>>, vector<1x32x8xf32>
    %587 = vector.shape_cast %586 : vector<1x32x8xf32> to vector<32x8xf32>
    %cst_341 = arith.constant dense<0.000000e+00> : vector<16x8xf32>
    %588 = tpu.matmul %375, %587, %cst_341 {dimension_numbers = #tpu.dot_dimension_numbers<[1], [0], [0], [1], [0, 0, 1, 1], [], []>} : vector<16x32xf32>, vector<32x8xf32>, vector<16x8xf32> -> vector<16x8xf32>
    %c7_342 = arith.constant 7 : index
    %c0_343 = arith.constant 0 : index
    %c0_344 = arith.constant 0 : index
    %589 = vector.load %arg7[%c7_342, %c0_343, %c0_344] : memref<8x1x8xf32, #tpu.memory_space<vmem>>, vector<1x1x8xf32>
    %590 = vector.shape_cast %589 : vector<1x1x8xf32> to vector<1x8xf32>
    %591 = vector.broadcast %590 : vector<1x8xf32> to vector<16x8xf32>
    %592 = arith.addf %588, %591 : vector<16x8xf32>
    %c7_345 = arith.constant 7 : index
    %c0_346 = arith.constant 0 : index
    %c0_347 = arith.constant 0 : index
    %593 = vector.load %arg8[%c7_345, %c0_346, %c0_347] : memref<8x32x8xf32, #tpu.memory_space<vmem>>, vector<1x32x8xf32>
    %594 = vector.shape_cast %593 : vector<1x32x8xf32> to vector<32x8xf32>
    %cst_348 = arith.constant dense<0.000000e+00> : vector<16x8xf32>
    %595 = tpu.matmul %375, %594, %cst_348 {dimension_numbers = #tpu.dot_dimension_numbers<[1], [0], [0], [1], [0, 0, 1, 1], [], []>} : vector<16x32xf32>, vector<32x8xf32>, vector<16x8xf32> -> vector<16x8xf32>
    %c7_349 = arith.constant 7 : index
    %c0_350 = arith.constant 0 : index
    %c0_351 = arith.constant 0 : index
    %596 = vector.load %arg9[%c7_349, %c0_350, %c0_351] : memref<8x1x8xf32, #tpu.memory_space<vmem>>, vector<1x1x8xf32>
    %597 = vector.shape_cast %596 : vector<1x1x8xf32> to vector<1x8xf32>
    %598 = vector.broadcast %597 : vector<1x8xf32> to vector<16x8xf32>
    %599 = arith.addf %595, %598 : vector<16x8xf32>
    %600 = vector.extract_strided_slice %585 {offsets = [0, 0], sizes = [8, 8], strides = [1, 1]} : vector<16x8xf32> to vector<8x8xf32>
    %601 = vector.extract_strided_slice %592 {offsets = [0, 0], sizes = [8, 8], strides = [1, 1]} : vector<16x8xf32> to vector<8x8xf32>
    %602 = vector.extract_strided_slice %599 {offsets = [0, 0], sizes = [8, 8], strides = [1, 1]} : vector<16x8xf32> to vector<8x8xf32>
    %cst_352 = arith.constant dense<0.000000e+00> : vector<8x8xf32>
    %603 = tpu.matmul %600, %601, %cst_352 {dimension_numbers = #tpu.dot_dimension_numbers<[1], [1], [0], [0], [0, 0, 1, 0], [], []>} : vector<8x8xf32>, vector<8x8xf32>, vector<8x8xf32> -> vector<8x8xf32>
    %cst_353 = arith.constant 0.353553385 : f32
    %604 = vector.broadcast %cst_353 : f32 to vector<8x8xf32>
    %605 = arith.mulf %603, %604 : vector<8x8xf32>
    %c0_354 = arith.constant 0 : index
    %c0_355 = arith.constant 0 : index
    %c0_356 = arith.constant 0 : index
    %606 = vector.load %arg1[%c0_354, %c0_355, %c0_356] : memref<2x1x8xf32, #tpu.memory_space<vmem>>, vector<1x1x8xf32>
    %607 = vector.shape_cast %606 : vector<1x1x8xf32> to vector<1x8xf32>
    %608 = vector.broadcast %607 : vector<1x8xf32> to vector<8x8xf32>
    %609 = arith.addf %605, %608 : vector<8x8xf32>
    %cst_357 = arith.constant dense<0xFF800000> : vector<8xf32>
    %610 = vector.multi_reduction <maximumf>, %609, %cst_357 [1] : vector<8x8xf32> to vector<8xf32>
    %611 = vector.shape_cast %610 : vector<8xf32> to vector<8x1xf32>
    %612 = vector.broadcast %611 : vector<8x1xf32> to vector<8x8xf32>
    %613 = arith.subf %609, %612 : vector<8x8xf32>
    %614 = math.exp %613 : vector<8x8xf32>
    %cst_358 = arith.constant dense<0.000000e+00> : vector<8xf32>
    %615 = vector.multi_reduction <add>, %614, %cst_358 [1] : vector<8x8xf32> to vector<8xf32>
    %616 = vector.shape_cast %615 : vector<8xf32> to vector<8x1xf32>
    %617 = tpu.reciprocal %616 {approx = true} : vector<8x1xf32> -> vector<8x1xf32>
    %618 = vector.broadcast %617 : vector<8x1xf32> to vector<8x8xf32>
    %619 = arith.mulf %614, %618 : vector<8x8xf32>
    %cst_359 = arith.constant dense<0.000000e+00> : vector<8x8xf32>
    %620 = tpu.matmul %619, %602, %cst_359 {dimension_numbers = #tpu.dot_dimension_numbers<[1], [0], [0], [1], [0, 0, 1, 1], [], []>} : vector<8x8xf32>, vector<8x8xf32>, vector<8x8xf32> -> vector<8x8xf32>
    %621 = vector.extract_strided_slice %585 {offsets = [8, 0], sizes = [8, 8], strides = [1, 1]} : vector<16x8xf32> to vector<8x8xf32>
    %622 = vector.extract_strided_slice %592 {offsets = [8, 0], sizes = [8, 8], strides = [1, 1]} : vector<16x8xf32> to vector<8x8xf32>
    %623 = vector.extract_strided_slice %599 {offsets = [8, 0], sizes = [8, 8], strides = [1, 1]} : vector<16x8xf32> to vector<8x8xf32>
    %cst_360 = arith.constant dense<0.000000e+00> : vector<8x8xf32>
    %624 = tpu.matmul %621, %622, %cst_360 {dimension_numbers = #tpu.dot_dimension_numbers<[1], [1], [0], [0], [0, 0, 1, 0], [], []>} : vector<8x8xf32>, vector<8x8xf32>, vector<8x8xf32> -> vector<8x8xf32>
    %cst_361 = arith.constant 0.353553385 : f32
    %625 = vector.broadcast %cst_361 : f32 to vector<8x8xf32>
    %626 = arith.mulf %624, %625 : vector<8x8xf32>
    %c1_362 = arith.constant 1 : index
    %c0_363 = arith.constant 0 : index
    %c0_364 = arith.constant 0 : index
    %627 = vector.load %arg1[%c1_362, %c0_363, %c0_364] : memref<2x1x8xf32, #tpu.memory_space<vmem>>, vector<1x1x8xf32>
    %628 = vector.shape_cast %627 : vector<1x1x8xf32> to vector<1x8xf32>
    %629 = vector.broadcast %628 : vector<1x8xf32> to vector<8x8xf32>
    %630 = arith.addf %626, %629 : vector<8x8xf32>
    %cst_365 = arith.constant dense<0xFF800000> : vector<8xf32>
    %631 = vector.multi_reduction <maximumf>, %630, %cst_365 [1] : vector<8x8xf32> to vector<8xf32>
    %632 = vector.shape_cast %631 : vector<8xf32> to vector<8x1xf32>
    %633 = vector.broadcast %632 : vector<8x1xf32> to vector<8x8xf32>
    %634 = arith.subf %630, %633 : vector<8x8xf32>
    %635 = math.exp %634 : vector<8x8xf32>
    %cst_366 = arith.constant dense<0.000000e+00> : vector<8xf32>
    %636 = vector.multi_reduction <add>, %635, %cst_366 [1] : vector<8x8xf32> to vector<8xf32>
    %637 = vector.shape_cast %636 : vector<8xf32> to vector<8x1xf32>
    %638 = tpu.reciprocal %637 {approx = true} : vector<8x1xf32> -> vector<8x1xf32>
    %639 = vector.broadcast %638 : vector<8x1xf32> to vector<8x8xf32>
    %640 = arith.mulf %635, %639 : vector<8x8xf32>
    %cst_367 = arith.constant dense<0.000000e+00> : vector<8x8xf32>
    %641 = tpu.matmul %640, %623, %cst_367 {dimension_numbers = #tpu.dot_dimension_numbers<[1], [0], [0], [1], [0, 0, 1, 1], [], []>} : vector<8x8xf32>, vector<8x8xf32>, vector<8x8xf32> -> vector<8x8xf32>
    %642 = tpu.concatenate %620, %641 in 0 : vector<8x8xf32>, vector<8x8xf32> -> vector<16x8xf32>
    %c7_368 = arith.constant 7 : index
    %c0_369 = arith.constant 0 : index
    %c0_370 = arith.constant 0 : index
    %643 = vector.load %arg10[%c7_368, %c0_369, %c0_370] : memref<8x8x32xf32, #tpu.memory_space<vmem>>, vector<1x8x32xf32>
    %644 = vector.shape_cast %643 : vector<1x8x32xf32> to vector<8x32xf32>
    %cst_371 = arith.constant dense<0.000000e+00> : vector<16x32xf32>
    %645 = tpu.matmul %642, %644, %cst_371 {dimension_numbers = #tpu.dot_dimension_numbers<[1], [0], [0], [1], [0, 0, 1, 1], [], []>} : vector<16x8xf32>, vector<8x32xf32>, vector<16x32xf32> -> vector<16x32xf32>
    %646 = arith.addf %578, %645 : vector<16x32xf32>
    %c1_372 = arith.constant 1 : index
    %c0_373 = arith.constant 0 : index
    %c0_374 = arith.constant 0 : index
    %647 = vector.load %arg11[%c1_372, %c0_373, %c0_374] : memref<2x1x32xf32, #tpu.memory_space<vmem>>, vector<1x1x32xf32>
    %648 = vector.shape_cast %647 : vector<1x1x32xf32> to vector<1x32xf32>
    %649 = vector.broadcast %648 : vector<1x32xf32> to vector<16x32xf32>
    %650 = arith.addf %646, %649 : vector<16x32xf32>
    %651 = arith.addf %650, %375 : vector<16x32xf32>
    %c1_375 = arith.constant 1 : index
    %c0_376 = arith.constant 0 : index
    %c0_377 = arith.constant 0 : index
    %652 = vector.load %arg12[%c1_375, %c0_376, %c0_377] : memref<2x1x32xf32, #tpu.memory_space<vmem>>, vector<1x1x32xf32>
    %653 = vector.shape_cast %652 : vector<1x1x32xf32> to vector<1x32xf32>
    %c1_378 = arith.constant 1 : index
    %c0_379 = arith.constant 0 : index
    %c0_380 = arith.constant 0 : index
    %654 = vector.load %arg13[%c1_378, %c0_379, %c0_380] : memref<2x1x32xf32, #tpu.memory_space<vmem>>, vector<1x1x32xf32>
    %655 = vector.shape_cast %654 : vector<1x1x32xf32> to vector<1x32xf32>
    %cst_381 = arith.constant dense<0.000000e+00> : vector<16xf32>
    %656 = vector.multi_reduction <add>, %651, %cst_381 [1] : vector<16x32xf32> to vector<16xf32>
    %657 = vector.shape_cast %656 : vector<16xf32> to vector<16x1xf32>
    %cst_382 = arith.constant 3.200000e+01 : f32
    %658 = vector.broadcast %cst_382 : f32 to vector<16x1xf32>
    %659 = arith.divf %657, %658 : vector<16x1xf32>
    %660 = vector.broadcast %659 : vector<16x1xf32> to vector<16x32xf32>
    %661 = arith.subf %651, %660 : vector<16x32xf32>
    %662 = arith.mulf %661, %661 : vector<16x32xf32>
    %cst_383 = arith.constant dense<0.000000e+00> : vector<16xf32>
    %663 = vector.multi_reduction <add>, %662, %cst_383 [1] : vector<16x32xf32> to vector<16xf32>
    %664 = vector.shape_cast %663 : vector<16xf32> to vector<16x1xf32>
    %cst_384 = arith.constant 3.200000e+01 : f32
    %665 = vector.broadcast %cst_384 : f32 to vector<16x1xf32>
    %666 = arith.divf %664, %665 : vector<16x1xf32>
    %667 = vector.broadcast %659 : vector<16x1xf32> to vector<16x32xf32>
    %668 = arith.subf %651, %667 : vector<16x32xf32>
    %cst_385 = arith.constant 9.99999974E-6 : f32
    %669 = vector.broadcast %cst_385 : f32 to vector<16x1xf32>
    %670 = arith.addf %666, %669 : vector<16x1xf32>
    %671 = math.rsqrt %670 : vector<16x1xf32>
    %672 = vector.broadcast %671 : vector<16x1xf32> to vector<16x32xf32>
    %673 = arith.mulf %668, %672 : vector<16x32xf32>
    %674 = vector.broadcast %653 : vector<1x32xf32> to vector<16x32xf32>
    %675 = arith.mulf %673, %674 : vector<16x32xf32>
    %676 = vector.broadcast %655 : vector<1x32xf32> to vector<16x32xf32>
    %677 = arith.addf %675, %676 : vector<16x32xf32>
    %c1_386 = arith.constant 1 : index
    %c0_387 = arith.constant 0 : index
    %c0_388 = arith.constant 0 : index
    %678 = vector.load %arg14[%c1_386, %c0_387, %c0_388] : memref<2x32x64xf32, #tpu.memory_space<vmem>>, vector<1x32x64xf32>
    %679 = vector.shape_cast %678 : vector<1x32x64xf32> to vector<32x64xf32>
    %cst_389 = arith.constant dense<0.000000e+00> : vector<16x64xf32>
    %680 = tpu.matmul %677, %679, %cst_389 {dimension_numbers = #tpu.dot_dimension_numbers<[1], [0], [0], [1], [0, 0, 1, 1], [], []>} : vector<16x32xf32>, vector<32x64xf32>, vector<16x64xf32> -> vector<16x64xf32>
    %c1_390 = arith.constant 1 : index
    %c0_391 = arith.constant 0 : index
    %c0_392 = arith.constant 0 : index
    %681 = vector.load %arg15[%c1_390, %c0_391, %c0_392] : memref<2x1x64xf32, #tpu.memory_space<vmem>>, vector<1x1x64xf32>
    %682 = vector.shape_cast %681 : vector<1x1x64xf32> to vector<1x64xf32>
    %683 = vector.broadcast %682 : vector<1x64xf32> to vector<16x64xf32>
    %684 = arith.addf %680, %683 : vector<16x64xf32>
    %cst_393 = arith.constant 5.000000e-01 : f32
    %685 = vector.broadcast %cst_393 : f32 to vector<16x64xf32>
    %686 = arith.mulf %685, %684 : vector<16x64xf32>
    %cst_394 = arith.constant 0.707106769 : f32
    %687 = vector.broadcast %cst_394 : f32 to vector<16x64xf32>
    %688 = arith.mulf %684, %687 : vector<16x64xf32>
    %689 = math.erf %688 : vector<16x64xf32>
    %cst_395 = arith.constant 1.000000e+00 : f32
    %690 = vector.broadcast %cst_395 : f32 to vector<16x64xf32>
    %691 = arith.addf %690, %689 : vector<16x64xf32>
    %692 = arith.mulf %686, %691 : vector<16x64xf32>
    %c1_396 = arith.constant 1 : index
    %c0_397 = arith.constant 0 : index
    %c0_398 = arith.constant 0 : index
    %693 = vector.load %arg16[%c1_396, %c0_397, %c0_398] : memref<2x64x32xf32, #tpu.memory_space<vmem>>, vector<1x64x32xf32>
    %694 = vector.shape_cast %693 : vector<1x64x32xf32> to vector<64x32xf32>
    %cst_399 = arith.constant dense<0.000000e+00> : vector<16x32xf32>
    %695 = tpu.matmul %692, %694, %cst_399 {dimension_numbers = #tpu.dot_dimension_numbers<[1], [0], [0], [1], [0, 0, 1, 1], [], []>} : vector<16x64xf32>, vector<64x32xf32>, vector<16x32xf32> -> vector<16x32xf32>
    %c1_400 = arith.constant 1 : index
    %c0_401 = arith.constant 0 : index
    %c0_402 = arith.constant 0 : index
    %696 = vector.load %arg17[%c1_400, %c0_401, %c0_402] : memref<2x1x32xf32, #tpu.memory_space<vmem>>, vector<1x1x32xf32>
    %697 = vector.shape_cast %696 : vector<1x1x32xf32> to vector<1x32xf32>
    %698 = vector.broadcast %697 : vector<1x32xf32> to vector<16x32xf32>
    %699 = arith.addf %695, %698 : vector<16x32xf32>
    %700 = arith.addf %699, %677 : vector<16x32xf32>
    %c1_403 = arith.constant 1 : index
    %c0_404 = arith.constant 0 : index
    %c0_405 = arith.constant 0 : index
    %701 = vector.load %arg18[%c1_403, %c0_404, %c0_405] : memref<2x1x32xf32, #tpu.memory_space<vmem>>, vector<1x1x32xf32>
    %702 = vector.shape_cast %701 : vector<1x1x32xf32> to vector<1x32xf32>
    %c1_406 = arith.constant 1 : index
    %c0_407 = arith.constant 0 : index
    %c0_408 = arith.constant 0 : index
    %703 = vector.load %arg19[%c1_406, %c0_407, %c0_408] : memref<2x1x32xf32, #tpu.memory_space<vmem>>, vector<1x1x32xf32>
    %704 = vector.shape_cast %703 : vector<1x1x32xf32> to vector<1x32xf32>
    %cst_409 = arith.constant dense<0.000000e+00> : vector<16xf32>
    %705 = vector.multi_reduction <add>, %700, %cst_409 [1] : vector<16x32xf32> to vector<16xf32>
    %706 = vector.shape_cast %705 : vector<16xf32> to vector<16x1xf32>
    %cst_410 = arith.constant 3.200000e+01 : f32
    %707 = vector.broadcast %cst_410 : f32 to vector<16x1xf32>
    %708 = arith.divf %706, %707 : vector<16x1xf32>
    %709 = vector.broadcast %708 : vector<16x1xf32> to vector<16x32xf32>
    %710 = arith.subf %700, %709 : vector<16x32xf32>
    %711 = arith.mulf %710, %710 : vector<16x32xf32>
    %cst_411 = arith.constant dense<0.000000e+00> : vector<16xf32>
    %712 = vector.multi_reduction <add>, %711, %cst_411 [1] : vector<16x32xf32> to vector<16xf32>
    %713 = vector.shape_cast %712 : vector<16xf32> to vector<16x1xf32>
    %cst_412 = arith.constant 3.200000e+01 : f32
    %714 = vector.broadcast %cst_412 : f32 to vector<16x1xf32>
    %715 = arith.divf %713, %714 : vector<16x1xf32>
    %716 = vector.broadcast %708 : vector<16x1xf32> to vector<16x32xf32>
    %717 = arith.subf %700, %716 : vector<16x32xf32>
    %cst_413 = arith.constant 9.99999974E-6 : f32
    %718 = vector.broadcast %cst_413 : f32 to vector<16x1xf32>
    %719 = arith.addf %715, %718 : vector<16x1xf32>
    %720 = math.rsqrt %719 : vector<16x1xf32>
    %721 = vector.broadcast %720 : vector<16x1xf32> to vector<16x32xf32>
    %722 = arith.mulf %717, %721 : vector<16x32xf32>
    %723 = vector.broadcast %702 : vector<1x32xf32> to vector<16x32xf32>
    %724 = arith.mulf %722, %723 : vector<16x32xf32>
    %725 = vector.broadcast %704 : vector<1x32xf32> to vector<16x32xf32>
    %726 = arith.addf %724, %725 : vector<16x32xf32>
    %c0_414 = arith.constant 0 : index
    %c0_415 = arith.constant 0 : index
    %c0_416 = arith.constant 0 : index
    %727 = vector.load %arg20[%c0_414, %c0_415, %c0_416] : memref<4x32x32xf32, #tpu.memory_space<vmem>>, vector<1x32x32xf32>
    %728 = vector.shape_cast %727 : vector<1x32x32xf32> to vector<32x32xf32>
    %cst_417 = arith.constant dense<0.000000e+00> : vector<16x32xf32>
    %729 = tpu.matmul %726, %728, %cst_417 {dimension_numbers = #tpu.dot_dimension_numbers<[1], [0], [0], [1], [0, 0, 1, 1], [], []>} : vector<16x32xf32>, vector<32x32xf32>, vector<16x32xf32> -> vector<16x32xf32>
    %c0_418 = arith.constant 0 : index
    %c0_419 = arith.constant 0 : index
    %c0_420 = arith.constant 0 : index
    %730 = vector.load %arg21[%c0_418, %c0_419, %c0_420] : memref<4x1x32xf32, #tpu.memory_space<vmem>>, vector<1x1x32xf32>
    %731 = vector.shape_cast %730 : vector<1x1x32xf32> to vector<1x32xf32>
    %732 = vector.broadcast %731 : vector<1x32xf32> to vector<16x32xf32>
    %733 = arith.addf %729, %732 : vector<16x32xf32>
    %c1_421 = arith.constant 1 : index
    %c0_422 = arith.constant 0 : index
    %c0_423 = arith.constant 0 : index
    %734 = vector.load %arg20[%c1_421, %c0_422, %c0_423] : memref<4x32x32xf32, #tpu.memory_space<vmem>>, vector<1x32x32xf32>
    %735 = vector.shape_cast %734 : vector<1x32x32xf32> to vector<32x32xf32>
    %cst_424 = arith.constant dense<0.000000e+00> : vector<16x32xf32>
    %736 = tpu.matmul %726, %735, %cst_424 {dimension_numbers = #tpu.dot_dimension_numbers<[1], [0], [0], [1], [0, 0, 1, 1], [], []>} : vector<16x32xf32>, vector<32x32xf32>, vector<16x32xf32> -> vector<16x32xf32>
    %c1_425 = arith.constant 1 : index
    %c0_426 = arith.constant 0 : index
    %c0_427 = arith.constant 0 : index
    %737 = vector.load %arg21[%c1_425, %c0_426, %c0_427] : memref<4x1x32xf32, #tpu.memory_space<vmem>>, vector<1x1x32xf32>
    %738 = vector.shape_cast %737 : vector<1x1x32xf32> to vector<1x32xf32>
    %739 = vector.broadcast %738 : vector<1x32xf32> to vector<16x32xf32>
    %740 = arith.addf %736, %739 : vector<16x32xf32>
    %c2_428 = arith.constant 2 : index
    %c0_429 = arith.constant 0 : index
    %c0_430 = arith.constant 0 : index
    %741 = vector.load %arg20[%c2_428, %c0_429, %c0_430] : memref<4x32x32xf32, #tpu.memory_space<vmem>>, vector<1x32x32xf32>
    %742 = vector.shape_cast %741 : vector<1x32x32xf32> to vector<32x32xf32>
    %cst_431 = arith.constant dense<0.000000e+00> : vector<16x32xf32>
    %743 = tpu.matmul %726, %742, %cst_431 {dimension_numbers = #tpu.dot_dimension_numbers<[1], [0], [0], [1], [0, 0, 1, 1], [], []>} : vector<16x32xf32>, vector<32x32xf32>, vector<16x32xf32> -> vector<16x32xf32>
    %c2_432 = arith.constant 2 : index
    %c0_433 = arith.constant 0 : index
    %c0_434 = arith.constant 0 : index
    %744 = vector.load %arg21[%c2_432, %c0_433, %c0_434] : memref<4x1x32xf32, #tpu.memory_space<vmem>>, vector<1x1x32xf32>
    %745 = vector.shape_cast %744 : vector<1x1x32xf32> to vector<1x32xf32>
    %746 = vector.broadcast %745 : vector<1x32xf32> to vector<16x32xf32>
    %747 = arith.addf %743, %746 : vector<16x32xf32>
    %c3_435 = arith.constant 3 : index
    %c0_436 = arith.constant 0 : index
    %c0_437 = arith.constant 0 : index
    %748 = vector.load %arg20[%c3_435, %c0_436, %c0_437] : memref<4x32x32xf32, #tpu.memory_space<vmem>>, vector<1x32x32xf32>
    %749 = vector.shape_cast %748 : vector<1x32x32xf32> to vector<32x32xf32>
    %cst_438 = arith.constant dense<0.000000e+00> : vector<16x32xf32>
    %750 = tpu.matmul %726, %749, %cst_438 {dimension_numbers = #tpu.dot_dimension_numbers<[1], [0], [0], [1], [0, 0, 1, 1], [], []>} : vector<16x32xf32>, vector<32x32xf32>, vector<16x32xf32> -> vector<16x32xf32>
    %c3_439 = arith.constant 3 : index
    %c0_440 = arith.constant 0 : index
    %c0_441 = arith.constant 0 : index
    %751 = vector.load %arg21[%c3_439, %c0_440, %c0_441] : memref<4x1x32xf32, #tpu.memory_space<vmem>>, vector<1x1x32xf32>
    %752 = vector.shape_cast %751 : vector<1x1x32xf32> to vector<1x32xf32>
    %753 = vector.broadcast %752 : vector<1x32xf32> to vector<16x32xf32>
    %754 = arith.addf %750, %753 : vector<16x32xf32>
    %c0_442 = arith.constant 0 : index
    %c0_443 = arith.constant 0 : index
    %755 = vector.load %arg22[%c0_442, %c0_443] : memref<24x8xf32, #tpu.memory_space<vmem>>, vector<24x8xf32>
    %c0_444 = arith.constant 0 : index
    %c0_445 = arith.constant 0 : index
    %756 = vector.load %arg23[%c0_444, %c0_445] : memref<24x8xf32, #tpu.memory_space<vmem>>, vector<24x8xf32>
    %c0_446 = arith.constant 0 : index
    %c0_447 = arith.constant 0 : index
    %757 = vector.load %arg25[%c0_446, %c0_447] : memref<1x32xf32, #tpu.memory_space<vmem>>, vector<1x32xf32>
    %758 = vector.extract_strided_slice %733 {offsets = [0, 0], sizes = [8, 32], strides = [1, 1]} : vector<16x32xf32> to vector<8x32xf32>
    %759 = vector.extract_strided_slice %740 {offsets = [0, 0], sizes = [8, 32], strides = [1, 1]} : vector<16x32xf32> to vector<8x32xf32>
    %760 = vector.extract_strided_slice %747 {offsets = [0, 0], sizes = [8, 32], strides = [1, 1]} : vector<16x32xf32> to vector<8x32xf32>
    %761 = vector.extract_strided_slice %754 {offsets = [0, 0], sizes = [8, 32], strides = [1, 1]} : vector<16x32xf32> to vector<8x32xf32>
    %cst_448 = arith.constant dense<0.000000e+00> : vector<24x32xf32>
    %762 = tpu.matmul %755, %758, %cst_448 {dimension_numbers = #tpu.dot_dimension_numbers<[1], [0], [0], [1], [0, 0, 1, 1], [], []>} : vector<24x8xf32>, vector<8x32xf32>, vector<24x32xf32> -> vector<24x32xf32>
    %cst_449 = arith.constant dense<0.000000e+00> : vector<24x32xf32>
    %763 = tpu.matmul %756, %759, %cst_449 {dimension_numbers = #tpu.dot_dimension_numbers<[1], [0], [0], [1], [0, 0, 1, 1], [], []>} : vector<24x8xf32>, vector<8x32xf32>, vector<24x32xf32> -> vector<24x32xf32>
    %cst_450 = arith.constant dense<0.000000e+00> : vector<24x32xf32>
    %764 = tpu.matmul %755, %760, %cst_450 {dimension_numbers = #tpu.dot_dimension_numbers<[1], [0], [0], [1], [0, 0, 1, 1], [], []>} : vector<24x8xf32>, vector<8x32xf32>, vector<24x32xf32> -> vector<24x32xf32>
    %cst_451 = arith.constant dense<0.000000e+00> : vector<24x32xf32>
    %765 = tpu.matmul %756, %760, %cst_451 {dimension_numbers = #tpu.dot_dimension_numbers<[1], [0], [0], [1], [0, 0, 1, 1], [], []>} : vector<24x8xf32>, vector<8x32xf32>, vector<24x32xf32> -> vector<24x32xf32>
    %cst_452 = arith.constant dense<0.000000e+00> : vector<24x32xf32>
    %766 = tpu.matmul %755, %761, %cst_452 {dimension_numbers = #tpu.dot_dimension_numbers<[1], [0], [0], [1], [0, 0, 1, 1], [], []>} : vector<24x8xf32>, vector<8x32xf32>, vector<24x32xf32> -> vector<24x32xf32>
    %cst_453 = arith.constant dense<0.000000e+00> : vector<24x32xf32>
    %767 = tpu.matmul %756, %761, %cst_453 {dimension_numbers = #tpu.dot_dimension_numbers<[1], [0], [0], [1], [0, 0, 1, 1], [], []>} : vector<24x8xf32>, vector<8x32xf32>, vector<24x32xf32> -> vector<24x32xf32>
    %768 = arith.addf %762, %763 : vector<24x32xf32>
    %769 = arith.subf %764, %765 : vector<24x32xf32>
    %770 = arith.addf %768, %769 : vector<24x32xf32>
    %771 = arith.mulf %766, %767 : vector<24x32xf32>
    %772 = arith.addf %770, %771 : vector<24x32xf32>
    %773 = math.tanh %772 : vector<24x32xf32>
    %774 = vector.broadcast %757 : vector<1x32xf32> to vector<24x32xf32>
    %775 = arith.mulf %773, %774 : vector<24x32xf32>
    %cst_454 = arith.constant dense<0.000000e+00> : vector<24xf32>
    %776 = vector.multi_reduction <add>, %775, %cst_454 [1] : vector<24x32xf32> to vector<24xf32>
    %777 = vector.shape_cast %776 : vector<24xf32> to vector<24x1xf32>
    %c0_455 = arith.constant 0 : index
    %c0_456 = arith.constant 0 : index
    %778 = vector.load %arg26[%c0_455, %c0_456] : memref<1x1xf32, #tpu.memory_space<vmem>>, vector<1x1xf32>
    %779 = vector.broadcast %778 : vector<1x1xf32> to vector<24x1xf32>
    %780 = arith.addf %777, %779 : vector<24x1xf32>
    %c0_457 = arith.constant 0 : index
    %c0_458 = arith.constant 0 : index
    %c0_459 = arith.constant 0 : index
    %781 = vector.load %arg24[%c0_457, %c0_458, %c0_459] : memref<2x24x1xf32, #tpu.memory_space<vmem>>, vector<1x24x1xf32>
    %782 = vector.shape_cast %781 : vector<1x24x1xf32> to vector<24x1xf32>
    %783 = arith.subf %780, %782 : vector<24x1xf32>
    %cst_460 = arith.constant dense<0xFF800000> : vector<1xf32>
    %784 = vector.multi_reduction <maximumf>, %783, %cst_460 [0] : vector<24x1xf32> to vector<1xf32>
    %785 = vector.shape_cast %784 : vector<1xf32> to vector<1x1xf32>
    %786 = vector.broadcast %785 : vector<1x1xf32> to vector<24x1xf32>
    %787 = arith.subf %783, %786 : vector<24x1xf32>
    %788 = math.exp %787 : vector<24x1xf32>
    %cst_461 = arith.constant dense<0.000000e+00> : vector<1xf32>
    %789 = vector.multi_reduction <add>, %788, %cst_461 [0] : vector<24x1xf32> to vector<1xf32>
    %790 = vector.shape_cast %789 : vector<1xf32> to vector<1x1xf32>
    %791 = tpu.reciprocal %790 {approx = true} : vector<1x1xf32> -> vector<1x1xf32>
    %792 = vector.broadcast %791 : vector<1x1xf32> to vector<24x1xf32>
    %793 = arith.mulf %788, %792 : vector<24x1xf32>
    %794 = vector.broadcast %793 : vector<24x1xf32> to vector<24x32xf32>
    %795 = arith.mulf %794, %773 : vector<24x32xf32>
    %cst_462 = arith.constant dense<0.000000e+00> : vector<32xf32>
    %796 = vector.multi_reduction <add>, %795, %cst_462 [0] : vector<24x32xf32> to vector<32xf32>
    %797 = vector.shape_cast %796 : vector<32xf32> to vector<1x32xf32>
    %c0_463 = arith.constant 0 : index
    %c0_464 = arith.constant 0 : index
    %798 = vector.load %arg27[%c0_463, %c0_464] : memref<32x2xf32, #tpu.memory_space<vmem>>, vector<32x2xf32>
    %cst_465 = arith.constant dense<0.000000e+00> : vector<1x2xf32>
    %799 = tpu.matmul %797, %798, %cst_465 {dimension_numbers = #tpu.dot_dimension_numbers<[1], [0], [0], [1], [0, 0, 1, 1], [], []>} : vector<1x32xf32>, vector<32x2xf32>, vector<1x2xf32> -> vector<1x2xf32>
    %c0_466 = arith.constant 0 : index
    %c0_467 = arith.constant 0 : index
    %800 = vector.load %arg28[%c0_466, %c0_467] : memref<1x2xf32, #tpu.memory_space<vmem>>, vector<1x2xf32>
    %801 = arith.addf %799, %800 : vector<1x2xf32>
    %802 = vector.shape_cast %793 : vector<24x1xf32> to vector<1x24x1xf32>
    %803 = vector.extract_strided_slice %733 {offsets = [8, 0], sizes = [8, 32], strides = [1, 1]} : vector<16x32xf32> to vector<8x32xf32>
    %804 = vector.extract_strided_slice %740 {offsets = [8, 0], sizes = [8, 32], strides = [1, 1]} : vector<16x32xf32> to vector<8x32xf32>
    %805 = vector.extract_strided_slice %747 {offsets = [8, 0], sizes = [8, 32], strides = [1, 1]} : vector<16x32xf32> to vector<8x32xf32>
    %806 = vector.extract_strided_slice %754 {offsets = [8, 0], sizes = [8, 32], strides = [1, 1]} : vector<16x32xf32> to vector<8x32xf32>
    %cst_468 = arith.constant dense<0.000000e+00> : vector<24x32xf32>
    %807 = tpu.matmul %755, %803, %cst_468 {dimension_numbers = #tpu.dot_dimension_numbers<[1], [0], [0], [1], [0, 0, 1, 1], [], []>} : vector<24x8xf32>, vector<8x32xf32>, vector<24x32xf32> -> vector<24x32xf32>
    %cst_469 = arith.constant dense<0.000000e+00> : vector<24x32xf32>
    %808 = tpu.matmul %756, %804, %cst_469 {dimension_numbers = #tpu.dot_dimension_numbers<[1], [0], [0], [1], [0, 0, 1, 1], [], []>} : vector<24x8xf32>, vector<8x32xf32>, vector<24x32xf32> -> vector<24x32xf32>
    %cst_470 = arith.constant dense<0.000000e+00> : vector<24x32xf32>
    %809 = tpu.matmul %755, %805, %cst_470 {dimension_numbers = #tpu.dot_dimension_numbers<[1], [0], [0], [1], [0, 0, 1, 1], [], []>} : vector<24x8xf32>, vector<8x32xf32>, vector<24x32xf32> -> vector<24x32xf32>
    %cst_471 = arith.constant dense<0.000000e+00> : vector<24x32xf32>
    %810 = tpu.matmul %756, %805, %cst_471 {dimension_numbers = #tpu.dot_dimension_numbers<[1], [0], [0], [1], [0, 0, 1, 1], [], []>} : vector<24x8xf32>, vector<8x32xf32>, vector<24x32xf32> -> vector<24x32xf32>
    %cst_472 = arith.constant dense<0.000000e+00> : vector<24x32xf32>
    %811 = tpu.matmul %755, %806, %cst_472 {dimension_numbers = #tpu.dot_dimension_numbers<[1], [0], [0], [1], [0, 0, 1, 1], [], []>} : vector<24x8xf32>, vector<8x32xf32>, vector<24x32xf32> -> vector<24x32xf32>
    %cst_473 = arith.constant dense<0.000000e+00> : vector<24x32xf32>
    %812 = tpu.matmul %756, %806, %cst_473 {dimension_numbers = #tpu.dot_dimension_numbers<[1], [0], [0], [1], [0, 0, 1, 1], [], []>} : vector<24x8xf32>, vector<8x32xf32>, vector<24x32xf32> -> vector<24x32xf32>
    %813 = arith.addf %807, %808 : vector<24x32xf32>
    %814 = arith.subf %809, %810 : vector<24x32xf32>
    %815 = arith.addf %813, %814 : vector<24x32xf32>
    %816 = arith.mulf %811, %812 : vector<24x32xf32>
    %817 = arith.addf %815, %816 : vector<24x32xf32>
    %818 = math.tanh %817 : vector<24x32xf32>
    %819 = vector.broadcast %757 : vector<1x32xf32> to vector<24x32xf32>
    %820 = arith.mulf %818, %819 : vector<24x32xf32>
    %cst_474 = arith.constant dense<0.000000e+00> : vector<24xf32>
    %821 = vector.multi_reduction <add>, %820, %cst_474 [1] : vector<24x32xf32> to vector<24xf32>
    %822 = vector.shape_cast %821 : vector<24xf32> to vector<24x1xf32>
    %c0_475 = arith.constant 0 : index
    %c0_476 = arith.constant 0 : index
    %823 = vector.load %arg26[%c0_475, %c0_476] : memref<1x1xf32, #tpu.memory_space<vmem>>, vector<1x1xf32>
    %824 = vector.broadcast %823 : vector<1x1xf32> to vector<24x1xf32>
    %825 = arith.addf %822, %824 : vector<24x1xf32>
    %c1_477 = arith.constant 1 : index
    %c0_478 = arith.constant 0 : index
    %c0_479 = arith.constant 0 : index
    %826 = vector.load %arg24[%c1_477, %c0_478, %c0_479] : memref<2x24x1xf32, #tpu.memory_space<vmem>>, vector<1x24x1xf32>
    %827 = vector.shape_cast %826 : vector<1x24x1xf32> to vector<24x1xf32>
    %828 = arith.subf %825, %827 : vector<24x1xf32>
    %cst_480 = arith.constant dense<0xFF800000> : vector<1xf32>
    %829 = vector.multi_reduction <maximumf>, %828, %cst_480 [0] : vector<24x1xf32> to vector<1xf32>
    %830 = vector.shape_cast %829 : vector<1xf32> to vector<1x1xf32>
    %831 = vector.broadcast %830 : vector<1x1xf32> to vector<24x1xf32>
    %832 = arith.subf %828, %831 : vector<24x1xf32>
    %833 = math.exp %832 : vector<24x1xf32>
    %cst_481 = arith.constant dense<0.000000e+00> : vector<1xf32>
    %834 = vector.multi_reduction <add>, %833, %cst_481 [0] : vector<24x1xf32> to vector<1xf32>
    %835 = vector.shape_cast %834 : vector<1xf32> to vector<1x1xf32>
    %836 = tpu.reciprocal %835 {approx = true} : vector<1x1xf32> -> vector<1x1xf32>
    %837 = vector.broadcast %836 : vector<1x1xf32> to vector<24x1xf32>
    %838 = arith.mulf %833, %837 : vector<24x1xf32>
    %839 = vector.broadcast %838 : vector<24x1xf32> to vector<24x32xf32>
    %840 = arith.mulf %839, %818 : vector<24x32xf32>
    %cst_482 = arith.constant dense<0.000000e+00> : vector<32xf32>
    %841 = vector.multi_reduction <add>, %840, %cst_482 [0] : vector<24x32xf32> to vector<32xf32>
    %842 = vector.shape_cast %841 : vector<32xf32> to vector<1x32xf32>
    %c0_483 = arith.constant 0 : index
    %c0_484 = arith.constant 0 : index
    %843 = vector.load %arg27[%c0_483, %c0_484] : memref<32x2xf32, #tpu.memory_space<vmem>>, vector<32x2xf32>
    %cst_485 = arith.constant dense<0.000000e+00> : vector<1x2xf32>
    %844 = tpu.matmul %842, %843, %cst_485 {dimension_numbers = #tpu.dot_dimension_numbers<[1], [0], [0], [1], [0, 0, 1, 1], [], []>} : vector<1x32xf32>, vector<32x2xf32>, vector<1x2xf32> -> vector<1x2xf32>
    %c0_486 = arith.constant 0 : index
    %c0_487 = arith.constant 0 : index
    %845 = vector.load %arg28[%c0_486, %c0_487] : memref<1x2xf32, #tpu.memory_space<vmem>>, vector<1x2xf32>
    %846 = arith.addf %844, %845 : vector<1x2xf32>
    %847 = vector.shape_cast %838 : vector<24x1xf32> to vector<1x24x1xf32>
    %848 = tpu.concatenate %801, %846 in 0 : vector<1x2xf32>, vector<1x2xf32> -> vector<2x2xf32>
    %c0_488 = arith.constant 0 : index
    %c0_489 = arith.constant 0 : index
    %849 = vector.load %arg29[%c0_488, %c0_489] : memref<2x2xf32, #tpu.memory_space<vmem>>, vector<2x2xf32>
    tpu.vector_store %arg29[%c0_488, %c0_489], %848 {strides = array<i32>} : memref<2x2xf32, #tpu.memory_space<vmem>>, vector<2x2xf32>,
    %850 = tpu.concatenate %802, %847 in 0 : vector<1x24x1xf32>, vector<1x24x1xf32> -> vector<2x24x1xf32>
    %c0_490 = arith.constant 0 : index
    %c0_491 = arith.constant 0 : index
    %c0_492 = arith.constant 0 : index
    %851 = vector.load %arg30[%c0_490, %c0_491, %c0_492] : memref<2x24x1xf32, #tpu.memory_space<vmem>>, vector<2x24x1xf32>
    tpu.vector_store %arg30[%c0_490, %c0_491, %c0_492], %850 {strides = array<i32>} : memref<2x24x1xf32, #tpu.memory_space<vmem>>, vector<2x24x1xf32>,
    return
  }
}

</mosaic_0001>

<bundles_post_ra>
// kernel: explainable_model_forward.1
= control target key start
LH: loop header
LB: loop body
LE: loop exit
PB: predicated region body
PF: predicated region fallthrough
CT: control target
= control target key end

     0   :  { %s4185_s6 = smov 1   ;;  %s4186_s10 = smov 2   ;;  %s5144_s0 = inlined_call_operand.smem [shape: u32[31], index: -1, kind: input, shape index: {}] }
   0x1   :  { %s4226_s5 = sld [smem:[%s5144_s0]]   ;;  %s4187_s14 = smov 3  }
   0x2   :  { %s4231_s9 = sld [smem:[%s5144_s0 + %s4185_s6]]   ;;  %s4188_s18 = smov 4  }
   0x3   :  { %s4236_s13 = sld [smem:[%s5144_s0 + %s4186_s10]]   ;;  %s4189_s22 = smov 5  }
   0x4   :  { %s4241_s17 = sld [smem:[%s5144_s0 + %s4187_s14]]   ;;  %s4190_s26 = smov 6  }
   0x5   :  { %s4246_s21 = sld [smem:[%s5144_s0 + %s4188_s18]]   ;;  %s4191_s30 = smov 7  }
   0x6   :  { %s4251_s25 = sld [smem:[%s5144_s0 + %s4189_s22]]   ;;  %s4192_s4 = smov 8  }
   0x7   :  { %s4256_s29 = sld [smem:[%s5144_s0 + %s4190_s26]]   ;;  %s4193_s10 = smov 9  }
   0x8   :  { %s4261_s3 = sld [smem:[%s5144_s0 + %s4191_s30]]   ;;  %s4194_s15 = smov 10  }
   0x9   :  { %s4266_s8 = sld [smem:[%s5144_s0 + %s4192_s4]]   ;;  %s4195_s20 = smov 11  }
   0xa   :  { %s4271_s14 = sld [smem:[%s5144_s0 + %s4193_s10]]   ;;  %s4196_s26 = smov 12  }
   0xb   :  { %s4276_s19 = sld [smem:[%s5144_s0 + %s4194_s15]]   ;;  %s4197_s1 = smov 13  }
   0xc   :  { %s4281_s24 = sld [smem:[%s5144_s0 + %s4195_s20]]   ;;  %s4198_s7 = smov 14  }
   0xd   :  { %s4286_s30 = sld [smem:[%s5144_s0 + %s4196_s26]]   ;;  %s4199_s15 = smov 15  }
   0xe   :  { %s4291_s6 = sld [smem:[%s5144_s0 + %s4197_s1]]   ;;  %s4200_s22 = smov 16  }
   0xf   :  { %s4296_s12 = sld [smem:[%s5144_s0 + %s4198_s7]]   ;;  %s4201_s28 = smov 17  }
  0x10   :  { %s4301_s20 = sld [smem:[%s5144_s0 + %s4199_s15]]   ;;  %s4202_s7 = smov 18  }
  0x11   :  { %s4306_s27 = sld [smem:[%s5144_s0 + %s4200_s22]]   ;;  %s4203_s15 = smov 19  }
  0x12   :  { %s4311_s4 = sld [smem:[%s5144_s0 + %s4201_s28]]   ;;  %s4204_s22 = smov 20  }
  0x13   :  { %5157 = sst [smem:[#allocation6_spill]] %s4286_s30  ;;  %s4205_s28 = smov 21  }
  0x14   :  { %5158 = sst [smem:[#allocation7_spill]] %s4291_s6  ;;  %s4211_s16 = smov 27  }
  0x15   :  { %s4316_s6 = sld [smem:[%s5144_s0 + %s4202_s7]]   ;;  %s4206_s7 = smov 22  }
  0x16   :  { %5159 = sst [smem:[#allocation8_spill]] %s4301_s20  ;;  %s4212_s23 = smov 28  }
  0x17   :  { %5160 = sst [smem:[#allocation9_spill]] %s4306_s27  ;;  %s4213_s1 = smov 29  }
  0x18   :  { %5161 = sst [smem:[#allocation10_spill]] %s4311_s4  ;;  %s4214_s10 = smov 30  }
  0x19   :  { %s4321_s20 = sld [smem:[%s5144_s0 + %s4203_s15]]   ;;  %s4207_s15 = smov 23  }
  0x1a   :  { %s4326_s27 = sld [smem:[%s5144_s0 + %s4204_s22]]   ;;  %s4208_s22 = smov 24  }
  0x1b   :  { %5162 = sst [smem:[#allocation11_spill]] %s4316_s6 }
  0x1c   :  { %s4331_s4 = sld [smem:[%s5144_s0 + %s4205_s28]]   ;;  %s4209_s28 = smov 25  }
  0x1d   :  { %s4336_s6 = sld [smem:[%s5144_s0 + %s4206_s7]]   ;;  %s4210_s7 = smov 26  }
  0x1e   :  { %s4374_s30 = sld [smem:[%s5144_s0 + %s4214_s10]]  }
  0x1f   :  { %5163 = sst [smem:[#allocation12_spill]] %s4321_s20 }
  0x20   :  { %5164 = sst [smem:[#allocation13_spill]] %s4326_s27 }
  0x21   :  { %s4341_s20 = sld [smem:[%s5144_s0 + %s4207_s15]]  }
  0x22   :  { %5165 = sst [smem:[#allocation14_spill]] %s4331_s4 }
  0x23   :  { %5166 = sst [smem:[#allocation15_spill]] %s4336_s6 }
  0x24   :  { %s4346_s27 = sld [smem:[%s5144_s0 + %s4208_s22]]  }
  0x25   :  { %s4351_s4 = sld [smem:[%s5144_s0 + %s4209_s28]]  }
  0x26   :  { %s3626_s6 = sld [smem:[%s5144_s0 + %s4210_s7]]  }
  0x27   :  { %5167 = sst [smem:[#allocation16_spill]] %s4341_s20 }
  0x28   :  { %s4359_s20 = sld [smem:[%s5144_s0 + %s4211_s16]]  }
  0x2a   :  { %5168 = sst [smem:[#allocation17_spill]] %s4346_s27 }
  0x2b   :  { %5169 = sst [smem:[#allocation18_spill]] %s4351_s4 }
  0x2c   :  { %s4364_s27 = sld [smem:[%s5144_s0 + %s4212_s23]]   ;;  %v67_v0 = vstv %s3626_s6 }
  0x2d   :  { %s4369_s4 = sld [smem:[%s5144_s0 + %s4213_s1]]   ;;  %68 = vst [vmem:[#allocation2] sm:$0x1] %v67_v0 }
  0x2e   :  { %v129_v1 = vld [vmem:[%s4226_s5 + $0x8] sm:$0xff]  ;;  %vm132_vm0 = vcmask 261120   ;;  %v128_v2 = vld [vmem:[%s4226_s5] sm:$0xff] }
  0x2f   :  { %v136_v3 = vsel %vm132_vm0, %v129_v1, 0.0  ;;  %v133_v4 = vsel %vm132_vm0, %v128_v2, 0.0 }
  0x30   :  { %137 = vadd.xlane.f32.xlu1 %v136_v3  ;;  %134 = vadd.xlane.f32.xlu0 %v133_v4 }
  0x31   :  { %69 = vsyncpa [#allocation4], 0  ;;  %v4215_v5 = vmov 32.0   ;;  %v197_v22 = vld [vmem:[%s4246_s21 + $0x18] sm:$0xff]  ;;  %v196_v25 = vld [vmem:[%s4246_s21 + $0x10] sm:$0xff]  ;;  %vm293_vm8 = vcmask 64512  }
  0x32   :  { %4035 = vrcp.f32 %v4215_v5  ;;  %v234_v23 = vld [vmem:[%s4256_s29 + $0x18] sm:$0xff]  ;;  %220 = vmatpush.msra.mxu0 %v197_v22  ;;  %v233_v26 = vld [vmem:[%s4256_s29 + $0x10] sm:$0xff]  ;;  %v195_v28 = vld [vmem:[%s4246_s21 + $0x8] sm:$0xff]  ;;  %s5170_s0 = sld [smem:[#allocation6_spill]] }
  0x33   :  { %v265_v24 = vld [vmem:[%s4266_s8 + $0x18] sm:$0xff]  ;;  %251 = vmatpush.msra.mxu1 %v234_v23  ;;  %v264_v27 = vld [vmem:[%s4266_s8 + $0x10] sm:$0xff]  ;;  %v232_v29 = vld [vmem:[%s4256_s29 + $0x8] sm:$0xff]  ;;  %s5171_s5 = sld [smem:[#allocation7_spill]] }
  0x34   :  { %282 = vmatpush.msra.mxu2 %v265_v24  ;;  %221 = vmatpush.msra.mxu0 %v196_v25  ;;  %v263_v30 = vld [vmem:[%s4266_s8 + $0x8] sm:$0xff]  ;;  %v194_v31 = vld [vmem:[%s4246_s21] sm:$0xff]  ;;  %v3647_v40 = vld [vmem:[%s4246_s21 + $0x38] sm:$0xff]  ;;  %s5174_s6 = sld [smem:[#allocation10_spill]] }
  0x35   :  { %252 = vmatpush.msra.mxu1 %v233_v26  ;;  %v231_v32 = vld [vmem:[%s4256_s29] sm:$0xff]  ;;  %v3646_v41 = vld [vmem:[%s4246_s21 + $0x30] sm:$0xff]  ;;  %v3645_v42 = vld [vmem:[%s4246_s21 + $0x28] sm:$0xff]  ;;  %s5175_s16 = sld [smem:[#allocation11_spill]] }
  0x36   :  { %283 = vmatpush.msra.mxu2 %v264_v27  ;;  %222 = vmatpush.msra.mxu0 %v195_v28  ;;  %v262_v33 = vld [vmem:[%s4266_s8] sm:$0xff]  ;;  %s5176_s15 = sld [smem:[#allocation12_spill]] }
  0x37   :  { %253 = vmatpush.msra.mxu1 %v232_v29  ;;  %v3644_v44 = vld [vmem:[%s4246_s21 + $0x20] sm:$0xff] }
  0x38   :  { %v4036_v6 = vpop.eup %4035  ;;  %284 = vmatpush.msra.mxu2 %v263_v30  ;;  %223 = vmatpush.msra.mxu0 %v194_v31  ;;  %v3987_v56 = vld [vmem:[%s4236_s13] ss:$0 sm:$0xff]  ;;  %v3994_v25 = vld [vmem:[%s4261_s3 + $0x1] ss:$0 sm:$0xff]  ;;  %s5172_s13 = sld [smem:[#allocation8_spill]] }
  0x39   :  { %v140_v7 = vmul.f32 32.0, %v4036_v6  ;;  %vm144_vm1 = vweird.f32 %v4036_v6  ;;  %254 = vmatpush.msra.mxu1 %v231_v32  ;;  %v3988_v58 = vld [vmem:[%s4241_s17] ss:$0 sm:$0xff]  ;;  %v3679_v32 = vld [vmem:[%s4246_s21 + $0x58] sm:$0xff]  ;;  %s5173_s17 = sld [smem:[#allocation9_spill]] }
  0x3a   :  { %285 = vmatpush.msra.mxu2 %v262_v33  ;;  %v4438_v3 = vld [vmem:[%s4251_s25] ss:$0 sm:$0xff]  ;;  %v4464_v33 = vld [vmem:[%s4251_s25 + $0x1] ss:$0 sm:$0xff] }
  0x3b   :  { %v141_v8 = vsub.f32 1.0, %v140_v7  ;;  %450 = vmatpush.msrb.mxu1 %v3647_v40  ;;  %v3654_v7 = vld [vmem:[%s4256_s29 + $0x38] sm:$0xff] }
  0x3d   :  { %v142_v9 = vmul.f32 %v4036_v6, %v141_v8  ;;  %451 = vmatpush.msrb.mxu1 %v3646_v41 }
  0x3f   :  { %v143_v10 = vadd.f32 %v4036_v6, %v142_v9  ;;  %452 = vmatpush.msrb.mxu1 %v3645_v42  ;;  %v3991_v9 = vld [vmem:[%s4271_s14] ss:$0 sm:$0xff] }
  0x41   :  { %v4380_v11 = vsel %vm144_vm1, %v4036_v6, %v143_v10  ;;  %453 = vmatpush.msrb.mxu1 %v3644_v44  ;;  %v3653_v10 = vld [vmem:[%s4256_s29 + $0x30] sm:$0xff] }
  0xa3   :  { %v138_v12 = vpop.xlane.xlu1 %137  ;;  %v135_v13 = vpop.xlane.xlu0 %134 }
  0xa4   :  { %v147_v14 = vmul.f32 %v4380_v11, %v138_v12  ;;  %v146_v15 = vmul.f32 %v4380_v11, %v135_v13  ;;  %v3652_v12 = vld [vmem:[%s4256_s29 + $0x28] sm:$0xff] }
  0xa6   :  { %v4384_v16 = vsub.f32 %v129_v1, %v147_v14  ;;  %v4386_v17 = vsub.f32 %v128_v2, %v146_v15  ;;  %v3990_v2 = vld [vmem:[%s4261_s3] ss:$0 sm:$0xff] }
  0xa8   :  { %v151_v18 = vmul.f32 %v4384_v16, %v4384_v16  ;;  %v150_v19 = vmul.f32 %v4386_v17, %v4386_v17 }
  0xaa   :  { %v155_v20 = vsel %vm132_vm0, %v151_v18, 0.0  ;;  %v152_v21 = vsel %vm132_vm0, %v150_v19, 0.0 }
  0xab   :  { %156 = vadd.xlane.f32.xlu1 %v155_v20  ;;  %153 = vadd.xlane.f32.xlu0 %v152_v21  ;;  %v4454_v20 = vld [vmem:[%s4231_s9] ss:$0 sm:$0xff] }
 0x11e   :  { %v157_v34 = vpop.xlane.xlu1 %156  ;;  %v154_v35 = vpop.xlane.xlu0 %153 }
 0x11f   :  { %v159_v36 = vmul.f32 %v157_v34, %v4380_v11  ;;  %v158_v37 = vmul.f32 %v154_v35, %v4380_v11  ;;  %v3678_v35 = vld [vmem:[%s4246_s21 + $0x50] sm:$0xff] }
 0x121   :  { %v161_v38 = vadd.f32 1e-05, %v159_v36  ;;  %v160_v39 = vadd.f32 1e-05, %v158_v37  ;;  %v3677_v36 = vld [vmem:[%s4246_s21 + $0x48] sm:$0xff]  ;;  %v3676_v37 = vld [vmem:[%s4246_s21 + $0x40] sm:$0xff] }
 0x123   :  { %4037 = vrsqrt.f32 %v161_v38  ;;  %vm178_vm2 = vweird.f32 %v161_v38  ;;  %vm168_vm6 = vweird.f32 %v160_v39 }
 0x124   :  { %4039 = vrsqrt.f32 %v160_v39 }
 0x129   :  { %v4038_v43 = vpop.eup %4037 }
 0x12a   :  { %v4040_v45 = vpop.eup %4039  ;;  %v173_v46 = vmul.f32 %v4038_v43, %v161_v38  ;;  %vm179_vm3 = vweird.f32 %v4038_v43 }
 0x12b   :  { %v163_v47 = vmul.f32 %v4040_v45, %v160_v39  ;;  %vm169_vm4 = vweird.f32 %v4040_v45  ;;  %vm180_vm5 = vmor %vm178_vm2, %vm179_vm3 }
 0x12c   :  { %v174_v48 = vmul.f32 %v4038_v43, %v173_v46  ;;  %vm170_vm7 = vmor %vm168_vm6, %vm169_vm4 }
 0x12d   :  { %v164_v49 = vmul.f32 %v4040_v45, %v163_v47 }
 0x12e   :  { %v175_v50 = vmul.f32 0.5, %v174_v48 }
 0x12f   :  { %v165_v51 = vmul.f32 0.5, %v164_v49 }
 0x130   :  { %v176_v52 = vsub.f32 1.5, %v175_v50 }
 0x131   :  { %v166_v53 = vsub.f32 1.5, %v165_v51  ;;  %v3661_v51 = vld [vmem:[%s4266_s8 + $0x38] sm:$0xff] }
 0x132   :  { %v177_v54 = vmul.f32 %v4038_v43, %v176_v52  ;;  %v3660_v52 = vld [vmem:[%s4266_s8 + $0x30] sm:$0xff] }
 0x133   :  { %v167_v55 = vmul.f32 %v4040_v45, %v166_v53  ;;  %v3659_v53 = vld [vmem:[%s4266_s8 + $0x28] sm:$0xff] }
 0x134   :  { %v181_v60 = vsel %vm180_vm5, %v4038_v43, %v177_v54  ;;  %v4478_v43 = vld [vmem:[%s4231_s9 + $0x1] ss:$0 sm:$0xff]  ;;  %vm1424_vm5 = vcmask 523264  }
 0x135   :  { %v171_v57 = vsel %vm170_vm7, %v4040_v45, %v167_v55  ;;  %v183_v62 = vmul.f32 %v181_v60, %v4384_v16  ;;  %v3651_v16 = vld [vmem:[%s4256_s29 + $0x20] sm:$0xff] }
 0x136   :  { %v182_v59 = vmul.f32 %v171_v57, %v4386_v17  ;;  %v3658_v55 = vld [vmem:[%s4266_s8 + $0x20] sm:$0xff] }
 0x137   :  { %v188_v0 = vmul.f32 %v3987_v56, %v183_v62 }
 0x138   :  { %v187_v61 = vmul.f32 %v3987_v56, %v182_v59 }
 0x139   :  { %v4424_v1 = vadd.f32 %v3988_v58, %v188_v0 }
 0x13a   :  { %v4416_v63 = vadd.f32 %v3988_v58, %v187_v61 }
 0x13c   :  { %3631 = vmatmul.msk.f32.vlgmr.msra.gmra.mxu0 %vm132_vm0, %v4416_v63  ;;  %3633 = vmatmul.msk.f32.vlgmr.msra.gmra.mxu1 %vm132_vm0, %v4416_v63 }
 0x13d   :  { %3635 = vmatmul.msk.f32.vlgmr.msra.gmra.mxu2 %vm132_vm0, %v4416_v63 }
 0x144   :  { %3632 = vmatmul.msk.f32.gmra.mxu0 %vm132_vm0, %v4424_v1  ;;  %3634 = vmatmul.msk.f32.gmra.mxu1 %vm132_vm0, %v4424_v1 }
 0x145   :  { %3636 = vmatmul.msk.f32.gmra.mxu2 %vm132_vm0, %v4424_v1 }
 0x14c   :  { %3649 = vmatmul.msk.f32.vlgmr.msrb.gmra.mxu1 %vm132_vm0, %v4416_v63 }
 0x154   :  { %3650 = vmatmul.msk.f32.gmra.mxu1 %vm132_vm0, %v4424_v1 }
 0x1b9   :  { %v256_v4 = vpop.f32.mrf.mxu1  ;;  %v225_v5 = vpop.f32.mrf.mxu0 }
 0x1ba   :  { %v257_v6 = vadd.f32 %v3990_v2, %v256_v4  ;;  %v226_v8 = vadd.f32 %v4438_v3, %v225_v5 }
 0x1bc   :  { %3637 = vmatpush.xpose.msk.msrb.mxu2 %vm293_vm8, %v257_v6  ;;  %v3997_v6 = vld [vmem:[%s4271_s14 + $0x1] ss:$0 sm:$0xff] }
 0x1bf   :  { %3638 = vmatmul.msk.f32.vlgmr.msrb.gmra.mxu2 %vm293_vm8, %v226_v8 }
 0x1c0   :  { %483 = vmatpush.msra.mxu2 %v3654_v7  ;;  %v287_v13 = vpop.f32.mrf.mxu2 }
 0x1c1   :  { %v259_v14 = vpop.f32.mrf.mxu1  ;;  %v288_v15 = vadd.f32 %v3991_v9, %v287_v13  ;;  %v228_v54 = vpop.f32.mrf.mxu0  ;;  %v3683_v13 = vld [vmem:[%s4256_s29 + $0x40] sm:$0xff] }
 0x1c2   :  { %484 = vmatpush.msra.mxu2 %v3653_v10  ;;  %v260_v17 = vadd.f32 %v3990_v2, %v259_v14  ;;  %v229_v56 = vadd.f32 %v4438_v3, %v228_v54  ;;  %v3685_v10 = vld [vmem:[%s4256_s29 + $0x50] sm:$0xff] }
 0x1c3   :  { %355 = vmatpush.msra.mxu3 %v288_v15 }
 0x1c4   :  { %485 = vmatpush.msra.mxu2 %v3652_v12  ;;  %v3684_v12 = vld [vmem:[%s4256_s29 + $0x48] sm:$0xff] }
 0x1c5   :  { %3640 = vmatpush.xpose.msk.msrb.mxu3 %vm293_vm8, %v260_v17 }
 0x1c6   :  { %486 = vmatpush.msra.mxu2 %v3651_v16 }
 0x1c7   :  { %3656 = vmatmul.msk.f32.vlgmr.msra.gmra.mxu2 %vm132_vm0, %v4416_v63 }
 0x1c8   :  { %v290_v18 = vpop.f32.mrf.mxu2 }
 0x1c9   :  { %v291_v19 = vadd.f32 %v3991_v9, %v290_v18  ;;  %v4459_v26 = vpop.f32.mrf.mxu1  ;;  %v3686_v9 = vld [vmem:[%s4256_s29 + $0x58] sm:$0xff] }
 0x1cb   :  { %422 = vmatpush.msrb.mxu0 %v291_v19 }
 0x1cf   :  { %3657 = vmatmul.msk.f32.gmra.mxu2 %vm132_vm0, %v4424_v1 }
 0x1d1   :  { %v458_v30 = vpop.f32.mrf.mxu1 }
 0x1d2   :  { %v459_v34 = vadd.f32 %v4464_v33, %v458_v30 }
 0x242   :  { %v317_v21 = vpop.f32.mrf.mxu2 }
 0x243   :  { %v320_v22 = vmul.f32 0.35355338, %v317_v21 }
 0x245   :  { %v325_v23 = vadd.f32 %v4454_v20, %v320_v22 }
 0x247   :  { %v326_v24 = vsel %vm293_vm8, %v325_v23, -inf }
 0x248   :  { %327 = vmax.xlane.f32.xlu2 %v326_v24 }
 0x24a   :  { %v488_v27 = vpop.f32.mrf.mxu2 }
 0x24b   :  { %v489_v28 = vadd.f32 %v3994_v25, %v488_v27 }
 0x24d   :  { %3665 = vmatpush.xpose.msk.msra.mxu0 %vm293_vm8, %v489_v28  ;;  %v456_v28 = vadd.f32 %v4464_v33, %v4459_v26  ;;  %v3707_v26 = vld [vmem:[%s4246_s21 + $0x68] sm:$0xff]  ;;  %v3706_v33 = vld [vmem:[%s4246_s21 + $0x60] sm:$0xff] }
 0x252   :  { %v491_v29 = vpop.f32.mrf.mxu2 }
 0x253   :  { %v492_v31 = vadd.f32 %v3994_v25, %v491_v29 }
 0x255   :  { %3668 = vmatpush.xpose.msk.msra.mxu1 %vm293_vm8, %v492_v31 }
 0x258   :  { %3669 = vmatmul.msk.f32.vlgmr.msra.gmra.mxu1 %vm293_vm8, %v459_v34 }
 0x259   :  { %733 = vmatpush.msrb.mxu1 %v3679_v32  ;;  %v3998_v32 = vld [vmem:[%s4261_s3 + $0x2] ss:$0 sm:$0xff] }
 0x25b   :  { %734 = vmatpush.msrb.mxu1 %v3678_v35 }
 0x25d   :  { %735 = vmatpush.msrb.mxu1 %v3677_v36 }
 0x25f   :  { %736 = vmatpush.msrb.mxu1 %v3676_v37  ;;  %v3709_v37 = vld [vmem:[%s4246_s21 + $0x78] sm:$0xff] }
 0x260   :  { %3681 = vmatmul.msk.f32.vlgmr.msrb.gmra.mxu1 %vm132_vm0, %v4416_v63 }
 0x268   :  { %3682 = vmatmul.msk.f32.gmra.mxu1 %vm132_vm0, %v4424_v1 }
 0x2bb   :  { %v328_v38 = vpop.xlane.xlu2 %327 }
 0x2bc   :  { %v329_v39 = vsub.f32 %v325_v23, %v328_v38  ;;  %v3996_v38 = vld [vmem:[%s4251_s25 + $0x2] ss:$0 sm:$0xff] }
 0x2be   :  { %v330_v40 = vmul.f32 1.442695, %v329_v39 }
 0x2c0   :  { %4041 = vpow2.f32 %v330_v40  ;;  %v3708_v40 = vld [vmem:[%s4246_s21 + $0x70] sm:$0xff] }
 0x2c6   :  { %v4042_v41 = vpop.eup %4041 }
 0x2c7   :  { %v332_v42 = vsel %vm293_vm8, %v4042_v41, 0.0 }
 0x2c8   :  { %333 = vadd.xlane.f32.xlu2 %v332_v42 }
 0x2d5   :  { %v612_v44 = vpop.f32.mrf.mxu1 }
 0x2d6   :  { %v615_v45 = vmul.f32 0.35355338, %v612_v44 }
 0x2d8   :  { %v616_v46 = vadd.f32 %v4478_v43, %v615_v45 }
 0x2da   :  { %v617_v47 = vsel %vm293_vm8, %v616_v46, -inf }
 0x2db   :  { %618 = vmax.xlane.f32.xlu2 %v617_v47 }
 0x2dd   :  { %v738_v30 = vpop.f32.mrf.mxu1 }
 0x2e5   :  { %v741_v35 = vpop.f32.mrf.mxu1 }
 0x2e6   :  { %v742_v39 = vadd.f32 %v3996_v38, %v741_v35 }
 0x33b   :  { %v334_v48 = vpop.xlane.xlu2 %333 }
 0x33c   :  { %4043 = vrcp.f32 %v334_v48 }
 0x342   :  { %v4044_v49 = vpop.eup %4043 }
 0x343   :  { %v336_v50 = vmul.f32 %v4044_v49, %v4042_v41 }
 0x345   :  { %3639 = vmatmul.msk.f32.vlgmr.msra.gmra.mxu3 %vm293_vm8, %v336_v50 }
 0x346   :  { %516 = vmatpush.msra.mxu3 %v3661_v51 }
 0x348   :  { %517 = vmatpush.msra.mxu3 %v3660_v52 }
 0x34a   :  { %518 = vmatpush.msra.mxu3 %v3659_v53 }
 0x34c   :  { %519 = vmatpush.msra.mxu3 %v3658_v55 }
 0x34d   :  { %3641 = vmatmul.msk.f32.vlgmr.msrb.gmra.mxu3 %vm293_vm8, %v229_v56  ;;  %v427_v56 = vld [vmem:[%s4276_s19] sm:$0xff] }
 0x34e   :  { %v619_v58 = vpop.xlane.xlu2 %618 }
 0x34f   :  { %v620_v59 = vsub.f32 %v616_v46, %v619_v58 }
 0x351   :  { %v621_v60 = vmul.f32 1.442695, %v620_v59 }
 0x353   :  { %4045 = vpow2.f32 %v621_v60 }
 0x355   :  { %3663 = vmatmul.msk.f32.vlgmr.msra.gmra.mxu3 %vm132_vm0, %v4416_v63 }
 0x359   :  { %v4046_v4 = vpop.eup %4045 }
 0x35a   :  { %v623_v5 = vsel %vm293_vm8, %v4046_v4, 0.0 }
 0x35d   :  { %3664 = vmatmul.msk.f32.gmra.mxu3 %vm132_vm0, %v4424_v1 }
 0x3c8   :  { %v4493_v57 = vpop.f32.mrf.mxu3 }
 0x3d0   :  { %v383_v61 = vpop.f32.mrf.mxu3 }
 0x3d1   :  { %v386_v62 = vmul.f32 0.35355338, %v383_v61 }
 0x3d3   :  { %v392_v0 = vadd.f32 %v4478_v43, %v386_v62  ;;  %v739_v62 = vadd.f32 %v3996_v38, %v738_v30  ;;  %v3723_v38 = vld [vmem:[%s4266_s8 + $0x78] sm:$0xff] }
 0x3d5   :  { %v393_v2 = vsel %vm293_vm8, %v392_v0, -inf }
 0x3d6   :  { %394 = vmax.xlane.f32.xlu0 %v393_v2  ;;  %v3693_v2 = vld [vmem:[%s4266_s8 + $0x58] sm:$0xff] }
 0x3d8   :  { %v521_v3 = vpop.f32.mrf.mxu3 }
 0x3d9   :  { %v522_v27 = vadd.f32 %v3997_v6, %v521_v3  ;;  %v3692_v3 = vld [vmem:[%s4266_s8 + $0x50] sm:$0xff] }
 0x3de   :  { %624 = vadd.xlane.f32.xlu0 %v623_v5  ;;  %v3690_v5 = vld [vmem:[%s4266_s8 + $0x40] sm:$0xff] }
 0x3e0   :  { %v524_v7 = vpop.f32.mrf.mxu3 }
 0x3e1   :  { %v525_v8 = vadd.f32 %v3997_v6, %v524_v7  ;;  %v3716_v6 = vld [vmem:[%s4256_s29 + $0x78] sm:$0xff]  ;;  %v3715_v7 = vld [vmem:[%s4256_s29 + $0x70] sm:$0xff] }
 0x3e3   :  { %646 = vmatpush.msrb.mxu2 %v525_v8  ;;  %v3714_v8 = vld [vmem:[%s4256_s29 + $0x68] sm:$0xff] }
 0x3e5   :  { %766 = vmatpush.msra.mxu2 %v3686_v9  ;;  %v3713_v9 = vld [vmem:[%s4256_s29 + $0x60] sm:$0xff] }
 0x3e7   :  { %767 = vmatpush.msra.mxu2 %v3685_v10 }
 0x3e9   :  { %768 = vmatpush.msra.mxu2 %v3684_v12 }
 0x3eb   :  { %769 = vmatpush.msra.mxu2 %v3683_v13 }
 0x449   :  { %v395_v14 = vpop.xlane.xlu0 %394 }
 0x44a   :  { %v396_v15 = vsub.f32 %v392_v0, %v395_v14  ;;  %v3671_v0 = vld [vmem:[%s4276_s19 + $0x8] sm:$0xff] }
 0x44b   :  { %674 = vmatpush.msrb.mxu3 %v3671_v0 }
 0x44c   :  { %v397_v16 = vmul.f32 1.442695, %v396_v15 }
 0x44d   :  { %799 = vmatpush.msra.mxu3 %v3693_v2 }
 0x44e   :  { %4047 = vpow2.f32 %v397_v16 }
 0x44f   :  { %800 = vmatpush.msra.mxu3 %v3692_v3 }
 0x451   :  { %v625_v17 = vpop.xlane.xlu0 %624 }
 0x452   :  { %4049 = vrcp.f32 %v625_v17 }
 0x454   :  { %v4048_v18 = vpop.eup %4047 }
 0x455   :  { %v399_v19 = vsel %vm293_vm8, %v4048_v18, 0.0 }
 0x456   :  { %400 = vadd.xlane.f32.xlu1 %v399_v19 }
 0x458   :  { %v4050_v21 = vpop.eup %4049 }
 0x459   :  { %v627_v22 = vmul.f32 %v4050_v21, %v4046_v4  ;;  %v3691_v4 = vld [vmem:[%s4266_s8 + $0x48] sm:$0xff] }
 0x45a   :  { %801 = vmatpush.msra.mxu3 %v3691_v4 }
 0x45b   :  { %3670 = vmatmul.msk.f32.vlgmr.msrb.gmra.mxu2 %vm293_vm8, %v627_v22 }
 0x45c   :  { %802 = vmatpush.msra.mxu3 %v3690_v5 }
 0x463   :  { %3688 = vmatmul.msk.f32.vlgmr.msra.gmra.mxu2 %vm132_vm0, %v4416_v63 }
 0x46b   :  { %3689 = vmatmul.msk.f32.gmra.mxu2 %vm132_vm0, %v4424_v1 }
 0x4c9   :  { %v401_v23 = vpop.xlane.xlu1 %400 }
 0x4ca   :  { %4051 = vrcp.f32 %v401_v23 }
 0x4d0   :  { %v4052_v24 = vpop.eup %4051 }
 0x4d1   :  { %v403_v25 = vmul.f32 %v4052_v24, %v4048_v18 }
 0x4d3   :  { %3643 = vmatmul.msk.f32.vlgmr.msrb.gmra.mxu0 %vm293_vm8, %v403_v25 }
 0x4d4   :  { %584 = vmatpush.msrb.mxu0 %v522_v27  ;;  %v4000_v27 = vld [vmem:[%s4271_s14 + $0x2] ss:$0 sm:$0xff] }
 0x4db   :  { %3666 = vmatmul.msk.f32.vlgmr.msra.gmra.mxu0 %vm293_vm8, %v456_v28 }
 0x4dc   :  { %703 = vmatpush.msra.mxu0 %v427_v56 }
 0x4de   :  { %v4513_v29 = vpop.f32.mrf.mxu2 }
 0x4e6   :  { %v771_v31 = vpop.f32.mrf.mxu2 }
 0x4e7   :  { %v772_v61 = vadd.f32 %v3998_v32, %v771_v31 }
 0x4ee   :  { %v774_v34 = vpop.f32.mrf.mxu2 }
 0x4ef   :  { %v775_v36 = vadd.f32 %v3998_v32, %v774_v34 }
 0x4f1   :  { %3700 = vmatpush.xpose.msk.msrb.mxu2 %vm293_vm8, %v775_v36 }
 0x4f4   :  { %3701 = vmatmul.msk.f32.vlgmr.msrb.gmra.mxu2 %vm293_vm8, %v742_v39  ;;  %v3722_v39 = vld [vmem:[%s4266_s8 + $0x70] sm:$0xff] }
 0x4f5   :  { %989 = vmatpush.msra.mxu2 %v3709_v37 }
 0x4f7   :  { %990 = vmatpush.msra.mxu2 %v3708_v40 }
 0x4f9   :  { %991 = vmatpush.msra.mxu2 %v3707_v26 }
 0x4fb   :  { %992 = vmatpush.msra.mxu2 %v3706_v33  ;;  %v3721_v33 = vld [vmem:[%s4266_s8 + $0x68] sm:$0xff] }
 0x4fc   :  { %3711 = vmatmul.msk.f32.vlgmr.msra.gmra.mxu2 %vm132_vm0, %v4416_v63 }
 0x504   :  { %3712 = vmatmul.msk.f32.gmra.mxu2 %vm132_vm0, %v4424_v1 }
 0x550   :  { %v424_v41 = vpop.f32.mrf.mxu0 }
 0x558   :  { %v550_v42 = vpop.f32.mrf.mxu0 }
 0x559   :  { %v553_v44 = vmul.f32 0.35355338, %v550_v42  ;;  %v3720_v42 = vld [vmem:[%s4266_s8 + $0x60] sm:$0xff] }
 0x55b   :  { %v554_v45 = vadd.f32 %v4454_v20, %v553_v44 }
 0x55d   :  { %v555_v46 = vsel %vm293_vm8, %v554_v45, -inf }
 0x55e   :  { %556 = vmax.xlane.f32.xlu1 %v555_v46 }
 0x577   :  { %v895_v47 = vpop.f32.mrf.mxu2 }
 0x578   :  { %v898_v48 = vmul.f32 0.35355338, %v895_v47 }
 0x57a   :  { %v899_v49 = vadd.f32 %v4478_v43, %v898_v48 }
 0x57c   :  { %v900_v50 = vsel %vm293_vm8, %v899_v49, -inf }
 0x57d   :  { %901 = vmax.xlane.f32.xlu1 %v900_v50 }
 0x5d1   :  { %v557_v51 = vpop.xlane.xlu1 %556 }
 0x5d2   :  { %v558_v52 = vsub.f32 %v554_v45, %v557_v51  ;;  %v4001_v45 = vld [vmem:[%s4261_s3 + $0x3] ss:$0 sm:$0xff]  ;;  %v3703_v51 = vld [vmem:[%s4276_s19 + $0x10] sm:$0xff] }
 0x5d4   :  { %v559_v53 = vmul.f32 1.442695, %v558_v52 }
 0x5d6   :  { %4053 = vpow2.f32 %v559_v53 }
 0x5dc   :  { %v4054_v54 = vpop.eup %4053 }
 0x5dd   :  { %v561_v55 = vsel %vm293_vm8, %v4054_v54, 0.0 }
 0x5de   :  { %562 = vadd.xlane.f32.xlu2 %v561_v55 }
 0x5f0   :  { %v902_v13 = vpop.xlane.xlu1 %901 }
 0x5f1   :  { %v903_v14 = vsub.f32 %v899_v49, %v902_v13  ;;  %v3999_v49 = vld [vmem:[%s4251_s25 + $0x3] ss:$0 sm:$0xff] }
 0x5f3   :  { %v904_v15 = vmul.f32 1.442695, %v903_v14 }
 0x651   :  { %v563_v58 = vpop.xlane.xlu2 %562 }
 0x652   :  { %4055 = vrcp.f32 %v563_v58  ;;  %v4002_v58 = vld [vmem:[%s4271_s14 + $0x3] ss:$0 sm:$0xff] }
 0x653   :  { %4057 = vpow2.f32 %v904_v15 }
 0x658   :  { %v4056_v59 = vpop.eup %4055 }
 0x659   :  { %v565_v60 = vmul.f32 %v4056_v59, %v4054_v54  ;;  %v4058_v21 = vpop.eup %4057 }
 0x65a   :  { %v906_v22 = vsel %vm293_vm8, %v4058_v21, 0.0 }
 0x65b   :  { %3667 = vmatmul.msk.f32.vlgmr.msrb.gmra.mxu0 %vm293_vm8, %v565_v60 }
 0x65c   :  { %3697 = vmatpush.xpose.msk.msrb.mxu0 %vm293_vm8, %v772_v61 }
 0x663   :  { %3674 = vmatmul.msk.f32.vlgmr.msra.gmra.mxu0 %vm293_vm8, %v4493_v57 }
 0x66b   :  { %3675 = vmatmul.msk.f32.gmra.mxu0 %vm293_vm8, %v424_v41  ;;  %v994_v41 = vpop.f32.mrf.mxu2 }
 0x673   :  { %3698 = vmatmul.msk.f32.vlgmr.msrb.gmra.mxu0 %vm293_vm8, %v739_v62  ;;  %v997_v47 = vpop.f32.mrf.mxu2 }
 0x674   :  { %v998_v50 = vadd.f32 %v3999_v49, %v997_v47 }
 0x6d8   :  { %v586_v57 = vpop.f32.mrf.mxu0 }
 0x6d9   :  { %3672 = vmatmul.msk.f32.vlgmr.msrb.gmra.mxu3 %vm293_vm8, %v586_v57 }
 0x6da   :  { %1022 = vmatpush.msrb.mxu3 %v3716_v6  ;;  %v995_v6 = vadd.f32 %v3999_v49, %v994_v41 }
 0x6dc   :  { %1023 = vmatpush.msrb.mxu3 %v3715_v7 }
 0x6de   :  { %1024 = vmatpush.msrb.mxu3 %v3714_v8 }
 0x6e0   :  { %v4549_v10 = vpop.f32.mrf.mxu0  ;;  %1025 = vmatpush.msrb.mxu3 %v3713_v9 }
 0x6e1   :  { %3673 = vmatmul.msk.f32.gmra.mxu3 %vm293_vm8, %v4513_v29 }
 0x6e8   :  { %v4553_v12 = vpop.f32.mrf.mxu0 }
 0x6e9   :  { %3695 = vmatmul.msk.f32.vlgmr.msra.gmra.mxu3 %vm132_vm0, %v4416_v63 }
 0x6f0   :  { %v833_v16 = vpop.f32.mrf.mxu0 }
 0x6f1   :  { %v836_v17 = vmul.f32 0.35355338, %v833_v16  ;;  %3696 = vmatmul.msk.f32.gmra.mxu3 %vm132_vm0, %v4424_v1 }
 0x6f3   :  { %v837_v18 = vadd.f32 %v4454_v20, %v836_v17 }
 0x6f5   :  { %v838_v19 = vsel %vm293_vm8, %v837_v18, -inf }
 0x6f6   :  { %839 = vmax.xlane.f32.xlu0 %v838_v19 }
 0x6f9   :  { %3718 = vmatmul.msk.f32.vlgmr.msrb.gmra.mxu3 %vm132_vm0, %v4416_v63 }
 0x6fe   :  { %907 = vadd.xlane.f32.xlu0 %v906_v22 }
 0x701   :  { %3719 = vmatmul.msk.f32.gmra.mxu3 %vm132_vm0, %v4424_v1 }
 0x75c   :  { %v4566_v23 = vpop.f32.mrf.mxu3 }
 0x764   :  { %v4568_v24 = vpop.f32.mrf.mxu3 }
 0x765   :  { %v709_v41 = vadd.f32 %v4553_v12, %v4568_v24 }
 0x769   :  { %v840_v25 = vpop.xlane.xlu0 %839 }
 0x76a   :  { %v841_v28 = vsub.f32 %v837_v18, %v840_v25 }
 0x76c   :  { %v842_v29 = vmul.f32 1.442695, %v841_v28  ;;  %v804_v30 = vpop.f32.mrf.mxu3 }
 0x76d   :  { %v805_v31 = vadd.f32 %v4000_v27, %v804_v30 }
 0x76e   :  { %4059 = vpow2.f32 %v842_v29 }
 0x76f   :  { %867 = vmatpush.msra.mxu1 %v805_v31 }
 0x771   :  { %v908_v32 = vpop.xlane.xlu0 %907  ;;  %957 = vmatpush.msrb.mxu1 %v3703_v51 }
 0x772   :  { %4061 = vrcp.f32 %v908_v32 }
 0x774   :  { %v4060_v34 = vpop.eup %4059  ;;  %v807_v35 = vpop.f32.mrf.mxu3 }
 0x775   :  { %v808_v36 = vadd.f32 %v4000_v27, %v807_v35  ;;  %v844_v37 = vsel %vm293_vm8, %v4060_v34, 0.0 }
 0x776   :  { %845 = vadd.xlane.f32.xlu2 %v844_v37  ;;  %v706_v37 = vadd.f32 %v4549_v10, %v4566_v23 }
 0x777   :  { %929 = vmatpush.msra.mxu0 %v808_v36 }
 0x778   :  { %v4062_v40 = vpop.eup %4061 }
 0x779   :  { %1055 = vmatpush.msrb.mxu0 %v3723_v38  ;;  %v910_v26 = vmul.f32 %v4062_v40, %v4058_v21 }
 0x77b   :  { %1056 = vmatpush.msrb.mxu0 %v3722_v39  ;;  %v4003_v39 = vld [vmem:[%s4281_s24] ss:$0 sm:$0xff] }
 0x77c   :  { %3702 = vmatmul.msk.f32.vlgmr.msra.gmra.mxu0 %vm293_vm8, %v910_v26  ;;  %v1027_v44 = vpop.f32.mrf.mxu3 }
 0x77d   :  { %1057 = vmatpush.msrb.mxu0 %v3721_v33  ;;  %v1028_v55 = vadd.f32 %v4001_v45, %v1027_v44 }
 0x77f   :  { %1058 = vmatpush.msrb.mxu0 %v3720_v42 }
 0x784   :  { %3725 = vmatmul.msk.f32.vlgmr.msrb.gmra.mxu0 %vm132_vm0, %v4416_v63  ;;  %v1030_v46 = vpop.f32.mrf.mxu3 }
 0x785   :  { %v1031_v48 = vadd.f32 %v4001_v45, %v1030_v46 }
 0x787   :  { %3730 = vmatpush.xpose.msk.msra.mxu3 %vm293_vm8, %v1031_v48 }
 0x78a   :  { %3731 = vmatmul.msk.f32.vlgmr.msra.gmra.mxu3 %vm293_vm8, %v998_v50 }
 0x78c   :  { %3726 = vmatmul.msk.f32.gmra.mxu0 %vm132_vm0, %v4424_v1 }
 0x7e9   :  { %v846_v52 = vpop.xlane.xlu2 %845 }
 0x7ea   :  { %4063 = vrcp.f32 %v846_v52 }
 0x7f0   :  { %v4064_v53 = vpop.eup %4063 }
 0x7f1   :  { %v848_v54 = vmul.f32 %v4064_v53, %v4060_v34  ;;  %v3733_v34 = vld [vmem:[%s4276_s19 + $0x18] sm:$0xff] }
 0x7f3   :  { %3699 = vmatmul.msk.f32.vlgmr.msra.gmra.mxu1 %vm293_vm8, %v848_v54 }
 0x7f4   :  { %3727 = vmatpush.xpose.msk.msra.mxu1 %vm293_vm8, %v1028_v55  ;;  %v1290_v55 = vld [vmem:[%s4296_s12 + $0x18] sm:$0xff] }
 0x7f9   :  { %v931_v56 = vpop.f32.mrf.mxu0 }
 0x801   :  { %v1060_v59 = vpop.f32.mrf.mxu0 }
 0x802   :  { %v1061_v60 = vadd.f32 %v4002_v58, %v1060_v59  ;;  %v1287_v59 = vld [vmem:[%s4296_s12] sm:$0xff] }
 0x804   :  { %1123 = vmatpush.msrb.mxu2 %v1061_v60 }
 0x806   :  { %1313 = vmatpush.msra.mxu2 %v1290_v55 }
 0x809   :  { %v1063_v61 = vpop.f32.mrf.mxu0 }
 0x80a   :  { %v1064_v62 = vadd.f32 %v4002_v58, %v1063_v61  ;;  %v1288_v58 = vld [vmem:[%s4296_s12 + $0x8] sm:$0xff] }
 0x80c   :  { %1185 = vmatpush.msra.mxu0 %v1064_v62 }
 0x80d   :  { %v1151_v0 = vpop.f32.mrf.mxu3 }
 0x80e   :  { %v1154_v2 = vmul.f32 0.35355338, %v1151_v0 }
 0x810   :  { %v1155_v3 = vadd.f32 %v4478_v43, %v1154_v2 }
 0x812   :  { %v1156_v4 = vsel %vm293_vm8, %v1155_v3, -inf }
 0x813   :  { %1157 = vmax.xlane.f32.xlu0 %v1156_v4 }
 0x870   :  { %v869_v5 = vpop.f32.mrf.mxu1 }
 0x871   :  { %3704 = vmatmul.msk.f32.vlgmr.msrb.gmra.mxu1 %vm293_vm8, %v869_v5 }
 0x872   :  { %1213 = vmatpush.msrb.mxu1 %v3733_v34 }
 0x879   :  { %3705 = vmatmul.msk.f32.gmra.mxu1 %vm293_vm8, %v931_v56  ;;  %v1289_v56 = vld [vmem:[%s4296_s12 + $0x10] sm:$0xff] }
 0x87a   :  { %1314 = vmatpush.msra.mxu2 %v1289_v56  ;;  %v1412_v56 = vld [vmem:[%s5173_s17] sm:$0xff] }
 0x87c   :  { %1315 = vmatpush.msra.mxu2 %v1288_v58 }
 0x87e   :  { %1316 = vmatpush.msra.mxu2 %v1287_v59 }
 0x881   :  { %3728 = vmatmul.msk.f32.vlgmr.msra.gmra.mxu1 %vm293_vm8, %v995_v6 }
 0x886   :  { %v1158_v8 = vpop.xlane.xlu0 %1157 }
 0x887   :  { %v1159_v9 = vsub.f32 %v1155_v3, %v1158_v8 }
 0x889   :  { %v1160_v13 = vmul.f32 1.442695, %v1159_v9 }
 0x88b   :  { %4065 = vpow2.f32 %v1160_v13 }
 0x891   :  { %v4066_v17 = vpop.eup %4065 }
 0x892   :  { %v1162_v18 = vsel %vm293_vm8, %v4066_v17, 0.0 }
 0x8ee   :  { %v959_v57 = vpop.f32.mrf.mxu1 }
 0x8ef   :  { %v965_v38 = vadd.f32 %v959_v57, %v706_v37  ;;  %v1419_v37 = vld [vmem:[%s5173_s17 + $0x38] sm:$0xff] }
 0x8f0   :  { %1439 = vmatpush.msrb.mxu3 %v1419_v37 }
 0x8f6   :  { %v962_v7 = vpop.f32.mrf.mxu1 }
 0x8f7   :  { %v966_v44 = vadd.f32 %v962_v7, %v709_v41 }
 0x8fe   :  { %v1089_v14 = vpop.f32.mrf.mxu1 }
 0x8ff   :  { %v1092_v15 = vmul.f32 0.35355338, %v1089_v14  ;;  %v4004_v14 = vld [vmem:[%s5170_s0] ss:$0 sm:$0xff] }
 0x901   :  { %v1093_v43 = vadd.f32 %v4454_v20, %v1092_v15 }
 0x903   :  { %v1094_v16 = vsel %vm293_vm8, %v1093_v43, -inf }
 0x904   :  { %1095 = vmax.xlane.f32.xlu1 %v1094_v16 }
 0x90c   :  { %1163 = vadd.xlane.f32.xlu1 %v1162_v18 }
 0x977   :  { %v1096_v19 = vpop.xlane.xlu1 %1095 }
 0x978   :  { %v1097_v21 = vsub.f32 %v1093_v43, %v1096_v19 }
 0x97a   :  { %v1098_v22 = vmul.f32 1.442695, %v1097_v21 }
 0x97c   :  { %4067 = vpow2.f32 %v1098_v22 }
 0x97f   :  { %v1164_v25 = vpop.xlane.xlu1 %1163 }
 0x980   :  { %4069 = vrcp.f32 %v1164_v25 }
 0x982   :  { %v4068_v27 = vpop.eup %4067 }
 0x983   :  { %v1100_v28 = vsel %vm293_vm8, %v4068_v27, 0.0 }
 0x984   :  { %1101 = vadd.xlane.f32.xlu2 %v1100_v28 }
 0x986   :  { %v4070_v20 = vpop.eup %4069 }
 0x987   :  { %v1166_v29 = vmul.f32 %v4070_v20, %v4066_v17  ;;  %v4005_v17 = vld [vmem:[%s5171_s5] ss:$0 sm:$0xff] }
 0x989   :  { %3732 = vmatmul.msk.f32.vlgmr.msra.gmra.mxu0 %vm293_vm8, %v1166_v29 }
 0x9f7   :  { %v1102_v30 = vpop.xlane.xlu2 %1101 }
 0x9f8   :  { %4071 = vrcp.f32 %v1102_v30  ;;  %v4006_v30 = vld [vmem:[%s5172_s13] ss:$0 sm:$0xff] }
 0x9fe   :  { %v4072_v31 = vpop.eup %4071 }
 0x9ff   :  { %v1104_v32 = vmul.f32 %v4072_v31, %v4068_v27 }
 0xa01   :  { %3729 = vmatmul.msk.f32.vlgmr.msrb.gmra.mxu2 %vm293_vm8, %v1104_v32 }
 0xa06   :  { %v1187_v36 = vpop.f32.mrf.mxu0 }
 0xa84   :  { %v1125_v35 = vpop.f32.mrf.mxu2 }
 0xa85   :  { %3734 = vmatmul.msk.f32.vlgmr.msrb.gmra.mxu1 %vm293_vm8, %v1125_v35 }
 0xa8d   :  { %3735 = vmatmul.msk.f32.gmra.mxu1 %vm293_vm8, %v1187_v36 }
 0xb02   :  { %v1215_v40 = vpop.f32.mrf.mxu1 }
 0xb03   :  { %v1221_v26 = vadd.f32 %v1215_v40, %v965_v38 }
 0xb05   :  { %v1227_v33 = vadd.f32 %v4003_v39, %v1221_v26 }
 0xb07   :  { %v1229_v42 = vadd.f32 %v1227_v33, %v4416_v63  ;;  %v1418_v33 = vld [vmem:[%s5173_s17 + $0x30] sm:$0xff] }
 0xb08   :  { %1440 = vmatpush.msrb.mxu3 %v1418_v33 }
 0xb09   :  { %v1233_v45 = vsel %vm132_vm0, %v1229_v42, 0.0 }
 0xb0a   :  { %1234 = vadd.xlane.f32.xlu2 %v1233_v45  ;;  %v1218_v46 = vpop.f32.mrf.mxu1 }
 0xb0b   :  { %v1222_v47 = vadd.f32 %v1218_v46, %v966_v44  ;;  %v1417_v44 = vld [vmem:[%s5173_s17 + $0x28] sm:$0xff] }
 0xb0c   :  { %1441 = vmatpush.msrb.mxu3 %v1417_v44 }
 0xb0d   :  { %v1228_v48 = vadd.f32 %v4003_v39, %v1222_v47 }
 0xb0f   :  { %v1230_v10 = vadd.f32 %v1228_v48, %v4424_v1  ;;  %v1416_v48 = vld [vmem:[%s5173_s17 + $0x20] sm:$0xff] }
 0xb10   :  { %1442 = vmatpush.msrb.mxu3 %v1416_v48 }
 0xb11   :  { %v1236_v23 = vsel %vm132_vm0, %v1230_v10, 0.0 }
 0xb12   :  { %1237 = vadd.xlane.f32.xlu1 %v1236_v23 }
 0xb7d   :  { %v1235_v49 = vpop.xlane.xlu2 %1234 }
 0xb7e   :  { %v1239_v12 = vmul.f32 %v1235_v49, %v4380_v11  ;;  %v1415_v49 = vld [vmem:[%s5173_s17 + $0x18] sm:$0xff] }
 0xb7f   :  { %1443 = vmatpush.msrb.mxu3 %v1415_v49 }
 0xb80   :  { %v1241_v24 = vsub.f32 %v1229_v42, %v1239_v12 }
 0xb82   :  { %v1243_v63 = vmul.f32 %v1241_v24, %v1241_v24 }
 0xb84   :  { %v1245_v50 = vsel %vm132_vm0, %v1243_v63, 0.0 }
 0xb85   :  { %1246 = vadd.xlane.f32.xlu0 %v1245_v50  ;;  %v1238_v51 = vpop.xlane.xlu1 %1237  ;;  %v1414_v50 = vld [vmem:[%s5173_s17 + $0x10] sm:$0xff] }
 0xb86   :  { %v1240_v52 = vmul.f32 %v1238_v51, %v4380_v11  ;;  %1444 = vmatpush.msrb.mxu3 %v1414_v50 }
 0xb88   :  { %v1242_v53 = vsub.f32 %v1230_v10, %v1240_v52 }
 0xb8a   :  { %v1244_v54 = vmul.f32 %v1242_v53, %v1242_v53 }
 0xb8c   :  { %v1248_v1 = vsel %vm132_vm0, %v1244_v54, 0.0  ;;  %v1413_v54 = vld [vmem:[%s5173_s17 + $0x8] sm:$0xff] }
 0xb8d   :  { %1249 = vadd.xlane.f32.xlu2 %v1248_v1  ;;  %1445 = vmatpush.msrb.mxu3 %v1413_v54 }
 0xb8f   :  { %1446 = vmatpush.msrb.mxu3 %v1412_v56  ;;  %v4007_v56 = vld [vmem:[%s5174_s6] ss:$0 sm:$0xff] }
 0xbf8   :  { %v1247_v60 = vpop.xlane.xlu0 %1246 }
 0xbf9   :  { %v1251_v61 = vmul.f32 %v1247_v60, %v4380_v11 }
 0xbfb   :  { %v1253_v62 = vadd.f32 1e-05, %v1251_v61 }
 0xbfd   :  { %4073 = vrsqrt.f32 %v1253_v62  ;;  %vm1261_vm10 = vweird.f32 %v1253_v62 }
 0xc00   :  { %v1250_v0 = vpop.xlane.xlu2 %1249 }
 0xc01   :  { %v1252_v2 = vmul.f32 %v1250_v0, %v4380_v11 }
 0xc03   :  { %v4074_v3 = vpop.eup %4073  ;;  %v1254_v4 = vadd.f32 1e-05, %v1252_v2 }
 0xc04   :  { %v1256_v5 = vmul.f32 %v4074_v3, %v1253_v62  ;;  %vm1262_vm9 = vweird.f32 %v4074_v3 }
 0xc05   :  { %4075 = vrsqrt.f32 %v1254_v4  ;;  %vm1263_vm11 = vmor %vm1261_vm10, %vm1262_vm9  ;;  %vm1271_vm13 = vweird.f32 %v1254_v4 }
 0xc06   :  { %v1257_v6 = vmul.f32 %v4074_v3, %v1256_v5 }
 0xc08   :  { %v1258_v57 = vmul.f32 0.5, %v1257_v6 }
 0xc0a   :  { %v1259_v7 = vsub.f32 1.5, %v1258_v57 }
 0xc0b   :  { %v4076_v8 = vpop.eup %4075 }
 0xc0c   :  { %v1260_v9 = vmul.f32 %v4074_v3, %v1259_v7  ;;  %v1266_v13 = vmul.f32 %v4076_v8, %v1254_v4  ;;  %vm1272_vm12 = vweird.f32 %v4076_v8 }
 0xc0d   :  { %vm1273_vm14 = vmor %vm1271_vm13, %vm1272_vm12 }
 0xc0e   :  { %v1264_v15 = vsel %vm1263_vm11, %v4074_v3, %v1260_v9  ;;  %v1267_v43 = vmul.f32 %v4076_v8, %v1266_v13 }
 0xc0f   :  { %v1275_v16 = vmul.f32 %v1264_v15, %v1241_v24 }
 0xc10   :  { %v1268_v18 = vmul.f32 0.5, %v1267_v43 }
 0xc11   :  { %v1280_v19 = vmul.f32 %v4004_v14, %v1275_v16 }
 0xc12   :  { %v1269_v21 = vsub.f32 1.5, %v1268_v18 }
 0xc13   :  { %v4624_v22 = vadd.f32 %v4005_v17, %v1280_v19 }
 0xc14   :  { %v1270_v25 = vmul.f32 %v4076_v8, %v1269_v21 }
 0xc15   :  { %3736 = vmatmul.msk.f32.vlgmr.msra.gmra.mxu2 %vm132_vm0, %v4624_v22 }
 0xc16   :  { %v1274_v27 = vsel %vm1273_vm14, %v4076_v8, %v1270_v25 }
 0xc17   :  { %v1276_v28 = vmul.f32 %v1274_v27, %v1242_v53 }
 0xc19   :  { %v1281_v20 = vmul.f32 %v4004_v14, %v1276_v28 }
 0xc1b   :  { %v4628_v29 = vadd.f32 %v4005_v17, %v1281_v20 }
 0xc1d   :  { %3737 = vmatmul.msk.f32.gmra.mxu2 %vm132_vm0, %v4628_v29 }
 0xc98   :  { %v1318_v31 = vpop.f32.mrf.mxu2 }
 0xc99   :  { %v4633_v32 = vadd.f32 %v4006_v30, %v1318_v31 }
 0xc9b   :  { %v4636_v34 = vmul.f32 0.70710677, %v4633_v32  ;;  %v1324_v49 = vmul.f32 0.5, %v4633_v32 }
 0xc9d   :  { %v1328_v35 = vmul.f32 %v4636_v34, %v4636_v34 }
 0xc9f   :  { %v1329_v36 = vmin.f32 %v1328_v35, 16.0 }
 0xca0   :  { %v1321_v38 = vpop.f32.mrf.mxu2 }
 0xca1   :  { %v1330_v39 = vmul.f32 2.1237322e-06, %v1329_v36  ;;  %v1341_v40 = vmul.f32 3.8918573e-05, %v1329_v36  ;;  %v4641_v26 = vadd.f32 %v4006_v30, %v1321_v38 }
 0xca3   :  { %v1331_v41 = vadd.f32 0.00028619796, %v1330_v39  ;;  %v1342_v42 = vadd.f32 0.001143296, %v1341_v40  ;;  %v4646_v45 = vmul.f32 0.70710677, %v4641_v26 }
 0xca5   :  { %v1332_v46 = vmul.f32 %v1331_v41, %v1329_v36  ;;  %v1343_v47 = vmul.f32 %v1342_v42, %v1329_v36  ;;  %v1368_v10 = vmul.f32 %v4646_v45, %v4646_v45 }
 0xca7   :  { %v1344_v23 = vadd.f32 0.014752088, %v1343_v47  ;;  %v1333_v12 = vadd.f32 0.0036580483, %v1332_v46  ;;  %v1369_v24 = vmin.f32 %v1368_v10, 16.0 }
 0xca9   :  { %v1345_v63 = vmul.f32 %v1344_v23, %v1329_v36  ;;  %v1370_v51 = vmul.f32 2.1237322e-06, %v1369_v24  ;;  %v1381_v52 = vmul.f32 3.8918573e-05, %v1369_v24  ;;  %v1334_v1 = vmul.f32 %v1333_v12, %v1329_v36 }
 0xcab   :  { %v1346_v53 = vadd.f32 0.112945676, %v1345_v63  ;;  %v1371_v55 = vadd.f32 0.00028619796, %v1370_v51  ;;  %v1382_v58 = vadd.f32 0.001143296, %v1381_v52 }
 0xcac   :  { %v1335_v0 = vadd.f32 0.05243302, %v1334_v1  ;;  %v1325_v1 = vmul.f32 0.5, %v4641_v26 }
 0xcad   :  { %v1347_v59 = vmul.f32 %v1346_v53, %v1329_v36  ;;  %v1372_v60 = vmul.f32 %v1371_v55, %v1369_v24  ;;  %v1383_v61 = vmul.f32 %v1382_v58, %v1369_v24 }
 0xcae   :  { %v1336_v57 = vmul.f32 %v1335_v0, %v1329_v36 }
 0xcaf   :  { %v1348_v62 = vadd.f32 0.4994258, %v1347_v59  ;;  %v1384_v2 = vadd.f32 0.014752088, %v1383_v61  ;;  %v1373_v4 = vadd.f32 0.0036580483, %v1372_v60 }
 0xcb0   :  { %v1337_v13 = vadd.f32 0.18741608, %v1336_v57 }
 0xcb1   :  { %v1349_v3 = vmul.f32 %v1348_v62, %v1329_v36  ;;  %v1385_v5 = vmul.f32 %v1384_v2, %v1369_v24  ;;  %v1374_v8 = vmul.f32 %v1373_v4, %v1369_v24 }
 0xcb2   :  { %v1338_v17 = vmul.f32 %v1337_v13, %v1329_v36  ;;  %v3752_v13 = vld [vmem:[%s4256_s29 + $0x98] sm:$0xff] }
 0xcb3   :  { %v1350_v6 = vadd.f32 1.0, %v1349_v3  ;;  %v1386_v7 = vadd.f32 0.112945676, %v1385_v5  ;;  %v1375_v15 = vadd.f32 0.05243302, %v1374_v8  ;;  %1573 = vmatpush.msra.mxu1 %v3752_v13 }
 0xcb4   :  { %v1339_v28 = vadd.f32 1.1283791, %v1338_v17  ;;  %v3743_v17 = vld [vmem:[%s4246_s21 + $0x88] sm:$0xff] }
 0xcb5   :  { %4077 = vrcp.f32 %v1350_v6  ;;  %v1387_v9 = vmul.f32 %v1386_v7, %v1369_v24  ;;  %v1376_v21 = vmul.f32 %v1375_v15, %v1369_v24  ;;  %v1362_v27 = vand.u32 2147483648, %v1350_v6  ;;  %v3744_v15 = vld [vmem:[%s4246_s21 + $0x90] sm:$0xff] }
 0xcb6   :  { %v1360_v30 = vand.u32 2147483647, %v1350_v6  ;;  %vm1356_vm1 = vweird.f32 %v1350_v6  ;;  %v1340_v39 = vmul.f32 %v1339_v28, %v4636_v34 }
 0xcb7   :  { %v1388_v14 = vadd.f32 0.4994258, %v1387_v9  ;;  %v1377_v31 = vadd.f32 0.18741608, %v1376_v21  ;;  %v1363_v37 = vor.u32 1.1754944e-38, %v1362_v27  ;;  %v3745_v9 = vld [vmem:[%s4246_s21 + $0x98] sm:$0xff] }
 0xcb8   :  { %vm1361_vm3 = vcmp.eq.f32.partialorder %v1360_v30, 8.507059e+37  ;;  %1540 = vmatpush.msrb.mxu0 %v3745_v9  ;;  %v3742_v21 = vld [vmem:[%s4246_s21 + $0x80] sm:$0xff] }
 0xcb9   :  { %v1389_v43 = vmul.f32 %v1388_v14, %v1369_v24  ;;  %v1378_v33 = vmul.f32 %v1377_v31, %v1369_v24  ;;  %v3759_v14 = vld [vmem:[%s4266_s8 + $0x98] sm:$0xff]  ;;  %v3756_v27 = vld [vmem:[%s4266_s8 + $0x80] sm:$0xff] }
 0xcba   :  { %1606 = vmatpush.msrb.mxu2 %v3759_v14  ;;  %1541 = vmatpush.msrb.mxu0 %v3744_v15  ;;  %v3773_v31 = vld [vmem:[%s4246_s21 + $0xb8] sm:$0xff]  ;;  %v4736_v14 = vld [vmem:[%s4231_s9] ss:$0 sm:$0xff] }
 0xcbb   :  { %v4078_v16 = vpop.eup %4077  ;;  %v1390_v19 = vadd.f32 1.0, %v1389_v43  ;;  %v1379_v48 = vadd.f32 1.1283791, %v1378_v33  ;;  %v3751_v43 = vld [vmem:[%s4256_s29 + $0x90] sm:$0xff] }
 0xcbc   :  { %v1352_v18 = vmul.f32 %v4078_v16, %v1350_v6  ;;  %vm1357_vm15 = vweird.f32 %v4078_v16  ;;  %1574 = vmatpush.msra.mxu1 %v3751_v43  ;;  %1542 = vmatpush.msrb.mxu0 %v3743_v17 }
 0xcbd   :  { %4079 = vrcp.f32 %v1390_v19  ;;  %vm1358_vm2 = vmor %vm1356_vm1, %vm1357_vm15  ;;  %v1402_v47 = vand.u32 2147483648, %v1390_v19  ;;  %v1400_v23 = vand.u32 2147483647, %v1390_v19  ;;  %vm1396_vm6 = vweird.f32 %v1390_v19 }
 0xcbe   :  { %v1353_v25 = vsub.f32 1.0, %v1352_v18  ;;  %v1380_v24 = vmul.f32 %v1379_v48, %v4646_v45  ;;  %v3750_v18 = vld [vmem:[%s4256_s29 + $0x88] sm:$0xff]  ;;  %1543 = vmatpush.msrb.mxu0 %v3742_v21 }
 0xcbf   :  { %v1403_v50 = vor.u32 1.1754944e-38, %v1402_v47  ;;  %vm1401_vm9 = vcmp.eq.f32.partialorder %v1400_v23, 8.507059e+37  ;;  %1575 = vmatpush.msra.mxu1 %v3750_v18  ;;  %v4741_v18 = vld [vmem:[%s4231_s9 + $0x1] ss:$0 sm:$0xff]  ;;  %s5177_s9 = sld [smem:[#allocation13_spill]] }
 0xcc0   :  { %v1354_v20 = vmul.f32 %v4078_v16, %v1353_v25  ;;  %v3749_v25 = vld [vmem:[%s4256_s29 + $0x80] sm:$0xff] }
 0xcc1   :  { %1576 = vmatpush.msra.mxu1 %v3749_v25  ;;  %v4014_v25 = vld [vmem:[%s4271_s14 + $0x5] ss:$0 sm:$0xff] }
 0xcc2   :  { %v1355_v35 = vadd.f32 %v4078_v16, %v1354_v20 }
 0xcc3   :  { %v4080_v38 = vpop.eup %4079 }
 0xcc4   :  { %v1359_v40 = vsel %vm1358_vm2, %v4078_v16, %v1355_v35  ;;  %v1392_v41 = vmul.f32 %v4080_v38, %v1390_v19  ;;  %vm1397_vm4 = vweird.f32 %v4080_v38  ;;  %v3758_v16 = vld [vmem:[%s4266_s8 + $0x90] sm:$0xff]  ;;  %v3757_v19 = vld [vmem:[%s4266_s8 + $0x88] sm:$0xff] }
 0xcc5   :  { %v1364_v36 = vsel %vm1361_vm3, %v1363_v37, %v1359_v40  ;;  %vm1398_vm7 = vmor %vm1396_vm6, %vm1397_vm4  ;;  %1607 = vmatpush.msrb.mxu2 %v3758_v16  ;;  %v3772_v35 = vld [vmem:[%s4246_s21 + $0xb0] sm:$0xff] }
 0xcc6   :  { %v1365_v42 = vmul.f32 %v1364_v36, %v1340_v39  ;;  %v1393_v44 = vsub.f32 1.0, %v1392_v41  ;;  %v3770_v36 = vld [vmem:[%s4246_s21 + $0xa0] sm:$0xff] }
 0xcc7   :  { %1608 = vmatpush.msrb.mxu2 %v3757_v19 }
 0xcc8   :  { %v3738_v46 = vclamps-f32 %v1365_v42, 1.0  ;;  %v1394_v10 = vmul.f32 %v4080_v38, %v1393_v44 }
 0xcc9   :  { %1609 = vmatpush.msrb.mxu2 %v3756_v27 }
 0xcca   :  { %v1408_v12 = vadd.f32 1.0, %v3738_v46  ;;  %v1395_v63 = vadd.f32 %v4080_v38, %v1394_v10  ;;  %v4008_v10 = vld [vmem:[%s5175_s16] ss:$0 sm:$0xff] }
 0xccb   :  { %1765 = vmatpush.msra.mxu2 %v3773_v31 }
 0xccc   :  { %v1410_v34 = vmul.f32 %v1408_v12, %v1324_v49  ;;  %v1399_v51 = vsel %vm1398_vm7, %v4080_v38, %v1395_v63  ;;  %v3771_v38 = vld [vmem:[%s4246_s21 + $0xa8] sm:$0xff]  ;;  %v4009_v12 = vld [vmem:[%s5176_s15] ss:$0 sm:$0xff] }
 0xccd   :  { %v1404_v52 = vsel %vm1401_vm9, %v1403_v50, %v1399_v51  ;;  %1766 = vmatpush.msra.mxu2 %v3772_v35 }
 0xcce   :  { %3740 = vmatmul.msk.f32.vlgmr.msrb.gmra.mxu3 %vm1424_vm5, %v1410_v34  ;;  %v1405_v53 = vmul.f32 %v1404_v52, %v1380_v24 }
 0xccf   :  { %1767 = vmatpush.msra.mxu2 %v3771_v38 }
 0xcd0   :  { %v3739_v54 = vclamps-f32 %v1405_v53, 1.0 }
 0xcd1   :  { %1768 = vmatpush.msra.mxu2 %v3770_v36 }
 0xcd2   :  { %v1409_v32 = vadd.f32 1.0, %v3739_v54 }
 0xcd4   :  { %v1411_v55 = vmul.f32 %v1409_v32, %v1325_v1 }
 0xcd6   :  { %3741 = vmatmul.msk.f32.gmra.mxu3 %vm1424_vm5, %v1411_v55 }
 0xd51   :  { %v1448_v58 = vpop.f32.mrf.mxu3 }
 0xd52   :  { %v1449_v59 = vadd.f32 %v4007_v56, %v1448_v58  ;;  %v4010_v58 = vld [vmem:[%s4251_s25 + $0x4] ss:$0 sm:$0xff] }
 0xd54   :  { %v1454_v60 = vadd.f32 %v1449_v59, %v4624_v22 }
 0xd56   :  { %v1458_v45 = vsel %vm132_vm0, %v1454_v60, 0.0 }
 0xd57   :  { %1459 = vadd.xlane.f32.xlu0 %v1458_v45 }
 0xd59   :  { %v1451_v61 = vpop.f32.mrf.mxu3 }
 0xd5a   :  { %v1452_v62 = vadd.f32 %v4007_v56, %v1451_v61  ;;  %v4011_v56 = vld [vmem:[%s4261_s3 + $0x4] ss:$0 sm:$0xff] }
 0xd5c   :  { %v1455_v0 = vadd.f32 %v1452_v62, %v4628_v29  ;;  %v4012_v62 = vld [vmem:[%s4271_s14 + $0x4] ss:$0 sm:$0xff] }
 0xd5e   :  { %v1461_v26 = vsel %vm132_vm0, %v1455_v0, 0.0 }
 0xd5f   :  { %1462 = vadd.xlane.f32.xlu2 %v1461_v26 }
 0xdca   :  { %v1460_v2 = vpop.xlane.xlu0 %1459 }
 0xdcb   :  { %v1464_v3 = vmul.f32 %v1460_v2, %v4380_v11 }
 0xdcd   :  { %v4667_v4 = vsub.f32 %v1454_v60, %v1464_v3 }
 0xdcf   :  { %v1468_v22 = vmul.f32 %v4667_v4, %v4667_v4 }
 0xdd1   :  { %v1470_v5 = vsel %vm132_vm0, %v1468_v22, 0.0  ;;  %v3787_v22 = vld [vmem:[%s4266_s8 + $0xb8] sm:$0xff] }
 0xdd2   :  { %1471 = vadd.xlane.f32.xlu1 %v1470_v5  ;;  %v1463_v29 = vpop.xlane.xlu2 %1462 }
 0xdd3   :  { %v1465_v6 = vmul.f32 %v1463_v29, %v4380_v11  ;;  %v3786_v29 = vld [vmem:[%s4266_s8 + $0xb0] sm:$0xff] }
 0xdd5   :  { %v4673_v57 = vsub.f32 %v1455_v0, %v1465_v6  ;;  %v3785_v6 = vld [vmem:[%s4266_s8 + $0xa8] sm:$0xff] }
 0xdd7   :  { %v1469_v7 = vmul.f32 %v4673_v57, %v4673_v57 }
 0xdd9   :  { %v1473_v8 = vsel %vm132_vm0, %v1469_v7, 0.0 }
 0xdda   :  { %1474 = vadd.xlane.f32.xlu0 %v1473_v8  ;;  %v3784_v8 = vld [vmem:[%s4266_s8 + $0xa0] sm:$0xff] }
 0xe45   :  { %v1472_v28 = vpop.xlane.xlu1 %1471 }
 0xe46   :  { %v1476_v20 = vmul.f32 %v1472_v28, %v4380_v11 }
 0xe48   :  { %v1478_v30 = vadd.f32 1e-05, %v1476_v20 }
 0xe4a   :  { %4081 = vrsqrt.f32 %v1478_v30  ;;  %vm1486_vm11 = vweird.f32 %v1478_v30 }
 0xe4d   :  { %v1475_v37 = vpop.xlane.xlu0 %1474 }
 0xe4e   :  { %v1477_v39 = vmul.f32 %v1475_v37, %v4380_v11 }
 0xe50   :  { %v4082_v40 = vpop.eup %4081  ;;  %v1479_v41 = vadd.f32 1e-05, %v1477_v39 }
 0xe51   :  { %v1481_v33 = vmul.f32 %v4082_v40, %v1478_v30  ;;  %vm1487_vm10 = vweird.f32 %v4082_v40 }
 0xe52   :  { %4083 = vrsqrt.f32 %v1479_v41  ;;  %vm1488_vm12 = vmor %vm1486_vm11, %vm1487_vm10  ;;  %vm1496_vm14 = vweird.f32 %v1479_v41 }
 0xe53   :  { %v1482_v42 = vmul.f32 %v4082_v40, %v1481_v33 }
 0xe55   :  { %v1483_v44 = vmul.f32 0.5, %v1482_v42  ;;  %v3779_v42 = vld [vmem:[%s4256_s29 + $0xb0] sm:$0xff] }
 0xe57   :  { %v1484_v46 = vsub.f32 1.5, %v1483_v44  ;;  %v3778_v44 = vld [vmem:[%s4256_s29 + $0xa8] sm:$0xff] }
 0xe58   :  { %v4084_v47 = vpop.eup %4083 }
 0xe59   :  { %v1485_v48 = vmul.f32 %v4082_v40, %v1484_v46  ;;  %v1491_v23 = vmul.f32 %v4084_v47, %v1479_v41  ;;  %vm1497_vm13 = vweird.f32 %v4084_v47  ;;  %v3780_v41 = vld [vmem:[%s4256_s29 + $0xb8] sm:$0xff]  ;;  %v3777_v46 = vld [vmem:[%s4256_s29 + $0xa0] sm:$0xff] }
 0xe5a   :  { %vm1498_vm15 = vmor %vm1496_vm14, %vm1497_vm13 }
 0xe5b   :  { %v1489_v49 = vsel %vm1488_vm12, %v4082_v40, %v1485_v48  ;;  %v1492_v34 = vmul.f32 %v4084_v47, %v1491_v23 }
 0xe5c   :  { %v1500_v63 = vmul.f32 %v1489_v49, %v4667_v4 }
 0xe5d   :  { %v1493_v24 = vmul.f32 0.5, %v1492_v34 }
 0xe5e   :  { %v1505_v50 = vmul.f32 %v4008_v10, %v1500_v63 }
 0xe5f   :  { %v1494_v52 = vsub.f32 1.5, %v1493_v24  ;;  %v4015_v24 = vld [vmem:[%s4261_s3 + $0x5] ss:$0 sm:$0xff] }
 0xe60   :  { %v4699_v51 = vadd.f32 %v4009_v12, %v1505_v50 }
 0xe61   :  { %v1495_v53 = vmul.f32 %v4084_v47, %v1494_v52 }
 0xe62   :  { %3747 = vmatmul.msk.f32.vlgmr.msrb.gmra.mxu0 %vm132_vm0, %v4699_v51  ;;  %3754 = vmatmul.msk.f32.vlgmr.msra.gmra.mxu1 %vm132_vm0, %v4699_v51 }
 0xe63   :  { %3761 = vmatmul.msk.f32.vlgmr.msrb.gmra.mxu2 %vm132_vm0, %v4699_v51  ;;  %v1499_v54 = vsel %vm1498_vm15, %v4084_v47, %v1495_v53  ;;  %v4013_v53 = vld [vmem:[%s4251_s25 + $0x5] ss:$0 sm:$0xff] }
 0xe64   :  { %v1501_v1 = vmul.f32 %v1499_v54, %v4673_v57 }
 0xe66   :  { %v1506_v32 = vmul.f32 %v4008_v10, %v1501_v1 }
 0xe68   :  { %v4708_v55 = vadd.f32 %v4009_v12, %v1506_v32 }
 0xe6a   :  { %3748 = vmatmul.msk.f32.gmra.mxu0 %vm132_vm0, %v4708_v55  ;;  %3755 = vmatmul.msk.f32.gmra.mxu1 %vm132_vm0, %v4708_v55 }
 0xe6b   :  { %3762 = vmatmul.msk.f32.gmra.mxu2 %vm132_vm0, %v4708_v55 }
 0xe73   :  { %3775 = vmatmul.msk.f32.vlgmr.msra.gmra.mxu2 %vm132_vm0, %v4699_v51 }
 0xe7b   :  { %3776 = vmatmul.msk.f32.gmra.mxu2 %vm132_vm0, %v4708_v55 }
 0xedf   :  { %v1545_v59 = vpop.f32.mrf.mxu0  ;;  %v1578_v60 = vpop.f32.mrf.mxu1 }
 0xee0   :  { %v1579_v45 = vadd.f32 %v4011_v56, %v1578_v60  ;;  %v1546_v61 = vadd.f32 %v4010_v58, %v1545_v59  ;;  %v3805_v60 = vld [vmem:[%s4246_s21 + $0xd8] sm:$0xff] }
 0xee2   :  { %3763 = vmatpush.xpose.msk.msra.mxu0 %vm293_vm8, %v1579_v45 }
 0xee5   :  { %3764 = vmatmul.msk.f32.vlgmr.msra.gmra.mxu0 %vm293_vm8, %v1546_v61  ;;  %v3804_v61 = vld [vmem:[%s4246_s21 + $0xd0] sm:$0xff] }
 0xee6   :  { %v1611_v0 = vpop.f32.mrf.mxu2 }
 0xee7   :  { %v1612_v26 = vadd.f32 %v4012_v62, %v1611_v0  ;;  %v1581_v2 = vpop.f32.mrf.mxu1  ;;  %v1548_v3 = vpop.f32.mrf.mxu0  ;;  %v3802_v0 = vld [vmem:[%s4246_s21 + $0xc0] sm:$0xff] }
 0xee8   :  { %v1582_v4 = vadd.f32 %v4011_v56, %v1581_v2  ;;  %v1549_v5 = vadd.f32 %v4010_v58, %v1548_v3 }
 0xee9   :  { %1674 = vmatpush.msra.mxu3 %v1612_v26 }
 0xeea   :  { %3766 = vmatpush.xpose.msk.msrb.mxu0 %vm293_vm8, %v1582_v4 }
 0xeeb   :  { %1798 = vmatpush.msrb.mxu3 %v3780_v41  ;;  %v3818_v41 = vld [vmem:[%s4266_s8 + $0xd0] sm:$0xff] }
 0xeed   :  { %3767 = vmatmul.msk.f32.vlgmr.msrb.gmra.mxu0 %vm293_vm8, %v1549_v5  ;;  %1799 = vmatpush.msrb.mxu3 %v3779_v42  ;;  %v3817_v42 = vld [vmem:[%s4266_s8 + $0xc8] sm:$0xff] }
 0xeee   :  { %1831 = vmatpush.msra.mxu0 %v3787_v22  ;;  %v1614_v57 = vpop.f32.mrf.mxu2 }
 0xeef   :  { %v1615_v7 = vadd.f32 %v4012_v62, %v1614_v57  ;;  %1800 = vmatpush.msrb.mxu3 %v3778_v44  ;;  %v3803_v62 = vld [vmem:[%s4246_s21 + $0xc8] sm:$0xff]  ;;  %v3816_v44 = vld [vmem:[%s4266_s8 + $0xc0] sm:$0xff] }
 0xef0   :  { %1832 = vmatpush.msra.mxu0 %v3786_v29 }
 0xef1   :  { %1736 = vmatpush.msrb.mxu1 %v1615_v7  ;;  %1801 = vmatpush.msrb.mxu3 %v3777_v46 }
 0xef2   :  { %1833 = vmatpush.msra.mxu0 %v3785_v6 }
 0xef4   :  { %1834 = vmatpush.msra.mxu0 %v3784_v8 }
 0xef5   :  { %3789 = vmatmul.msk.f32.vlgmr.msra.gmra.mxu0 %vm132_vm0, %v4699_v51 }
 0xef6   :  { %v1770_v52 = vpop.f32.mrf.mxu2 }
 0xef7   :  { %v1771_v32 = vadd.f32 %v4013_v53, %v1770_v52 }
 0xefd   :  { %3790 = vmatmul.msk.f32.gmra.mxu0 %vm132_vm0, %v4708_v55 }
 0xefe   :  { %v1773_v58 = vpop.f32.mrf.mxu2 }
 0xeff   :  { %v1774_v45 = vadd.f32 %v4013_v53, %v1773_v58  ;;  %v3834_v58 = vld [vmem:[%s4246_s21 + $0xf0] sm:$0xff] }
 0xf62   :  { %v1640_v9 = vpop.f32.mrf.mxu0 }
 0xf63   :  { %v1643_v13 = vmul.f32 0.35355338, %v1640_v9 }
 0xf65   :  { %v1644_v15 = vadd.f32 %v4736_v14, %v1643_v13 }
 0xf67   :  { %v1645_v43 = vsel %vm293_vm8, %v1644_v15, -inf }
 0xf68   :  { %1646 = vmax.xlane.f32.xlu1 %v1645_v43 }
 0xf6a   :  { %v1702_v16 = vpop.f32.mrf.mxu0 }
 0xf6b   :  { %v1705_v17 = vmul.f32 0.35355338, %v1702_v16 }
 0xf6d   :  { %v1706_v19 = vadd.f32 %v4741_v18, %v1705_v17 }
 0xf6f   :  { %v1707_v21 = vsel %vm293_vm8, %v1706_v19, -inf }
 0xf70   :  { %1708 = vmax.xlane.f32.xlu0 %v1707_v21 }
 0xf72   :  { %v1836_v27 = vpop.f32.mrf.mxu0 }
 0xf73   :  { %v1837_v28 = vadd.f32 %v4014_v25, %v1836_v27  ;;  %v3812_v27 = vld [vmem:[%s4256_s29 + $0xd8] sm:$0xff] }
 0xf7a   :  { %v1839_v48 = vpop.f32.mrf.mxu0 }
 0xf7b   :  { %v1840_v49 = vadd.f32 %v4014_v25, %v1839_v48  ;;  %v3769_v25 = vld [vmem:[%s4276_s19 + $0x20] sm:$0xff]  ;;  %v3841_v48 = vld [vmem:[%s4256_s29 + $0xf0] sm:$0xff] }
 0xfdb   :  { %v1647_v20 = vpop.xlane.xlu1 %1646 }
 0xfdc   :  { %v1648_v30 = vsub.f32 %v1644_v15, %v1647_v20  ;;  %v3810_v20 = vld [vmem:[%s4256_s29 + $0xc8] sm:$0xff] }
 0xfde   :  { %v1649_v31 = vmul.f32 1.442695, %v1648_v30  ;;  %v3809_v30 = vld [vmem:[%s4256_s29 + $0xc0] sm:$0xff] }
 0xfe0   :  { %4085 = vpow2.f32 %v1649_v31 }
 0xfe3   :  { %v1709_v35 = vpop.xlane.xlu0 %1708 }
 0xfe4   :  { %v1710_v37 = vsub.f32 %v1706_v19, %v1709_v35 }
 0xfe6   :  { %v4086_v38 = vpop.eup %4085  ;;  %v1711_v39 = vmul.f32 1.442695, %v1710_v37 }
 0xfe7   :  { %v1651_v40 = vsel %vm293_vm8, %v4086_v38, 0.0 }
 0xfe8   :  { %1652 = vadd.xlane.f32.xlu2 %v1651_v40  ;;  %4087 = vpow2.f32 %v1711_v39 }
 0xfee   :  { %v4088_v36 = vpop.eup %4087 }
 0xfef   :  { %v1713_v33 = vsel %vm293_vm8, %v4088_v36, 0.0 }
 0xff0   :  { %1714 = vadd.xlane.f32.xlu1 %v1713_v33  ;;  %v3819_v33 = vld [vmem:[%s4266_s8 + $0xd8] sm:$0xff] }
0x105b   :  { %v1653_v47 = vpop.xlane.xlu2 %1652 }
0x105c   :  { %4089 = vrcp.f32 %v1653_v47  ;;  %v3842_v47 = vld [vmem:[%s4256_s29 + $0xf8] sm:$0xff] }
0x1062   :  { %v4090_v10 = vpop.eup %4089 }
0x1063   :  { %v1655_v23 = vmul.f32 %v4090_v10, %v4086_v38  ;;  %v1715_v12 = vpop.xlane.xlu1 %1714  ;;  %v3840_v10 = vld [vmem:[%s4256_s29 + $0xe8] sm:$0xff] }
0x1064   :  { %4091 = vrcp.f32 %v1715_v12  ;;  %v4017_v12 = vld [vmem:[%s4261_s3 + $0x6] ss:$0 sm:$0xff] }
0x1065   :  { %3765 = vmatmul.msk.f32.vlgmr.msra.gmra.mxu3 %vm293_vm8, %v1655_v23  ;;  %v3839_v23 = vld [vmem:[%s4256_s29 + $0xe0] sm:$0xff] }
0x1066   :  { %1961 = vmatpush.msra.mxu3 %v1840_v49 }
0x106a   :  { %v4092_v63 = vpop.eup %4091 }
0x106b   :  { %v1717_v34 = vmul.f32 %v4092_v63, %v4088_v36  ;;  %v3797_v36 = vld [vmem:[%s4276_s19 + $0x28] sm:$0xff] }
0x106c   :  { %1989 = vmatpush.msrb.mxu0 %v3797_v36 }
0x106d   :  { %3782 = vmatmul.msk.f32.vlgmr.msrb.gmra.mxu3 %vm132_vm0, %v4699_v51  ;;  %3768 = vmatmul.msk.f32.vlgmr.msrb.gmra.mxu1 %vm293_vm8, %v1717_v34  ;;  %v4016_v34 = vld [vmem:[%s4251_s25 + $0x6] ss:$0 sm:$0xff] }
0x106e   :  { %2081 = vmatpush.msrb.mxu3 %v3812_v27  ;;  %2114 = vmatpush.msra.mxu0 %v3819_v33 }
0x1070   :  { %2115 = vmatpush.msra.mxu0 %v3818_v41 }
0x1072   :  { %2116 = vmatpush.msra.mxu0 %v3817_v42 }
0x1074   :  { %2117 = vmatpush.msra.mxu0 %v3816_v44 }
0x1075   :  { %3783 = vmatmul.msk.f32.gmra.mxu3 %vm132_vm0, %v4708_v55 }
0x10e8   :  { %v4758_v50 = vpop.f32.mrf.mxu3 }
0x10ea   :  { %v1738_v26 = vpop.f32.mrf.mxu1 }
0x10f0   :  { %v1803_v54 = vpop.f32.mrf.mxu3 }
0x10f1   :  { %v1804_v1 = vadd.f32 %v4015_v24, %v1803_v54 }
0x10f3   :  { %3791 = vmatpush.xpose.msk.msra.mxu1 %vm293_vm8, %v1804_v1 }
0x10f6   :  { %3792 = vmatmul.msk.f32.vlgmr.msra.gmra.mxu1 %vm293_vm8, %v1771_v32  ;;  %v3835_v32 = vld [vmem:[%s4246_s21 + $0xf8] sm:$0xff] }
0x10f7   :  { %1899 = vmatpush.msrb.mxu1 %v1837_v28  ;;  %v3811_v28 = vld [vmem:[%s4256_s29 + $0xd0] sm:$0xff]  ;;  %s5180_s29 = sld [smem:[#allocation16_spill]] }
0x10f8   :  { %v1806_v56 = vpop.f32.mrf.mxu3  ;;  %2082 = vmatpush.msrb.mxu3 %v3811_v28 }
0x10f9   :  { %v1807_v59 = vadd.f32 %v4015_v24, %v1806_v56  ;;  %2018 = vmatpush.msra.mxu1 %v3769_v25 }
0x10fa   :  { %2083 = vmatpush.msrb.mxu3 %v3810_v20 }
0x10fb   :  { %3794 = vmatpush.xpose.msk.msrb.mxu2 %vm293_vm8, %v1807_v59  ;;  %v3833_v59 = vld [vmem:[%s4246_s21 + $0xe8] sm:$0xff] }
0x10fc   :  { %2084 = vmatpush.msrb.mxu3 %v3809_v30 }
0x10fe   :  { %3795 = vmatmul.msk.f32.vlgmr.msrb.gmra.mxu2 %vm293_vm8, %v1774_v45 }
0x10ff   :  { %2048 = vmatpush.msra.mxu2 %v3805_v60  ;;  %v3832_v60 = vld [vmem:[%s4246_s21 + $0xe0] sm:$0xff]  ;;  %s5178_s21 = sld [smem:[#allocation14_spill]] }
0x1101   :  { %2049 = vmatpush.msra.mxu2 %v3804_v61 }
0x1103   :  { %2050 = vmatpush.msra.mxu2 %v3803_v62 }
0x1105   :  { %2051 = vmatpush.msra.mxu2 %v3802_v0 }
0x1106   :  { %3807 = vmatmul.msk.f32.vlgmr.msra.gmra.mxu2 %vm132_vm0, %v4699_v51 }
0x110e   :  { %3808 = vmatmul.msk.f32.gmra.mxu2 %vm132_vm0, %v4708_v55 }
0x1173   :  { %v1865_v2 = vpop.f32.mrf.mxu1 }
0x1174   :  { %v1868_v3 = vmul.f32 0.35355338, %v1865_v2  ;;  %v4018_v2 = vld [vmem:[%s4271_s14 + $0x6] ss:$0 sm:$0xff] }
0x1176   :  { %v1869_v4 = vadd.f32 %v4736_v14, %v1868_v3 }
0x1178   :  { %v1870_v22 = vsel %vm293_vm8, %v1869_v4, -inf }
0x1179   :  { %1871 = vmax.xlane.f32.xlu1 %v1870_v22 }
0x1181   :  { %v1927_v5 = vpop.f32.mrf.mxu2 }
0x1182   :  { %v1930_v29 = vmul.f32 0.35355338, %v1927_v5 }
0x1184   :  { %v1931_v6 = vadd.f32 %v4741_v18, %v1930_v29 }
0x1186   :  { %v1932_v57 = vsel %vm293_vm8, %v1931_v6, -inf }
0x1187   :  { %1933 = vmax.xlane.f32.xlu2 %v1932_v57 }
0x1189   :  { %v2053_v63 = vpop.f32.mrf.mxu2 }
0x118a   :  { %v2054_v52 = vadd.f32 %v4016_v34, %v2053_v63 }
0x1191   :  { %v2056_v54 = vpop.f32.mrf.mxu2 }
0x1192   :  { %v2057_v56 = vadd.f32 %v4016_v34, %v2056_v54  ;;  %v3846_v34 = vld [vmem:[%s4266_s8 + $0xe0] sm:$0xff] }
0x11ec   :  { %v1872_v7 = vpop.xlane.xlu1 %1871 }
0x11ed   :  { %v1873_v8 = vsub.f32 %v1869_v4, %v1872_v7 }
0x11ef   :  { %v1874_v9 = vmul.f32 1.442695, %v1873_v8  ;;  %v4019_v8 = vld [vmem:[%s4261_s3 + $0x7] ss:$0 sm:$0xff]  ;;  %s5181_s3 = sld [smem:[#allocation18_spill]] }
0x11f1   :  { %4093 = vpow2.f32 %v1874_v9 }
0x11f7   :  { %v4094_v13 = vpop.eup %4093 }
0x11f8   :  { %v1876_v15 = vsel %vm293_vm8, %v4094_v13, 0.0 }
0x11f9   :  { %1877 = vadd.xlane.f32.xlu2 %v1876_v15 }
0x11fa   :  { %v1934_v43 = vpop.xlane.xlu2 %1933 }
0x11fb   :  { %v1935_v16 = vsub.f32 %v1931_v6, %v1934_v43 }
0x11fd   :  { %v1936_v17 = vmul.f32 1.442695, %v1935_v16 }
0x11ff   :  { %4095 = vpow2.f32 %v1936_v17 }
0x1205   :  { %v4096_v19 = vpop.eup %4095 }
0x1206   :  { %v1938_v21 = vsel %vm293_vm8, %v4096_v19, 0.0 }
0x1207   :  { %1939 = vadd.xlane.f32.xlu0 %v1938_v21  ;;  %v4020_v21 = vld [vmem:[%s4251_s25 + $0x7] ss:$0 sm:$0xff]  ;;  %s5179_s25 = sld [smem:[#allocation15_spill]] }
0x126c   :  { %v1878_v31 = vpop.xlane.xlu2 %1877 }
0x126d   :  { %4097 = vrcp.f32 %v1878_v31 }
0x1273   :  { %v4098_v35 = vpop.eup %4097 }
0x1274   :  { %v1880_v37 = vmul.f32 %v4098_v35, %v4094_v13 }
0x1276   :  { %3793 = vmatmul.msk.f32.vlgmr.msrb.gmra.mxu1 %vm293_vm8, %v1880_v37 }
0x127a   :  { %v1940_v38 = vpop.xlane.xlu0 %1939 }
0x127b   :  { %4099 = vrcp.f32 %v1940_v38 }
0x127e   :  { %3800 = vmatmul.msk.f32.vlgmr.msra.gmra.mxu1 %vm293_vm8, %v4758_v50 }
0x1281   :  { %v4100_v39 = vpop.eup %4099 }
0x1282   :  { %v1942_v40 = vmul.f32 %v4100_v39, %v4096_v19 }
0x1284   :  { %3796 = vmatmul.msk.f32.vlgmr.msra.gmra.mxu3 %vm293_vm8, %v1942_v40 }
0x1286   :  { %3801 = vmatmul.msk.f32.gmra.mxu1 %vm293_vm8, %v1738_v26 }
0x128c   :  { %3814 = vmatmul.msk.f32.vlgmr.msrb.gmra.mxu3 %vm132_vm0, %v4699_v51 }
0x1294   :  { %3815 = vmatmul.msk.f32.gmra.mxu3 %vm132_vm0, %v4708_v55 }
0x12f3   :  { %v1901_v46 = vpop.f32.mrf.mxu1 }
0x12f4   :  { %3798 = vmatmul.msk.f32.vlgmr.msrb.gmra.mxu0 %vm293_vm8, %v1901_v46 }
0x12f5   :  { %2337 = vmatpush.msrb.mxu0 %v3842_v47 }
0x12f7   :  { %2338 = vmatpush.msrb.mxu0 %v3841_v48 }
0x12f9   :  { %2339 = vmatpush.msrb.mxu0 %v3840_v10  ;;  %v3829_v10 = vld [vmem:[%s4276_s19 + $0x30] sm:$0xff] }
0x12fb   :  { %2340 = vmatpush.msrb.mxu0 %v3839_v23  ;;  %v4827_v45 = vpop.f32.mrf.mxu1  ;;  %v3849_v23 = vld [vmem:[%s4266_s8 + $0xf8] sm:$0xff] }
0x1303   :  { %v2023_v62 = vpop.f32.mrf.mxu1 }
0x1307   :  { %v1963_v49 = vpop.f32.mrf.mxu3 }
0x1308   :  { %3799 = vmatmul.msk.f32.gmra.mxu0 %vm293_vm8, %v1963_v49  ;;  %v3848_v49 = vld [vmem:[%s4266_s8 + $0xf0] sm:$0xff] }
0x130f   :  { %v2086_v50 = vpop.f32.mrf.mxu3 }
0x1310   :  { %v2087_v24 = vadd.f32 %v4017_v12, %v2086_v50  ;;  %3821 = vmatmul.msk.f32.vlgmr.msra.gmra.mxu0 %vm132_vm0, %v4699_v51 }
0x1312   :  { %3823 = vmatpush.xpose.msk.msrb.mxu1 %vm293_vm8, %v2087_v24 }
0x1315   :  { %3824 = vmatmul.msk.f32.vlgmr.msrb.gmra.mxu1 %vm293_vm8, %v2054_v52 }
0x1317   :  { %v2089_v53 = vpop.f32.mrf.mxu3 }
0x1318   :  { %v2090_v1 = vadd.f32 %v4017_v12, %v2089_v53  ;;  %3822 = vmatmul.msk.f32.gmra.mxu0 %vm132_vm0, %v4708_v55  ;;  %v3847_v12 = vld [vmem:[%s4266_s8 + $0xe8] sm:$0xff]  ;;  %s5182_s8 = sld [smem:[#allocation17_spill]] }
0x131a   :  { %3826 = vmatpush.xpose.msk.msra.mxu3 %vm293_vm8, %v2090_v1 }
0x131d   :  { %3827 = vmatmul.msk.f32.vlgmr.msra.gmra.mxu3 %vm293_vm8, %v2057_v56 }
0x131e   :  { %2304 = vmatpush.msrb.mxu3 %v3835_v32  ;;  %v4021_v32 = vld [vmem:[%s4271_s14 + $0x7] ss:$0 sm:$0xff]  ;;  %s4217_s14 = smov [#allocation3]  }
0x1320   :  { %2305 = vmatpush.msrb.mxu3 %v3834_v58  ;;  %3844 = vmatmul.msk.f32.vlgmr.msrb.gmra.mxu0 %vm132_vm0, %v4699_v51 }
0x1322   :  { %2306 = vmatpush.msrb.mxu3 %v3833_v59 }
0x1324   :  { %2307 = vmatpush.msrb.mxu3 %v3832_v60 }
0x1325   :  { %3837 = vmatmul.msk.f32.vlgmr.msrb.gmra.mxu3 %vm132_vm0, %v4699_v51 }
0x1328   :  { %3845 = vmatmul.msk.f32.gmra.mxu0 %vm132_vm0, %v4708_v55 }
0x132d   :  { %3838 = vmatmul.msk.f32.gmra.mxu3 %vm132_vm0, %v4708_v55 }
0x1371   :  { %v4829_v61 = vpop.f32.mrf.mxu0 }
0x1385   :  { %v1994_v0 = vpop.f32.mrf.mxu0 }
0x1386   :  { %v4831_v26 = vadd.f32 %v2023_v62, %v1994_v0  ;;  %v2021_v62 = vadd.f32 %v4827_v45, %v4829_v61 }
0x138d   :  { %v2119_v3 = vpop.f32.mrf.mxu0 }
0x138e   :  { %v2120_v4 = vadd.f32 %v4018_v2, %v2119_v3 }
0x1390   :  { %2182 = vmatpush.msrb.mxu2 %v2120_v4 }
0x1392   :  { %v2148_v22 = vpop.f32.mrf.mxu1  ;;  %2272 = vmatpush.msra.mxu2 %v3829_v10 }
0x1393   :  { %v2151_v5 = vmul.f32 0.35355338, %v2148_v22 }
0x1395   :  { %v2122_v29 = vpop.f32.mrf.mxu0  ;;  %v2152_v6 = vadd.f32 %v4736_v14, %v2151_v5 }
0x1396   :  { %v2123_v57 = vadd.f32 %v4018_v2, %v2122_v29 }
0x1397   :  { %v2153_v7 = vsel %vm293_vm8, %v2152_v6, -inf }
0x1398   :  { %2154 = vmax.xlane.f32.xlu0 %v2153_v7  ;;  %2244 = vmatpush.msra.mxu1 %v2123_v57 }
0x139a   :  { %2370 = vmatpush.msrb.mxu1 %v3849_v23 }
0x139c   :  { %2371 = vmatpush.msrb.mxu1 %v3848_v49 }
0x139d   :  { %v2342_v9 = vpop.f32.mrf.mxu0 }
0x139e   :  { %v2343_v13 = vadd.f32 %v4019_v8, %v2342_v9  ;;  %2372 = vmatpush.msrb.mxu1 %v3847_v12 }
0x13a0   :  { %v2210_v15 = vpop.f32.mrf.mxu3  ;;  %2373 = vmatpush.msrb.mxu1 %v3846_v34  ;;  %v3867_v34 = vld [vmem:[%s4296_s12 + $0x30] sm:$0xff] }
0x13a1   :  { %v2213_v43 = vmul.f32 0.35355338, %v2210_v15 }
0x13a3   :  { %v2214_v16 = vadd.f32 %v4741_v18, %v2213_v43 }
0x13a5   :  { %v2345_v17 = vpop.f32.mrf.mxu0  ;;  %v2215_v19 = vsel %vm293_vm8, %v2214_v16, -inf }
0x13a6   :  { %v2346_v25 = vadd.f32 %v4019_v8, %v2345_v17  ;;  %2216 = vmax.xlane.f32.xlu1 %v2215_v19 }
0x13a8   :  { %v2309_v27 = vpop.f32.mrf.mxu3  ;;  %3856 = vmatpush.xpose.msk.msra.mxu0 %vm293_vm8, %v2346_v25 }
0x13a9   :  { %v2310_v28 = vadd.f32 %v4020_v21, %v2309_v27  ;;  %v3859_v27 = vld [vmem:[%s4276_s19 + $0x38] sm:$0xff]  ;;  %s3586_s19 = sshll.u32 %s4217_s14, 4  ;;  %s3587_s19 = int_to_ptr.vmem [resolvable:$true] %s3586_s19 }
0x13b0   :  { %v2312_v20 = vpop.f32.mrf.mxu3 }
0x13b1   :  { %v2313_v30 = vadd.f32 %v4020_v21, %v2312_v20 }
0x13b3   :  { %3857 = vmatmul.msk.f32.vlgmr.msra.gmra.mxu0 %vm293_vm8, %v2313_v30  ;;  %v4022_v30 = vld [vmem:[%s4281_s24 + $0x1] ss:$0 sm:$0xff]  ;;  %s3588_s24 = sshll.u32 %s4369_s4, 4  ;;  %s3589_s24 = int_to_ptr.hbm [resolvable:$true] %s3588_s24 }
0x140b   :  { %v2155_v31 = vpop.xlane.xlu0 %2154 }
0x140c   :  { %v2156_v35 = vsub.f32 %v2152_v6, %v2155_v31 }
0x140e   :  { %v2157_v37 = vmul.f32 1.442695, %v2156_v35 }
0x1410   :  { %4101 = vpow2.f32 %v2157_v37 }
0x1416   :  { %v4102_v38 = vpop.eup %4101 }
0x1417   :  { %v2159_v39 = vsel %vm293_vm8, %v4102_v38, 0.0 }
0x1418   :  { %2160 = vadd.xlane.f32.xlu2 %v2159_v39 }
0x1419   :  { %v2217_v40 = vpop.xlane.xlu1 %2216 }
0x141a   :  { %v2218_v36 = vsub.f32 %v2214_v16, %v2217_v40 }
0x141c   :  { %v2219_v33 = vmul.f32 1.442695, %v2218_v36 }
0x141e   :  { %4103 = vpow2.f32 %v2219_v33 }
0x1424   :  { %v4104_v41 = vpop.eup %4103 }
0x1425   :  { %v2221_v42 = vsel %vm293_vm8, %v4104_v41, 0.0 }
0x1426   :  { %2222 = vadd.xlane.f32.xlu0 %v2221_v42 }
0x1430   :  { %v2466_v44 = vpop.f32.mrf.mxu0 }
0x1431   :  { %v2469_v46 = vmul.f32 0.35355338, %v2466_v44 }
0x1433   :  { %v2470_v47 = vadd.f32 %v4741_v18, %v2469_v46 }
0x1435   :  { %v2471_v48 = vsel %vm293_vm8, %v2470_v47, -inf }
0x1436   :  { %2472 = vmax.xlane.f32.xlu2 %v2471_v48 }
0x148b   :  { %v2161_v63 = vpop.xlane.xlu2 %2160 }
0x148c   :  { %4105 = vrcp.f32 %v2161_v63  ;;  %v3868_v63 = vld [vmem:[%s4296_s12 + $0x38] sm:$0xff] }
0x1492   :  { %v4106_v50 = vpop.eup %4105 }
0x1493   :  { %v2163_v24 = vmul.f32 %v4106_v50, %v4102_v38  ;;  %v3866_v50 = vld [vmem:[%s4296_s12 + $0x28] sm:$0xff] }
0x1495   :  { %3825 = vmatmul.msk.f32.vlgmr.msrb.gmra.mxu2 %vm293_vm8, %v2163_v24  ;;  %v3865_v24 = vld [vmem:[%s4296_s12 + $0x20] sm:$0xff] }
0x1496   :  { %3853 = vmatpush.xpose.msk.msrb.mxu2 %vm293_vm8, %v2343_v13 }
0x1499   :  { %v2223_v18 = vpop.xlane.xlu0 %2222 }
0x149a   :  { %4107 = vrcp.f32 %v2223_v18 }
0x14a0   :  { %v4108_v52 = vpop.eup %4107 }
0x14a1   :  { %v2225_v53 = vmul.f32 %v4108_v52, %v4104_v41 }
0x14a3   :  { %3828 = vmatmul.msk.f32.vlgmr.msra.gmra.mxu1 %vm293_vm8, %v2225_v53 }
0x14a9   :  { %v2473_v4 = vpop.xlane.xlu2 %2472 }
0x14aa   :  { %v2474_v5 = vsub.f32 %v2470_v47, %v2473_v4  ;;  %v4023_v4 = vld [vmem:[%s5170_s0 + $0x1] ss:$0 sm:$0xff] }
0x14ab   :  { %3851 = vmatmul.msk.f32.vlgmr.msrb.gmra.mxu1 %vm132_vm0, %v4699_v51 }
0x14ac   :  { %v2475_v29 = vmul.f32 1.442695, %v2474_v5 }
0x14ae   :  { %4109 = vpow2.f32 %v2475_v29 }
0x14b3   :  { %3852 = vmatmul.msk.f32.gmra.mxu1 %vm132_vm0, %v4708_v55 }
0x14b4   :  { %v4110_v9 = vpop.eup %4109 }
0x14b5   :  { %v2477_v13 = vsel %vm293_vm8, %v4110_v9, 0.0 }
0x1518   :  { %v2184_v54 = vpop.f32.mrf.mxu2 }
0x1519   :  { %3830 = vmatmul.msk.f32.vlgmr.msra.gmra.mxu2 %vm293_vm8, %v2184_v54 }
0x151a   :  { %2528 = vmatpush.msra.mxu2 %v3859_v27  ;;  %v3881_v27 = vld [vmem:[%s5173_s17 + $0x78] sm:$0xff] }
0x151b   :  { %2760 = vmatpush.msrb.mxu0 %v3881_v27 }
0x1520   :  { %v2246_v1 = vpop.f32.mrf.mxu1 }
0x1521   :  { %3831 = vmatmul.msk.f32.gmra.mxu2 %vm293_vm8, %v2246_v1 }
0x1528   :  { %v2375_v56 = vpop.f32.mrf.mxu1 }
0x1529   :  { %v2376_v58 = vadd.f32 %v4021_v32, %v2375_v56  ;;  %3854 = vmatmul.msk.f32.vlgmr.msrb.gmra.mxu2 %vm293_vm8, %v2310_v28 }
0x152b   :  { %2438 = vmatpush.msra.mxu3 %v2376_v58 }
0x152d   :  { %2633 = vmatpush.msrb.mxu3 %v3868_v63 }
0x152f   :  { %2634 = vmatpush.msrb.mxu3 %v3867_v34  ;;  %v3875_v34 = vld [vmem:[%s5173_s17 + $0x48] sm:$0xff] }
0x1530   :  { %v2378_v59 = vpop.f32.mrf.mxu1 }
0x1531   :  { %v2379_v60 = vadd.f32 %v4021_v32, %v2378_v59  ;;  %2635 = vmatpush.msrb.mxu3 %v3866_v50 }
0x1533   :  { %2500 = vmatpush.msra.mxu1 %v2379_v60  ;;  %2636 = vmatpush.msrb.mxu3 %v3865_v24 }
0x159c   :  { %v2274_v0 = vpop.f32.mrf.mxu2 }
0x159d   :  { %v2280_v2 = vadd.f32 %v2274_v0, %v2021_v62 }
0x15a4   :  { %v2277_v3 = vpop.f32.mrf.mxu2 }
0x15a5   :  { %v2281_v22 = vadd.f32 %v2277_v3, %v4831_v26 }
0x15ac   :  { %v2404_v6 = vpop.f32.mrf.mxu2 }
0x15ad   :  { %v2407_v57 = vmul.f32 0.35355338, %v2404_v6  ;;  %v4024_v6 = vld [vmem:[%s5171_s5 + $0x1] ss:$0 sm:$0xff] }
0x15af   :  { %v2408_v7 = vadd.f32 %v4736_v14, %v2407_v57 }
0x15b1   :  { %v2409_v8 = vsel %vm293_vm8, %v2408_v7, -inf }
0x15b2   :  { %2410 = vmax.xlane.f32.xlu1 %v2409_v8 }
0x15ba   :  { %2478 = vadd.xlane.f32.xlu1 %v2477_v13 }
0x1625   :  { %v2411_v45 = vpop.xlane.xlu1 %2410 }
0x1626   :  { %v2412_v61 = vsub.f32 %v2408_v7, %v2411_v45 }
0x1628   :  { %v2413_v15 = vmul.f32 1.442695, %v2412_v61 }
0x162a   :  { %4111 = vpow2.f32 %v2413_v15 }
0x162d   :  { %v2479_v26 = vpop.xlane.xlu1 %2478 }
0x162e   :  { %4113 = vrcp.f32 %v2479_v26 }
0x1630   :  { %v4112_v43 = vpop.eup %4111 }
0x1631   :  { %v2415_v16 = vsel %vm293_vm8, %v4112_v43, 0.0 }
0x1632   :  { %2416 = vadd.xlane.f32.xlu0 %v2415_v16 }
0x1634   :  { %v4114_v14 = vpop.eup %4113 }
0x1635   :  { %v2481_v17 = vmul.f32 %v4114_v14, %v4110_v9 }
0x1637   :  { %3858 = vmatmul.msk.f32.vlgmr.msra.gmra.mxu1 %vm293_vm8, %v2481_v17 }
0x16a5   :  { %v2417_v19 = vpop.xlane.xlu0 %2416 }
0x16a6   :  { %4115 = vrcp.f32 %v2417_v19 }
0x16ac   :  { %v4116_v21 = vpop.eup %4115 }
0x16ad   :  { %v2419_v25 = vmul.f32 %v4116_v21, %v4112_v43  ;;  %v4025_v43 = vld [vmem:[%s5172_s13 + $0x1] ss:$0 sm:$0xff] }
0x16af   :  { %3855 = vmatmul.msk.f32.vlgmr.msra.gmra.mxu3 %vm293_vm8, %v2419_v25 }
0x16b4   :  { %v2502_v20 = vpop.f32.mrf.mxu1 }
0x1732   :  { %v2440_v28 = vpop.f32.mrf.mxu3 }
0x1733   :  { %3860 = vmatmul.msk.f32.vlgmr.msra.gmra.mxu2 %vm293_vm8, %v2440_v28 }
0x173b   :  { %3861 = vmatmul.msk.f32.gmra.mxu2 %vm293_vm8, %v2502_v20 }
0x17b6   :  { %v2530_v31 = vpop.f32.mrf.mxu2 }
0x17b7   :  { %v2536_v35 = vadd.f32 %v2530_v31, %v2280_v2  ;;  %v3880_v31 = vld [vmem:[%s5173_s17 + $0x70] sm:$0xff] }
0x17b8   :  { %2761 = vmatpush.msrb.mxu0 %v3880_v31 }
0x17b9   :  { %v2543_v37 = vadd.f32 %v4022_v30, %v2536_v35 }
0x17bb   :  { %v2545_v38 = vadd.f32 %v2543_v37, %v4699_v51 }
0x17bd   :  { %v2551_v39 = vsel %vm132_vm0, %v2545_v38, 0.0 }
0x17be   :  { %2552 = vadd.xlane.f32.xlu2 %v2551_v39  ;;  %v2533_v40 = vpop.f32.mrf.mxu2  ;;  %v3879_v39 = vld [vmem:[%s5173_s17 + $0x68] sm:$0xff] }
0x17bf   :  { %v2537_v36 = vadd.f32 %v2533_v40, %v2281_v22  ;;  %2762 = vmatpush.msrb.mxu0 %v3879_v39 }
0x17c1   :  { %v2544_v33 = vadd.f32 %v4022_v30, %v2537_v36 }
0x17c3   :  { %v2546_v41 = vadd.f32 %v2544_v33, %v4708_v55 }
0x17c5   :  { %v2554_v42 = vsel %vm132_vm0, %v2546_v41, 0.0 }
0x17c6   :  { %2555 = vadd.xlane.f32.xlu0 %v2554_v42 }
0x1831   :  { %v2553_v44 = vpop.xlane.xlu2 %2552 }
0x1832   :  { %v2557_v46 = vmul.f32 %v2553_v44, %v4380_v11 }
0x1834   :  { %v2559_v47 = vsub.f32 %v2545_v38, %v2557_v46 }
0x1836   :  { %v2561_v51 = vmul.f32 %v2559_v47, %v2559_v47 }
0x1838   :  { %v2563_v48 = vsel %vm132_vm0, %v2561_v51, 0.0 }
0x1839   :  { %2564 = vadd.xlane.f32.xlu1 %v2563_v48  ;;  %v2556_v10 = vpop.xlane.xlu0 %2555 }
0x183a   :  { %v2558_v23 = vmul.f32 %v2556_v10, %v4380_v11 }
0x183c   :  { %v2560_v49 = vsub.f32 %v2546_v41, %v2558_v23  ;;  %v3878_v41 = vld [vmem:[%s5173_s17 + $0x60] sm:$0xff]  ;;  %v3876_v23 = vld [vmem:[%s5173_s17 + $0x50] sm:$0xff] }
0x183d   :  { %2763 = vmatpush.msrb.mxu0 %v3878_v41 }
0x183e   :  { %v2562_v12 = vmul.f32 %v2560_v49, %v2560_v49 }
0x1840   :  { %v2566_v55 = vsel %vm132_vm0, %v2562_v12, 0.0 }
0x1841   :  { %2567 = vadd.xlane.f32.xlu2 %v2566_v55 }
0x18ac   :  { %v2565_v18 = vpop.xlane.xlu1 %2564 }
0x18ad   :  { %v2569_v52 = vmul.f32 %v2565_v18, %v4380_v11 }
0x18af   :  { %v2571_v53 = vadd.f32 1e-05, %v2569_v52  ;;  %v3874_v52 = vld [vmem:[%s5173_s17 + $0x40] sm:$0xff] }
0x18b1   :  { %4117 = vrsqrt.f32 %v2571_v53  ;;  %vm2579_vm2 = vweird.f32 %v2571_v53 }
0x18b4   :  { %v2568_v54 = vpop.xlane.xlu2 %2567 }
0x18b5   :  { %v2570_v1 = vmul.f32 %v2568_v54, %v4380_v11 }
0x18b7   :  { %v4118_v32 = vpop.eup %4117  ;;  %v2572_v56 = vadd.f32 1e-05, %v2570_v1 }
0x18b8   :  { %v2574_v58 = vmul.f32 %v4118_v32, %v2571_v53  ;;  %vm2580_vm1 = vweird.f32 %v4118_v32 }
0x18b9   :  { %4119 = vrsqrt.f32 %v2572_v56  ;;  %vm2581_vm3 = vmor %vm2579_vm2, %vm2580_vm1  ;;  %vm2589_vm6 = vweird.f32 %v2572_v56 }
0x18ba   :  { %v2575_v59 = vmul.f32 %v4118_v32, %v2574_v58 }
0x18bc   :  { %v2576_v60 = vmul.f32 0.5, %v2575_v59 }
0x18be   :  { %v2577_v62 = vsub.f32 1.5, %v2576_v60 }
0x18bf   :  { %v4120_v0 = vpop.eup %4119 }
0x18c0   :  { %v2578_v2 = vmul.f32 %v4118_v32, %v2577_v62  ;;  %v2584_v3 = vmul.f32 %v4120_v0, %v2572_v56  ;;  %vm2590_vm4 = vweird.f32 %v4120_v0 }
0x18c1   :  { %vm2591_vm7 = vmor %vm2589_vm6, %vm2590_vm4 }
0x18c2   :  { %v2582_v22 = vsel %vm2581_vm3, %v4118_v32, %v2578_v2  ;;  %v2585_v5 = vmul.f32 %v4120_v0, %v2584_v3 }
0x18c3   :  { %v2593_v29 = vmul.f32 %v2582_v22, %v2559_v47  ;;  %v3877_v47 = vld [vmem:[%s5173_s17 + $0x58] sm:$0xff] }
0x18c4   :  { %v2586_v57 = vmul.f32 0.5, %v2585_v5  ;;  %2764 = vmatpush.msrb.mxu0 %v3877_v47 }
0x18c5   :  { %v2598_v7 = vmul.f32 %v4023_v4, %v2593_v29 }
0x18c6   :  { %v2587_v8 = vsub.f32 1.5, %v2586_v57  ;;  %2765 = vmatpush.msrb.mxu0 %v3876_v23 }
0x18c7   :  { %v4891_v9 = vadd.f32 %v4024_v6, %v2598_v7 }
0x18c8   :  { %v2588_v13 = vmul.f32 %v4120_v0, %v2587_v8  ;;  %2766 = vmatpush.msrb.mxu0 %v3875_v34  ;;  %v4026_v34 = vld [vmem:[%s5174_s6 + $0x1] ss:$0 sm:$0xff] }
0x18c9   :  { %3870 = vmatmul.msk.f32.vlgmr.msrb.gmra.mxu3 %vm132_vm0, %v4891_v9 }
0x18ca   :  { %v2592_v45 = vsel %vm2591_vm7, %v4120_v0, %v2588_v13  ;;  %2767 = vmatpush.msrb.mxu0 %v3874_v52 }
0x18cb   :  { %v2594_v61 = vmul.f32 %v2592_v45, %v2560_v49 }
0x18cd   :  { %v2599_v15 = vmul.f32 %v4023_v4, %v2594_v61 }
0x18cf   :  { %v4895_v26 = vadd.f32 %v4024_v6, %v2599_v15 }
0x18d1   :  { %3871 = vmatmul.msk.f32.gmra.mxu3 %vm132_vm0, %v4895_v26 }
0x194c   :  { %v2638_v16 = vpop.f32.mrf.mxu3 }
0x194d   :  { %v4900_v14 = vadd.f32 %v4025_v43, %v2638_v16 }
0x194f   :  { %v4903_v17 = vmul.f32 0.70710677, %v4900_v14 }
0x1951   :  { %v2648_v19 = vmul.f32 %v4903_v17, %v4903_v17 }
0x1953   :  { %v2649_v21 = vmin.f32 %v2648_v19, 16.0 }
0x1954   :  { %v2641_v25 = vpop.f32.mrf.mxu3 }
0x1955   :  { %v2650_v28 = vmul.f32 2.1237322e-06, %v2649_v21  ;;  %v2661_v20 = vmul.f32 3.8918573e-05, %v2649_v21  ;;  %v4908_v30 = vadd.f32 %v4025_v43, %v2641_v25 }
0x1957   :  { %v2651_v35 = vadd.f32 0.00028619796, %v2650_v28  ;;  %v2662_v37 = vadd.f32 0.001143296, %v2661_v20  ;;  %v4912_v38 = vmul.f32 0.70710677, %v4908_v30 }
0x1959   :  { %v2652_v40 = vmul.f32 %v2651_v35, %v2649_v21  ;;  %v2663_v36 = vmul.f32 %v2662_v37, %v2649_v21  ;;  %v2688_v33 = vmul.f32 %v4912_v38, %v4912_v38 }
0x195b   :  { %v2664_v42 = vadd.f32 0.014752088, %v2663_v36  ;;  %v2653_v44 = vadd.f32 0.0036580483, %v2652_v40  ;;  %v2689_v46 = vmin.f32 %v2688_v33, 16.0 }
0x195d   :  { %v2665_v51 = vmul.f32 %v2664_v42, %v2649_v21  ;;  %v2690_v48 = vmul.f32 2.1237322e-06, %v2689_v46  ;;  %v2701_v10 = vmul.f32 3.8918573e-05, %v2689_v46  ;;  %v2654_v12 = vmul.f32 %v2653_v44, %v2649_v21 }
0x195e   :  { %v2644_v44 = vmul.f32 0.5, %v4900_v14 }
0x195f   :  { %v2666_v49 = vadd.f32 0.112945676, %v2665_v51  ;;  %v2691_v55 = vadd.f32 0.00028619796, %v2690_v48  ;;  %v2702_v63 = vadd.f32 0.001143296, %v2701_v10 }
0x1960   :  { %v2655_v54 = vadd.f32 0.05243302, %v2654_v12 }
0x1961   :  { %v2667_v50 = vmul.f32 %v2666_v49, %v2649_v21  ;;  %v2692_v24 = vmul.f32 %v2691_v55, %v2689_v46  ;;  %v2703_v18 = vmul.f32 %v2702_v63, %v2689_v46  ;;  %v2645_v55 = vmul.f32 0.5, %v4908_v30 }
0x1962   :  { %v2656_v60 = vmul.f32 %v2655_v54, %v2649_v21 }
0x1963   :  { %v2668_v53 = vadd.f32 0.4994258, %v2667_v50  ;;  %v2704_v1 = vadd.f32 0.014752088, %v2703_v18  ;;  %v2693_v56 = vadd.f32 0.0036580483, %v2692_v24 }
0x1964   :  { %v2657_v3 = vadd.f32 0.18741608, %v2656_v60 }
0x1965   :  { %v2669_v32 = vmul.f32 %v2668_v53, %v2649_v21  ;;  %v2705_v58 = vmul.f32 %v2704_v1, %v2689_v46  ;;  %v2694_v0 = vmul.f32 %v2693_v56, %v2689_v46 }
0x1966   :  { %v2658_v6 = vmul.f32 %v2657_v3, %v2649_v21  ;;  %v3892_v3 = vld [vmem:[%s5177_s9 + $0x38] sm:$0xff] }
0x1967   :  { %v2670_v59 = vadd.f32 1.0, %v2669_v32  ;;  %v2706_v62 = vadd.f32 0.112945676, %v2705_v58  ;;  %v2695_v22 = vadd.f32 0.05243302, %v2694_v0  ;;  %2894 = vmatpush.msrb.mxu2 %v3892_v3 }
0x1968   :  { %v2659_v61 = vadd.f32 1.1283791, %v2658_v6  ;;  %v2836_v6 = vld [vmem:[%s5177_s9 + $0x8] sm:$0xff] }
0x1969   :  { %4121 = vrcp.f32 %v2670_v59  ;;  %v2707_v2 = vmul.f32 %v2706_v62, %v2689_v46  ;;  %v2696_v8 = vmul.f32 %v2695_v22, %v2689_v46  ;;  %v2682_v45 = vand.u32 2147483648, %v2670_v59  ;;  %v2837_v22 = vld [vmem:[%s5177_s9 + $0x10] sm:$0xff] }
0x196a   :  { %v2680_v43 = vand.u32 2147483647, %v2670_v59  ;;  %vm2676_vm10 = vweird.f32 %v2670_v59  ;;  %v2660_v28 = vmul.f32 %v2659_v61, %v4903_v17 }
0x196b   :  { %v2708_v4 = vadd.f32 0.4994258, %v2707_v2  ;;  %v2697_v16 = vadd.f32 0.18741608, %v2696_v8  ;;  %v2683_v25 = vor.u32 1.1754944e-38, %v2682_v45  ;;  %v2838_v2 = vld [vmem:[%s5177_s9 + $0x18] sm:$0xff] }
0x196c   :  { %vm2681_vm12 = vcmp.eq.f32.partialorder %v2680_v43, 8.507059e+37  ;;  %2861 = vmatpush.msrb.mxu1 %v2838_v2  ;;  %v2835_v8 = vld [vmem:[%s5177_s9] sm:$0xff]  ;;  %v4994_v2 = vld [vmem:[%s5179_s25 + $0x8] sm:$0xff] }
0x196d   :  { %v2709_v5 = vmul.f32 %v2708_v4, %v2689_v46  ;;  %v2698_v31 = vmul.f32 %v2697_v16, %v2689_v46  ;;  %v3899_v4 = vld [vmem:[%s5177_s9 + $0x58] sm:$0xff]  ;;  %v3896_v45 = vld [vmem:[%s5177_s9 + $0x40] sm:$0xff] }
0x196e   :  { %2927 = vmatpush.msra.mxu3 %v3899_v4  ;;  %2862 = vmatpush.msrb.mxu1 %v2837_v22  ;;  %v3906_v16 = vld [vmem:[%s5177_s9 + $0x78] sm:$0xff] }
0x196f   :  { %v4122_v29 = vpop.eup %4121  ;;  %v2710_v7 = vadd.f32 1.0, %v2709_v5  ;;  %v2699_v33 = vadd.f32 1.1283791, %v2698_v31  ;;  %v3891_v5 = vld [vmem:[%s5177_s9 + $0x30] sm:$0xff] }
0x1970   :  { %v2672_v57 = vmul.f32 %v4122_v29, %v2670_v59  ;;  %vm2677_vm9 = vweird.f32 %v4122_v29  ;;  %2895 = vmatpush.msrb.mxu2 %v3891_v5  ;;  %2863 = vmatpush.msrb.mxu1 %v2836_v6  ;;  %v5004_v6 = vld [vmem:[%s5179_s25 + $0x10] sm:$0xff] }
0x1971   :  { %4123 = vrcp.f32 %v2710_v7  ;;  %vm2678_vm11 = vmor %vm2676_vm10, %vm2677_vm9  ;;  %v2722_v36 = vand.u32 2147483648, %v2710_v7  ;;  %v2720_v42 = vand.u32 2147483647, %v2710_v7  ;;  %vm2716_vm14 = vweird.f32 %v2710_v7 }
0x1972   :  { %v2673_v13 = vsub.f32 1.0, %v2672_v57  ;;  %v2700_v46 = vmul.f32 %v2699_v33, %v4912_v38  ;;  %v3890_v57 = vld [vmem:[%s5177_s9 + $0x28] sm:$0xff]  ;;  %2864 = vmatpush.msrb.mxu1 %v2835_v8  ;;  %v2976_v8 = vld [vmem:[%s5180_s29 + $0x10] sm:$0xff]  ;;  %vm3195_vm9 = vcmask 7168   ;;  %vm3573_vm10 = vcmask 9216  }
0x1973   :  { %v2723_v48 = vor.u32 1.1754944e-38, %v2722_v36  ;;  %vm2721_vm1 = vcmp.eq.f32.partialorder %v2720_v42, 8.507059e+37  ;;  %2896 = vmatpush.msrb.mxu2 %v3890_v57 }
0x1974   :  { %v2674_v15 = vmul.f32 %v4122_v29, %v2673_v13  ;;  %v3889_v13 = vld [vmem:[%s5177_s9 + $0x20] sm:$0xff]  ;;  %2960 = vmatpush.msra.mxu1 %v3906_v16 }
0x1975   :  { %2897 = vmatpush.msrb.mxu2 %v3889_v13 }
0x1976   :  { %v2675_v19 = vadd.f32 %v4122_v29, %v2674_v15 }
0x1977   :  { %v4124_v27 = vpop.eup %4123 }
0x1978   :  { %v2679_v20 = vsel %vm2678_vm11, %v4122_v29, %v2675_v19  ;;  %v2712_v35 = vmul.f32 %v4124_v27, %v2710_v7  ;;  %vm2717_vm13 = vweird.f32 %v4124_v27  ;;  %v3898_v29 = vld [vmem:[%s5177_s9 + $0x50] sm:$0xff]  ;;  %v3897_v7 = vld [vmem:[%s5177_s9 + $0x48] sm:$0xff] }
0x1979   :  { %v2684_v21 = vsel %vm2681_vm12, %v2683_v25, %v2679_v20  ;;  %vm2718_vm15 = vmor %vm2716_vm14, %vm2717_vm13  ;;  %2928 = vmatpush.msra.mxu3 %v3898_v29  ;;  %v3905_v19 = vld [vmem:[%s5177_s9 + $0x70] sm:$0xff]  ;;  %v2975_v29 = vld [vmem:[%s5180_s29 + $0x8] sm:$0xff] }
0x197a   :  { %v2685_v37 = vmul.f32 %v2684_v21, %v2660_v28  ;;  %v2713_v39 = vsub.f32 1.0, %v2712_v35  ;;  %2961 = vmatpush.msra.mxu1 %v3905_v19  ;;  %v3903_v21 = vld [vmem:[%s5177_s9 + $0x60] sm:$0xff] }
0x197b   :  { %2929 = vmatpush.msra.mxu3 %v3897_v7 }
0x197c   :  { %v3872_v40 = vclamps-f32 %v2685_v37, 1.0  ;;  %v2714_v41 = vmul.f32 %v4124_v27, %v2713_v39 }
0x197d   :  { %2930 = vmatpush.msra.mxu3 %v3896_v45 }
0x197e   :  { %v2728_v47 = vadd.f32 1.0, %v3872_v40  ;;  %v2715_v51 = vadd.f32 %v4124_v27, %v2714_v41  ;;  %v4027_v41 = vld [vmem:[%s5175_s16 + $0x1] ss:$0 sm:$0xff] }
0x1980   :  { %v2730_v17 = vmul.f32 %v2728_v47, %v2644_v44  ;;  %v2719_v10 = vsel %vm2718_vm15, %v4124_v27, %v2715_v51  ;;  %v3904_v27 = vld [vmem:[%s5177_s9 + $0x68] sm:$0xff]  ;;  %v4028_v44 = vld [vmem:[%s5176_s15 + $0x1] ss:$0 sm:$0xff] }
0x1981   :  { %v2724_v23 = vsel %vm2721_vm1, %v2723_v48, %v2719_v10  ;;  %2962 = vmatpush.msra.mxu1 %v3904_v27 }
0x1982   :  { %3883 = vmatmul.msk.f32.vlgmr.msrb.gmra.mxu0 %vm1424_vm5, %v2730_v17  ;;  %v2725_v49 = vmul.f32 %v2724_v23, %v2700_v46 }
0x1983   :  { %2963 = vmatpush.msra.mxu1 %v3903_v21 }
0x1984   :  { %v3873_v12 = vclamps-f32 %v2725_v49, 1.0 }
0x1986   :  { %v2729_v63 = vadd.f32 1.0, %v3873_v12 }
0x1988   :  { %v2731_v14 = vmul.f32 %v2729_v63, %v2645_v55 }
0x198a   :  { %3884 = vmatmul.msk.f32.gmra.mxu0 %vm1424_vm5, %v2731_v14 }
0x19ff   :  { %v2769_v50 = vpop.f32.mrf.mxu0 }
0x1a00   :  { %v2770_v24 = vadd.f32 %v4026_v34, %v2769_v50  ;;  %v4031_v50 = vld [vmem:[%s5178_s21 + $0x2] ss:$0 sm:$0xff] }
0x1a02   :  { %v2775_v18 = vadd.f32 %v2770_v24, %v4891_v9  ;;  %v4029_v24 = vld [vmem:[%s5178_s21] ss:$0 sm:$0xff] }
0x1a04   :  { %v2781_v38 = vsel %vm132_vm0, %v2775_v18, 0.0 }
0x1a05   :  { %2782 = vadd.xlane.f32.xlu0 %v2781_v38 }
0x1a07   :  { %v2772_v52 = vpop.f32.mrf.mxu0 }
0x1a08   :  { %v2773_v53 = vadd.f32 %v4026_v34, %v2772_v52  ;;  %v4030_v34 = vld [vmem:[%s5178_s21 + $0x1] ss:$0 sm:$0xff] }
0x1a0a   :  { %v2776_v54 = vadd.f32 %v2773_v53, %v4895_v26 }
0x1a0c   :  { %v2784_v30 = vsel %vm132_vm0, %v2776_v54, 0.0 }
0x1a0d   :  { %2785 = vadd.xlane.f32.xlu1 %v2784_v30  ;;  %v3263_v30 = vld [vmem:[%s4359_s20 + $0x18] sm:$0xff] }
0x1a78   :  { %v2783_v1 = vpop.xlane.xlu0 %2782 }
0x1a79   :  { %v2787_v32 = vmul.f32 %v2783_v1, %v4380_v11 }
0x1a7b   :  { %v4934_v56 = vsub.f32 %v2775_v18, %v2787_v32  ;;  %v2974_v32 = vld [vmem:[%s5180_s29] sm:$0xff] }
0x1a7d   :  { %v2791_v9 = vmul.f32 %v4934_v56, %v4934_v56 }
0x1a7f   :  { %v2793_v58 = vsel %vm132_vm0, %v2791_v9, 0.0 }
0x1a80   :  { %2794 = vadd.xlane.f32.xlu2 %v2793_v58  ;;  %v2786_v26 = vpop.xlane.xlu1 %2785  ;;  %v3262_v58 = vld [vmem:[%s4359_s20 + $0x10] sm:$0xff] }
0x1a81   :  { %v2788_v59 = vmul.f32 %v2786_v26, %v4380_v11  ;;  %v3261_v26 = vld [vmem:[%s4359_s20 + $0x8] sm:$0xff] }
0x1a83   :  { %v4940_v60 = vsub.f32 %v2776_v54, %v2788_v59  ;;  %v4979_v54 = vld [vmem:[%s5179_s25] sm:$0xff] }
0x1a84   :  { %v4032_v59 = vld [vmem:[%s5178_s21 + $0x3] ss:$0 sm:$0xff] }
0x1a85   :  { %v2792_v62 = vmul.f32 %v4940_v60, %v4940_v60 }
0x1a87   :  { %v2796_v0 = vsel %vm132_vm0, %v2792_v62, 0.0 }
0x1a88   :  { %2797 = vadd.xlane.f32.xlu0 %v2796_v0 }
0x1af3   :  { %v2795_v61 = vpop.xlane.xlu2 %2794 }
0x1af4   :  { %v2799_v15 = vmul.f32 %v2795_v61, %v4380_v11 }
0x1af6   :  { %v2801_v43 = vadd.f32 1e-05, %v2799_v15 }
0x1af8   :  { %4125 = vrsqrt.f32 %v2801_v43  ;;  %vm2809_vm2 = vweird.f32 %v2801_v43 }
0x1afb   :  { %v2798_v25 = vpop.xlane.xlu0 %2797 }
0x1afc   :  { %v2800_v28 = vmul.f32 %v2798_v25, %v4380_v11 }
0x1afe   :  { %v4126_v20 = vpop.eup %4125  ;;  %v2802_v35 = vadd.f32 1e-05, %v2800_v28 }
0x1aff   :  { %v2804_v31 = vmul.f32 %v4126_v20, %v2801_v43  ;;  %vm2810_vm5 = vweird.f32 %v4126_v20 }
0x1b00   :  { %4127 = vrsqrt.f32 %v2802_v35  ;;  %vm2811_vm3 = vmor %vm2809_vm2, %vm2810_vm5  ;;  %vm2819_vm6 = vweird.f32 %v2802_v35 }
0x1b01   :  { %v2805_v37 = vmul.f32 %v4126_v20, %v2804_v31 }
0x1b03   :  { %v2806_v39 = vmul.f32 0.5, %v2805_v37 }
0x1b05   :  { %v2807_v40 = vsub.f32 1.5, %v2806_v39 }
0x1b06   :  { %v4128_v36 = vpop.eup %4127 }
0x1b07   :  { %v2808_v33 = vmul.f32 %v4126_v20, %v2807_v40  ;;  %v2814_v11 = vmul.f32 %v4128_v36, %v2802_v35  ;;  %vm2820_vm4 = vweird.f32 %v4128_v36 }
0x1b08   :  { %vm2821_vm7 = vmor %vm2819_vm6, %vm2820_vm4 }
0x1b09   :  { %v2812_v42 = vsel %vm2811_vm3, %v4126_v20, %v2808_v33  ;;  %v2815_v51 = vmul.f32 %v4128_v36, %v2814_v11 }
0x1b0a   :  { %v2823_v47 = vmul.f32 %v2812_v42, %v4934_v56 }
0x1b0b   :  { %v2816_v48 = vmul.f32 0.5, %v2815_v51 }
0x1b0c   :  { %v2828_v17 = vmul.f32 %v4027_v41, %v2823_v47 }
0x1b0d   :  { %v2817_v10 = vsub.f32 1.5, %v2816_v48 }
0x1b0e   :  { %v2833_v46 = vadd.f32 %v4028_v44, %v2828_v17 }
0x1b0f   :  { %v2818_v23 = vmul.f32 %v4128_v36, %v2817_v10 }
0x1b10   :  { %3887 = vmatmul.msk.f32.vlgmr.msrb.gmra.mxu1 %vm132_vm0, %v2833_v46  ;;  %3894 = vmatmul.msk.f32.vlgmr.msrb.gmra.mxu2 %vm132_vm0, %v2833_v46 }
0x1b11   :  { %3901 = vmatmul.msk.f32.vlgmr.msra.gmra.mxu3 %vm132_vm0, %v2833_v46  ;;  %v2822_v49 = vsel %vm2821_vm7, %v4128_v36, %v2818_v23 }
0x1b12   :  { %v2824_v12 = vmul.f32 %v2822_v49, %v4940_v60  ;;  %v3260_v60 = vld [vmem:[%s4359_s20] sm:$0xff]  ;;  %s4175_s20 = scalar_lea.hbm %s4369_s4, 2 }
0x1b14   :  { %v2829_v55 = vmul.f32 %v4027_v41, %v2824_v12 }
0x1b16   :  { %v2834_v63 = vadd.f32 %v4028_v44, %v2829_v55  ;;  %v5040_v44 = vld [vmem:[%s5181_s3] ss:$0 sm:$0xff] }
0x1b18   :  { %3888 = vmatmul.msk.f32.gmra.mxu1 %vm132_vm0, %v2834_v63  ;;  %3895 = vmatmul.msk.f32.gmra.mxu2 %vm132_vm0, %v2834_v63 }
0x1b19   :  { %3902 = vmatmul.msk.f32.gmra.mxu3 %vm132_vm0, %v2834_v63 }
0x1b20   :  { %3908 = vmatmul.msk.f32.vlgmr.msra.gmra.mxu1 %vm132_vm0, %v2833_v46 }
0x1b28   :  { %3909 = vmatmul.msk.f32.gmra.mxu1 %vm132_vm0, %v2834_v63 }
0x1b8d   :  { %v2866_v14 = vpop.f32.mrf.mxu1 }
0x1b8e   :  { %v2867_v56 = vadd.f32 %v4029_v24, %v2866_v14 }
0x1b93   :  { %v2899_v18 = vpop.f32.mrf.mxu2 }
0x1b94   :  { %v2900_v38 = vadd.f32 %v4030_v34, %v2899_v18  ;;  %v2932_v52 = vpop.f32.mrf.mxu3 }
0x1b95   :  { %v2933_v53 = vadd.f32 %v4031_v50, %v2932_v52  ;;  %v2869_v1 = vpop.f32.mrf.mxu1 }
0x1b96   :  { %3002 = vmatpush.msra.mxu0 %v2900_v38  ;;  %v4983_v9 = vadd.f32 %v4029_v24, %v2869_v1  ;;  %v5057_v1 = vld [vmem:[#allocation2] ss:$0 sm:$0xff] }
0x1b97   :  { %3037 = vmatpush.msra.mxu2 %v2933_v53  ;;  %3063 = vmatpush.msrb.mxu3 %v2933_v53 }
0x1b98   :  { %3913 = vmatmul.msk.f32.vlgmr.msra.gmra.mxu2 %vm293_vm8, %v4979_v54  ;;  %3916 = vmatmul.msk.f32.vlgmr.msrb.gmra.mxu3 %vm293_vm8, %v2974_v32 }
0x1b99   :  { %3280 = vmatpush.msra.mxu3 %v3263_v30  ;;  %3141 = vmatpush.msrb.mxu2 %v2867_v56 }
0x1b9a   :  { %3910 = vmatmul.msk.f32.vlgmr.msra.gmra.mxu0 %vm293_vm8, %v2974_v32 }
0x1b9b   :  { %3281 = vmatpush.msra.mxu3 %v3262_v58  ;;  %v2902_v62 = vpop.f32.mrf.mxu2 }
0x1b9c   :  { %v2935_v0 = vpop.f32.mrf.mxu3  ;;  %v2903_v5 = vadd.f32 %v4030_v34, %v2902_v62 }
0x1b9d   :  { %3282 = vmatpush.msra.mxu3 %v3261_v26  ;;  %v2936_v3 = vadd.f32 %v4031_v50, %v2935_v0  ;;  %v2965_v4 = vpop.f32.mrf.mxu1 }
0x1b9e   :  { %v2966_v22 = vadd.f32 %v4032_v59, %v2965_v4 }
0x1b9f   :  { %3283 = vmatpush.msra.mxu3 %v3260_v60 }
0x1ba0   :  { %3914 = vmatmul.msk.f32.gmra.mxu2 %vm293_vm8, %v4994_v2  ;;  %3089 = vmatpush.msrb.mxu1 %v2966_v22 }
0x1ba1   :  { %3329 = vmatpush.msrb.mxu3 %v2936_v3  ;;  %3115 = vmatpush.msrb.mxu0 %v2966_v22 }
0x1ba2   :  { %3303 = vmatpush.msra.mxu1 %v2903_v5  ;;  %3911 = vmatmul.msk.f32.gmra.mxu0 %vm293_vm8, %v2975_v29 }
0x1ba3   :  { %3355 = vmatpush.msra.mxu0 %v2936_v3  ;;  %3919 = vmatmul.msk.f32.vlgmr.msrb.gmra.mxu1 %vm293_vm8, %v4979_v54  ;;  %v3191_v3 = vld [vmem:[%s5182_s8 + $0x10] sm:$0xff] }
0x1ba4   :  { %3917 = vmatmul.msk.f32.gmra.mxu3 %vm293_vm8, %v2975_v29 }
0x1ba5   :  { %v2968_v57 = vpop.f32.mrf.mxu1 }
0x1ba6   :  { %v2969_v7 = vadd.f32 %v4032_v59, %v2968_v57 }
0x1ba8   :  { %3915 = vmatmul.msk.f32.gmra.mxu2 %vm293_vm8, %v5004_v6  ;;  %3407 = vmatpush.msrb.mxu1 %v2969_v7 }
0x1ba9   :  { %3381 = vmatpush.msra.mxu2 %v2969_v7 }
0x1baa   :  { %3912 = vmatmul.msk.f32.gmra.mxu0 %vm293_vm8, %v2976_v8 }
0x1bab   :  { %3920 = vmatmul.msk.f32.gmra.mxu1 %vm293_vm8, %v4994_v2 }
0x1bac   :  { %3918 = vmatmul.msk.f32.gmra.mxu3 %vm293_vm8, %v2976_v8 }
0x1bb0   :  { %3925 = vmatmul.msk.f32.vlgmr.msrb.gmra.mxu2 %vm293_vm8, %v4979_v54 }
0x1bb2   :  { %3922 = vmatmul.msk.f32.vlgmr.msrb.gmra.mxu0 %vm293_vm8, %v2974_v32 }
0x1bb3   :  { %3921 = vmatmul.msk.f32.gmra.mxu1 %vm293_vm8, %v5004_v6  ;;  %3560 = vmatpush.msrb.mxu0 %v3263_v30 }
0x1bb5   :  { %3561 = vmatpush.msrb.mxu0 %v3262_v58 }
0x1bb7   :  { %3562 = vmatpush.msrb.mxu0 %v3261_v26  ;;  %v3190_v26 = vld [vmem:[%s5182_s8 + $0x8] sm:$0xff] }
0x1bb8   :  { %3926 = vmatmul.msk.f32.gmra.mxu2 %vm293_vm8, %v4994_v2 }
0x1bb9   :  { %3563 = vmatpush.msrb.mxu0 %v3260_v60  ;;  %v3189_v60 = vld [vmem:[%s5182_s8] sm:$0xff] }
0x1bba   :  { %3923 = vmatmul.msk.f32.gmra.mxu0 %vm293_vm8, %v2975_v29 }
0x1bbb   :  { %3929 = vmatmul.msk.f32.vlgmr.msra.gmra.mxu1 %vm293_vm8, %v2974_v32 }
0x1bc0   :  { %3927 = vmatmul.msk.f32.gmra.mxu2 %vm293_vm8, %v5004_v6 }
0x1bc2   :  { %3924 = vmatmul.msk.f32.gmra.mxu0 %vm293_vm8, %v2976_v8 }
0x1bc3   :  { %3930 = vmatmul.msk.f32.gmra.mxu1 %vm293_vm8, %v2975_v29 }
0x1bc8   :  { %3938 = vmatmul.msk.f32.vlgmr.msra.gmra.mxu2 %vm293_vm8, %v4979_v54 }
0x1bca   :  { %3935 = vmatmul.msk.f32.vlgmr.msra.gmra.mxu0 %vm293_vm8, %v2974_v32 }
0x1bcb   :  { %3931 = vmatmul.msk.f32.gmra.mxu1 %vm293_vm8, %v2976_v8 }
0x1bd0   :  { %3939 = vmatmul.msk.f32.gmra.mxu2 %vm293_vm8, %v4994_v2 }
0x1bd2   :  { %3936 = vmatmul.msk.f32.gmra.mxu0 %vm293_vm8, %v2975_v29 }
0x1bd3   :  { %3941 = vmatmul.msk.f32.vlgmr.msrb.gmra.mxu1 %vm293_vm8, %v2974_v32 }
0x1bd8   :  { %3940 = vmatmul.msk.f32.gmra.mxu2 %vm293_vm8, %v5004_v6 }
0x1bda   :  { %3937 = vmatmul.msk.f32.gmra.mxu0 %vm293_vm8, %v2976_v8 }
0x1bdb   :  { %3942 = vmatmul.msk.f32.gmra.mxu1 %vm293_vm8, %v2975_v29 }
0x1be3   :  { %3943 = vmatmul.msk.f32.gmra.mxu1 %vm293_vm8, %v2976_v8 }
0x1c17   :  { %v3004_v13 = vpop.f32.mrf.mxu0 }
0x1c1b   :  { %v3039_v45 = vpop.f32.mrf.mxu2  ;;  %v3065_v19 = vpop.f32.mrf.mxu3 }
0x1c1c   :  { %v3152_v20 = vsub.f32 %v3039_v45, %v3065_v19  ;;  %v4216_v19 = vmov 0  }
0x1c1d   :  { %3986 = vset.pattern.permute.xlu0 %v4216_v19  ;;  %3985 = vset.pattern.permute.xlu2 %v4216_v19 }
0x1c1e   :  { %3984 = vset.pattern.permute.xlu1 %v4216_v19 }
0x1c1f   :  { %v3007_v61 = vpop.f32.mrf.mxu0 }
0x1c20   :  { %v3091_v25 = vpop.f32.mrf.mxu1 }
0x1c23   :  { %v3042_v15 = vpop.f32.mrf.mxu2 }
0x1c27   :  { %v3010_v43 = vpop.f32.mrf.mxu0  ;;  %v3068_v35 = vpop.f32.mrf.mxu3 }
0x1c28   :  { %v3094_v39 = vpop.f32.mrf.mxu1  ;;  %v3153_v41 = vsub.f32 %v3042_v15, %v3068_v35 }
0x1c2b   :  { %v3045_v16 = vpop.f32.mrf.mxu2 }
0x1c2f   :  { %v3117_v27 = vpop.f32.mrf.mxu0  ;;  %v3071_v17 = vpop.f32.mrf.mxu3 }
0x1c30   :  { %v3158_v31 = vmul.f32 %v3117_v27, %v3091_v25  ;;  %v3097_v10 = vpop.f32.mrf.mxu1  ;;  %v3154_v55 = vsub.f32 %v3045_v16, %v3071_v17 }
0x1c33   :  { %v3143_v28 = vpop.f32.mrf.mxu2 }
0x1c34   :  { %v3144_v21 = vadd.f32 %v3143_v28, %v3004_v13 }
0x1c36   :  { %v3155_v37 = vadd.f32 %v3152_v20, %v3144_v21 }
0x1c37   :  { %v3120_v36 = vpop.f32.mrf.mxu0 }
0x1c38   :  { %v3161_v40 = vadd.f32 %v3158_v31, %v3155_v37  ;;  %v3159_v42 = vmul.f32 %v3120_v36, %v3094_v39 }
0x1c3a   :  { %4129 = vtanh.f32 %v3161_v40 }
0x1c3b   :  { %v3146_v33 = vpop.f32.mrf.mxu2 }
0x1c3c   :  { %v3147_v11 = vadd.f32 %v3146_v33, %v3007_v61 }
0x1c3e   :  { %v3156_v47 = vadd.f32 %v3153_v41, %v3147_v11 }
0x1c3f   :  { %v3123_v23 = vpop.f32.mrf.mxu0 }
0x1c40   :  { %v5042_v51 = vpop.eup %4129  ;;  %v3162_v48 = vadd.f32 %v3159_v42, %v3156_v47  ;;  %v3160_v14 = vmul.f32 %v3123_v23, %v3097_v10 }
0x1c41   :  { %v3170_v46 = vmul.f32 %v5042_v51, %v5040_v44 }
0x1c42   :  { %4131 = vtanh.f32 %v3162_v48 }
0x1c43   :  { %v3149_v49 = vpop.f32.mrf.mxu2  ;;  %v3173_v12 = vsel %vm132_vm0, %v3170_v46, 0.0 }
0x1c44   :  { %v3150_v63 = vadd.f32 %v3149_v49, %v3010_v43  ;;  %3174 = vadd.xlane.f32.xlu1 %v3173_v12 }
0x1c46   :  { %v3157_v34 = vadd.f32 %v3154_v55, %v3150_v63 }
0x1c48   :  { %v5047_v50 = vpop.eup %4131  ;;  %v3163_v24 = vadd.f32 %v3160_v14, %v3157_v34 }
0x1c49   :  { %v3171_v18 = vmul.f32 %v5047_v50, %v5040_v44 }
0x1c4a   :  { %4133 = vtanh.f32 %v3163_v24 }
0x1c4b   :  { %v3176_v38 = vsel %vm132_vm0, %v3171_v18, 0.0 }
0x1c4c   :  { %3177 = vadd.xlane.f32.xlu2 %v3176_v38 }
0x1c50   :  { %v5052_v52 = vpop.eup %4133 }
0x1c51   :  { %v3172_v53 = vmul.f32 %v5052_v52, %v5040_v44 }
0x1c53   :  { %v3179_v30 = vsel %vm132_vm0, %v3172_v53, 0.0 }
0x1c54   :  { %3180 = vadd.xlane.f32.xlu0 %v3179_v30 }
0x1cb7   :  { %v3175_v32 = vpop.xlane.xlu1 %3174 }
0x1cb8   :  { %v3186_v59 = vadd.f32 %v5057_v1, %v3175_v32 }
0x1cba   :  { %v3192_v0 = vsub.f32 %v3186_v59, %v3189_v60 }
0x1cbc   :  { %v3196_v29 = vsel %vm3195_vm9, %v3192_v0, -inf }
0x1cbf   :  { %v3178_v56 = vpop.xlane.xlu2 %3177 }
0x1cc0   :  { %v3187_v58 = vadd.f32 %v5057_v1, %v3178_v56 }
0x1cc2   :  { %v3193_v62 = vsub.f32 %v3187_v58, %v3190_v26 }
0x1cc4   :  { %v3197_v22 = vsel %vm3195_vm9, %v3193_v62, -inf }
0x1cc5   :  { %v3199_v7 = vmax.f32 %v3196_v29, %v3197_v22 }
0x1cc7   :  { %v3181_v4 = vpop.xlane.xlu0 %3180 }
0x1cc8   :  { %v3188_v5 = vadd.f32 %v5057_v1, %v3181_v4 }
0x1cca   :  { %v3194_v57 = vsub.f32 %v3188_v5, %v3191_v3 }
0x1ccc   :  { %v3198_v8 = vsel %vm3195_vm9, %v3194_v57, -inf }
0x1ccd   :  { %v3200_v13 = vmax.f32 %v3199_v7, %v3198_v8  ;;  %v3383_v7 = vpop.f32.mrf.mxu2 }
0x1ccf   :  { %v3201_v45 = vrot.slane %v3200_v13, 4 }
0x1cd1   :  { %v3202_v61 = vmax.f32 %v3200_v13, %v3201_v45 }
0x1cd3   :  { %v3203_v15 = vrot.slane %v3202_v61, 2 }
0x1cd5   :  { %v3204_v43 = vmax.f32 %v3202_v61, %v3203_v15 }
0x1cd7   :  { %v3205_v16 = vrot.slane %v3204_v43, 1 }
0x1cd9   :  { %v3206_v25 = vmax.f32 %v3204_v43, %v3205_v16  ;;  %v3386_v43 = vpop.f32.mrf.mxu2 }
0x1cdb   :  { %v3207_v27 = vsub.f32 %v3192_v0, %v3206_v25  ;;  %v3208_v28 = vsub.f32 %v3193_v62, %v3206_v25  ;;  %v3209_v20 = vsub.f32 %v3194_v57, %v3206_v25  ;;  %v3357_v57 = vpop.f32.mrf.mxu0 }
0x1cdd   :  { %v3210_v21 = vmul.f32 1.442695, %v3207_v27  ;;  %v3212_v31 = vmul.f32 1.442695, %v3208_v28  ;;  %v3214_v35 = vmul.f32 1.442695, %v3209_v20 }
0x1cdf   :  { %4135 = vpow2.f32 %v3210_v21 }
0x1ce0   :  { %4137 = vpow2.f32 %v3212_v31 }
0x1ce1   :  { %4139 = vpow2.f32 %v3214_v35 }
0x1ce3   :  { %v3360_v15 = vpop.f32.mrf.mxu0 }
0x1ce5   :  { %v4136_v37 = vpop.eup %4135 }
0x1ce6   :  { %v4138_v39 = vpop.eup %4137  ;;  %v3216_v40 = vsel %vm3195_vm9, %v4136_v37, 0.0 }
0x1ce7   :  { %v4140_v36 = vpop.eup %4139  ;;  %v3217_v33 = vsel %vm3195_vm9, %v4138_v39, 0.0 }
0x1ce8   :  { %v3218_v41 = vadd.f32 %v3217_v33, %v3216_v40  ;;  %v3219_v11 = vsel %vm3195_vm9, %v4140_v36, 0.0 }
0x1cea   :  { %v3220_v42 = vadd.f32 %v3219_v11, %v3218_v41 }
0x1ceb   :  { %v3363_v31 = vpop.f32.mrf.mxu0 }
0x1cec   :  { %v3221_v47 = vrot.slane %v3220_v42, 4 }
0x1cee   :  { %v3222_v17 = vadd.f32 %v3221_v47, %v3220_v42 }
0x1cf0   :  { %v3223_v48 = vrot.slane %v3222_v17, 2 }
0x1cf2   :  { %v3224_v46 = vadd.f32 %v3223_v48, %v3222_v17 }
0x1cf4   :  { %v3225_v10 = vrot.slane %v3224_v46, 1 }
0x1cf6   :  { %v3226_v23 = vadd.f32 %v3225_v10, %v3224_v46 }
0x1cf8   :  { %4141 = vrcp.f32 %v3226_v23 }
0x1cfe   :  { %v4142_v49 = vpop.eup %4141 }
0x1cff   :  { %v3230_v12 = vmul.f32 %v4142_v49, %v4140_v36  ;;  %v3229_v55 = vmul.f32 %v4142_v49, %v4138_v39  ;;  %v3228_v63 = vmul.f32 %v4142_v49, %v4136_v37  ;;  %v3389_v39 = vpop.f32.mrf.mxu2 }
0x1d01   :  { %3243 = vperm.xlu0 %3986, %v3230_v12   ;;  %3577 = vst.msk [vmem:[%s4374_s30 + $0x10] sm:$0xff] %vm3195_vm9, %v3230_v12  ;;  %3238 = vperm.xlu2 %3985, %v3229_v55  }
0x1d02   :  { %3576 = vst.msk [vmem:[%s4374_s30 + $0x8] sm:$0xff] %vm3195_vm9, %v3229_v55  ;;  %3233 = vperm.xlu1 %3984, %v3228_v63  }
0x1d03   :  { %3575 = vst.msk [vmem:[%s4374_s30] sm:$0xff] %vm3195_vm9, %v3228_v63 }
0x1d5b   :  { %v3239_v14 = vpop.permute.xlu2 %3238 }
0x1d5c   :  { %v3247_v34 = vmul.f32 %v5047_v50, %v3239_v14 }
0x1d5e   :  { %v3250_v30 = vsel %vm132_vm0, %v3247_v34, 0.0  ;;  %v3948_v34 = vld [vmem:[%s5182_s8 + $0x20] sm:$0xff] }
0x1d73   :  { %v3244_v24 = vpop.permute.xlu0 %3243 }
0x1d74   :  { %v3234_v18 = vpop.permute.xlu1 %3233  ;;  %v3248_v38 = vmul.f32 %v5052_v52, %v3244_v24 }
0x1d75   :  { %v3246_v53 = vmul.f32 %v5042_v51, %v3234_v18  ;;  %v3305_v51 = vpop.f32.mrf.mxu1  ;;  %v3947_v18 = vld [vmem:[%s5182_s8 + $0x18] sm:$0xff] }
0x1d76   :  { %v3252_v58 = vsel %vm132_vm0, %v3248_v38, 0.0 }
0x1d77   :  { %v3249_v32 = vsel %vm132_vm0, %v3246_v53, 0.0 }
0x1d78   :  { %v3251_v56 = vadd.f32 %v3250_v30, %v3249_v32  ;;  %v3949_v30 = vld [vmem:[%s5182_s8 + $0x28] sm:$0xff] }
0x1d7a   :  { %v3253_v26 = vadd.f32 %v3252_v58, %v3251_v56 }
0x1d7c   :  { %v3254_v59 = vrot.slane %v3253_v26, 4 }
0x1d7d   :  { %v3308_v52 = vpop.f32.mrf.mxu1 }
0x1d7e   :  { %v3255_v60 = vadd.f32 %v3254_v59, %v3253_v26 }
0x1d80   :  { %v3256_v62 = vrot.slane %v3255_v60, 2 }
0x1d82   :  { %v3257_v0 = vadd.f32 %v3256_v62, %v3255_v60 }
0x1d84   :  { %v3258_v3 = vrot.slane %v3257_v0, 1 }
0x1d85   :  { %v3311_v5 = vpop.f32.mrf.mxu1 }
0x1d86   :  { %v3259_v50 = vadd.f32 %v3258_v3, %v3257_v0 }
0x1d88   :  { %3928 = vmatmul.msk.f32.vlgmr.msra.gmra.mxu3 %vm132_vm0, %v3259_v50 }
0x1d89   :  { %3433 = vmatpush.msra.mxu3 %v4983_v9 }
0x1d8d   :  { %v3409_v8 = vpop.f32.mrf.mxu1 }
0x1d8e   :  { %v3450_v61 = vmul.f32 %v3409_v8, %v3383_v7 }
0x1d90   :  { %3932 = vmatmul.msk.f32.vlgmr.msrb.gmra.mxu3 %vm293_vm8, %v4979_v54 }
0x1d95   :  { %v3412_v16 = vpop.f32.mrf.mxu1 }
0x1d96   :  { %v3451_v28 = vmul.f32 %v3412_v16, %v3386_v43 }
0x1d98   :  { %3933 = vmatmul.msk.f32.gmra.mxu3 %vm293_vm8, %v4994_v2 }
0x1d9d   :  { %v3415_v40 = vpop.f32.mrf.mxu1 }
0x1d9e   :  { %v3452_v42 = vmul.f32 %v3415_v40, %v3389_v39 }
0x1da0   :  { %3934 = vmatmul.msk.f32.gmra.mxu3 %vm293_vm8, %v5004_v6 }
0x1da8   :  { %3944 = vmatmul.msk.f32.vlgmr.msra.gmra.mxu3 %vm293_vm8, %v4979_v54 }
0x1db0   :  { %3945 = vmatmul.msk.f32.gmra.mxu3 %vm293_vm8, %v4994_v2 }
0x1db8   :  { %3946 = vmatmul.msk.f32.gmra.mxu3 %vm293_vm8, %v5004_v6  ;;  %vm3571_vm8 = vcmask 1040384  }
0x1e0b   :  { %v5097_v9 = vpop.f32.mrf.mxu3 }
0x1e13   :  { %v3331_v4 = vpop.f32.mrf.mxu3 }
0x1e14   :  { %v3444_v45 = vsub.f32 %v3331_v4, %v3357_v57 }
0x1e1b   :  { %v3334_v22 = vpop.f32.mrf.mxu3 }
0x1e1c   :  { %v3445_v25 = vsub.f32 %v3334_v22, %v3360_v15 }
0x1e23   :  { %v3337_v29 = vpop.f32.mrf.mxu3 }
0x1e24   :  { %v3446_v41 = vsub.f32 %v3337_v29, %v3363_v31 }
0x1e2b   :  { %v3435_v13 = vpop.f32.mrf.mxu3 }
0x1e2c   :  { %v3436_v54 = vadd.f32 %v3435_v13, %v3305_v51 }
0x1e2e   :  { %v3447_v2 = vadd.f32 %v3444_v45, %v3436_v54 }
0x1e30   :  { %v3453_v6 = vadd.f32 %v3450_v61, %v3447_v2 }
0x1e32   :  { %4143 = vtanh.f32 %v3453_v6 }
0x1e33   :  { %v3438_v19 = vpop.f32.mrf.mxu3 }
0x1e34   :  { %v3439_v27 = vadd.f32 %v3438_v19, %v3308_v52 }
0x1e36   :  { %v3448_v20 = vadd.f32 %v3445_v25, %v3439_v27 }
0x1e38   :  { %v5099_v21 = vpop.eup %4143  ;;  %v3454_v35 = vadd.f32 %v3451_v28, %v3448_v20 }
0x1e39   :  { %v3459_v37 = vmul.f32 %v5099_v21, %v5040_v44 }
0x1e3a   :  { %4145 = vtanh.f32 %v3454_v35 }
0x1e3b   :  { %v3441_v36 = vpop.f32.mrf.mxu3  ;;  %v3462_v33 = vsel %vm132_vm0, %v3459_v37, 0.0 }
0x1e3c   :  { %v3442_v11 = vadd.f32 %v3441_v36, %v3311_v5  ;;  %3463 = vadd.xlane.f32.xlu2 %v3462_v33 }
0x1e3e   :  { %v3449_v47 = vadd.f32 %v3446_v41, %v3442_v11 }
0x1e40   :  { %v5104_v17 = vpop.eup %4145  ;;  %v3455_v48 = vadd.f32 %v3452_v42, %v3449_v47 }
0x1e41   :  { %v3460_v46 = vmul.f32 %v5104_v17, %v5040_v44 }
0x1e42   :  { %4147 = vtanh.f32 %v3455_v48 }
0x1e43   :  { %v3465_v10 = vsel %vm132_vm0, %v3460_v46, 0.0 }
0x1e44   :  { %3466 = vadd.xlane.f32.xlu1 %v3465_v10 }
0x1e48   :  { %v5109_v23 = vpop.eup %4147 }
0x1e49   :  { %v3461_v49 = vmul.f32 %v5109_v23, %v5040_v44 }
0x1e4b   :  { %v3468_v12 = vsel %vm132_vm0, %v3461_v49, 0.0 }
0x1e4c   :  { %3469 = vadd.xlane.f32.xlu0 %v3468_v12 }
0x1eaf   :  { %v3464_v55 = vpop.xlane.xlu2 %3463 }
0x1eb0   :  { %v3471_v24 = vadd.f32 %v5057_v1, %v3464_v55 }
0x1eb2   :  { %v3478_v53 = vsub.f32 %v3471_v24, %v3947_v18 }
0x1eb4   :  { %v3481_v44 = vsel %vm3195_vm9, %v3478_v53, -inf }
0x1eb7   :  { %v3467_v63 = vpop.xlane.xlu1 %3466 }
0x1eb8   :  { %v3472_v14 = vadd.f32 %v5057_v1, %v3467_v63 }
0x1eba   :  { %v3479_v38 = vsub.f32 %v3472_v14, %v3948_v34 }
0x1ebc   :  { %v3482_v56 = vsel %vm3195_vm9, %v3479_v38, -inf }
0x1ebd   :  { %v3484_v59 = vmax.f32 %v3481_v44, %v3482_v56 }
0x1ebf   :  { %v3470_v32 = vpop.xlane.xlu0 %3469 }
0x1ec0   :  { %v3473_v58 = vadd.f32 %v5057_v1, %v3470_v32 }
0x1ec2   :  { %v3480_v26 = vsub.f32 %v3473_v58, %v3949_v30 }
0x1ec4   :  { %v3483_v60 = vsel %vm3195_vm9, %v3480_v26, -inf }
0x1ec5   :  { %v3485_v62 = vmax.f32 %v3484_v59, %v3483_v60 }
0x1ec7   :  { %v3486_v0 = vrot.slane %v3485_v62, 4 }
0x1ec9   :  { %v3487_v3 = vmax.f32 %v3485_v62, %v3486_v0 }
0x1ecb   :  { %v3488_v50 = vrot.slane %v3487_v3, 2 }
0x1ecd   :  { %v3489_v51 = vmax.f32 %v3487_v3, %v3488_v50 }
0x1ecf   :  { %v3490_v52 = vrot.slane %v3489_v51, 1 }
0x1ed1   :  { %v3491_v4 = vmax.f32 %v3489_v51, %v3490_v52 }
0x1ed3   :  { %v3492_v22 = vsub.f32 %v3478_v53, %v3491_v4  ;;  %v3494_v5 = vsub.f32 %v3480_v26, %v3491_v4  ;;  %v3493_v29 = vsub.f32 %v3479_v38, %v3491_v4 }
0x1ed5   :  { %v3495_v57 = vmul.f32 1.442695, %v3492_v22  ;;  %v3499_v7 = vmul.f32 1.442695, %v3494_v5  ;;  %v3497_v8 = vmul.f32 1.442695, %v3493_v29 }
0x1ed7   :  { %4149 = vpow2.f32 %v3495_v57 }
0x1ed8   :  { %4151 = vpow2.f32 %v3499_v7 }
0x1ed9   :  { %4153 = vpow2.f32 %v3497_v8 }
0x1edd   :  { %v4150_v1 = vpop.eup %4149 }
0x1ede   :  { %v4152_v13 = vpop.eup %4151  ;;  %v3501_v45 = vsel %vm3195_vm9, %v4150_v1, 0.0 }
0x1edf   :  { %v4154_v54 = vpop.eup %4153  ;;  %v3504_v2 = vsel %vm3195_vm9, %v4152_v13, 0.0 }
0x1ee0   :  { %v3502_v61 = vsel %vm3195_vm9, %v4154_v54, 0.0 }
0x1ee1   :  { %v3503_v15 = vadd.f32 %v3502_v61, %v3501_v45 }
0x1ee3   :  { %v3505_v43 = vadd.f32 %v3504_v2, %v3503_v15 }
0x1ee5   :  { %v3506_v16 = vrot.slane %v3505_v43, 4 }
0x1ee7   :  { %v3507_v6 = vadd.f32 %v3506_v16, %v3505_v43 }
0x1ee9   :  { %v3508_v19 = vrot.slane %v3507_v6, 2 }
0x1eeb   :  { %v3509_v25 = vadd.f32 %v3508_v19, %v3507_v6 }
0x1eed   :  { %v3510_v27 = vrot.slane %v3509_v25, 1 }
0x1eef   :  { %v3511_v28 = vadd.f32 %v3510_v27, %v3509_v25 }
0x1ef1   :  { %4155 = vrcp.f32 %v3511_v28 }
0x1ef7   :  { %v4156_v20 = vpop.eup %4155 }
0x1ef8   :  { %v3514_v31 = vmul.f32 %v4156_v20, %v4154_v54  ;;  %v3513_v35 = vmul.f32 %v4156_v20, %v4150_v1  ;;  %v3515_v37 = vmul.f32 %v4156_v20, %v4152_v13 }
0x1efa   :  { %3523 = vperm.xlu1 %3984, %v3514_v31   ;;  %3579 = vst.msk [vmem:[%s4374_s30 + $0x20] sm:$0xff] %vm3195_vm9, %v3514_v31  ;;  %3518 = vperm.xlu2 %3985, %v3513_v35  }
0x1efb   :  { %3578 = vst.msk [vmem:[%s4374_s30 + $0x18] sm:$0xff] %vm3195_vm9, %v3513_v35 }
0x1efc   :  { %3580 = vst.msk [vmem:[%s4374_s30 + $0x28] sm:$0xff] %vm3195_vm9, %v3515_v37  ;;  %s4171_s30 = sshra.s32 %s3589_s24, 4  ;;  %s4172_s30 = int_to_ptr.hbm [resolvable:$true] %s4171_s30 }
0x1efd   :  { %s4173_s12 = scalar_lea.hbm %s4172_s30, 2  ;;  %p4176_p1 = scmp.lt.s32.totalorder %s4172_s30, %s4369_s4 }
0x1efe   :  { %p4174_p0 = scmp.ne.s32.totalorder %s4172_s30, %s4173_s12  ;;  %p4177_p2 = scmp.lt.s32.totalorder %s4175_s20, %s4173_s12 }
0x1f00   :  { %p4178_p3 = por %p4177_p2, %p4176_p1 }
0x1f02   :  { %3528 = vperm.xlu2 %3985, %v3515_v37   ;;  %p4179_p4 = pnand %p4178_p3, %p4174_p0 }
0x1f54   :  { %v3519_v39 = vpop.permute.xlu2 %3518 }
0x1f55   :  { %v3531_v36 = vmul.f32 %v5099_v21, %v3519_v39 }
0x1f57   :  { %v3534_v42 = vsel %vm132_vm0, %v3531_v36, 0.0 }
0x1f5c   :  { %v3529_v40 = vpop.permute.xlu2 %3528 }
0x1f5d   :  { %v3533_v41 = vmul.f32 %v5109_v23, %v3529_v40  ;;  %v3264_v23 = vld [vmem:[%s4364_s27] sm:$0x1] }
0x1f5e   :  { %v3286_v24 = vadd.f32 %v5097_v9, %v3264_v23 }
0x1f5f   :  { %v3537_v46 = vsel %vm132_vm0, %v3533_v41, 0.0 }
0x1f6c   :  { %v3524_v33 = vpop.permute.xlu1 %3523 }
0x1f6d   :  { %v3532_v11 = vmul.f32 %v5104_v17, %v3524_v33 }
0x1f6f   :  { %v3535_v47 = vsel %vm132_vm0, %v3532_v11, 0.0 }
0x1f70   :  { %v3536_v48 = vadd.f32 %v3535_v47, %v3534_v42 }
0x1f72   :  { %v3538_v10 = vadd.f32 %v3537_v46, %v3536_v48 }
0x1f74   :  { %v3539_v49 = vrot.slane %v3538_v10, 4 }
0x1f76   :  { %v3540_v12 = vadd.f32 %v3539_v49, %v3538_v10 }
0x1f78   :  { %v3541_v55 = vrot.slane %v3540_v12, 2 }
0x1f7a   :  { %v3542_v63 = vadd.f32 %v3541_v55, %v3540_v12 }
0x1f7c   :  { %v3543_v21 = vrot.slane %v3542_v63, 1 }
0x1f7e   :  { %v3544_v14 = vadd.f32 %v3543_v21, %v3542_v63 }
0x1f80   :  { %3950 = vmatmul.msk.f32.vlgmr.msrb.gmra.mxu0 %vm132_vm0, %v3544_v14 }
0x1ffd   :  { %v3565_v34 = vpop.f32.mrf.mxu0 }
0x1ffe   :  { %v3566_v17 = vadd.f32 %v3565_v34, %v3264_v23 }
0x2000   :  { %v3569_v18 = vrot.slane %v3566_v17, 7 }
0x2002   :  { %v3572_v38 = vsel %vm3571_vm8, %v3286_v24, %v3569_v18 }
0x2003   :  { %3574 = vst.msk [vmem:[#allocation3] sm:$0x3] %vm3573_vm10, %v3572_v38 }
0x2004   :  { %4182 = shalt.err (!%p4179_p4)
}
0x2005   :  { %3591 = dma.vmem_to_hbm [thread:$0]  %s3587_s19, 32, %s3589_s24, [#allocation4]  }
0x2006   :  { %4183 = dma.done.wait [#allocation4], 32  }
0x2007   :  { %4184 = vsyncadd [#allocation4], 4294967264 }
0x2008   :  { %3600 = vsyncpa [#allocation4], 1 }

</bundles_post_ra>
